<compile_context>
chip_gen: v6e
topology: v6e:2x2x1
jax: 0.10.0
libtpu: 0.0.40
codegen_flags: <defaults>
</compile_context>

<pallas_src>
import jax
import jax.numpy as jnp
from jax.experimental import pallas as pl
from jax.experimental.pallas import tpu as pltpu


def _generator_kernel(c_ref, z_ref, w1z_ref, w1c_ref, b1_ref,
                      w2_ref, b2_ref, w3_ref, b3_ref, o_ref):
    # ---- Linear 1: z @ W1[:dim_z] (bf16 weights, f32 MXU accumulation) ----
    z = z_ref[...].astype(jnp.bfloat16)
    h = jnp.dot(z, w1z_ref[...], preferred_element_type=jnp.float32)

    # + onehot(c) @ W1[dim_z:dim_z+2]  ==  per-row select of one of two rows
    w1c = w1c_ref[...]                               # (2, dim_h) f32
    is_one = (c_ref[...] == 1)                       # (B, 1) bool
    h = h + jnp.where(is_one, w1c[1:2, :], w1c[0:1, :])
    h = h + b1_ref[...]
    h = jnp.where(h >= 0.0, h, 0.02 * h)             # LeakyReLU(0.02)

    # ---- Hidden Linear + LeakyReLU(0.02)   (n_h = 1) ----
    h = jnp.dot(h.astype(jnp.bfloat16), w2_ref[...],
                preferred_element_type=jnp.float32) + b2_ref[...]
    h = jnp.where(h >= 0.0, h, 0.02 * h)

    # ---- Output Linear + ReLU ----
    h = jnp.dot(h.astype(jnp.bfloat16), w3_ref[...],
                preferred_element_type=jnp.float32) + b3_ref[...]
    h = jnp.maximum(h, 0.0)

    # ---- L2-normalize along feature dim: h * rsqrt(sum(h^2)) ----
    sumsq = jnp.sum(h * h, axis=1, keepdims=True)
    o_ref[...] = (h * jax.lax.rsqrt(sumsq)).astype(o_ref.dtype)


def generator_forward(z, c, params):
    """z: (B, dim_z) float32, c: (B,) int labels in {0,1}."""
    w1z, w1c, b1, w2, b2, w3, b3 = params
    B, dim_z = z.shape
    dim_h = w2.shape[0]
    d_out = w3.shape[1]

    # Label as a (B, 1) int32 column; the one-hot/concat is folded into the
    # kernel as a W1-row select.
    c2 = c.reshape(B, 1).astype(jnp.int32)

    vmem = pl.BlockSpec(memory_space=pltpu.MemorySpace.VMEM)

    flops = 2 * B * (dim_z * dim_h + dim_h * dim_h + dim_h * d_out)
    bytes_accessed = sum(int(a.size) * a.dtype.itemsize
                         for a in (c2, z, w1z, w1c, b1, w2, b2, w3, b3))
    bytes_accessed += B * d_out * z.dtype.itemsize   # output

    return pl.pallas_call(
        _generator_kernel,
        out_shape=jax.ShapeDtypeStruct((B, d_out), z.dtype),
        in_specs=[vmem] * 9,
        out_specs=vmem,
        cost_estimate=pl.CostEstimate(flops=flops,
                                      transcendentals=B,
                                      bytes_accessed=bytes_accessed),
    )(c2, z, w1z, w1c, b1, w2, b2, w3, b3)


def init_params(key, dim_z=64, dim_h=1024, d_out=256):
    """Deterministic synthetic parameters (shapes match the nn.Module).

    Weights stored pre-transposed (in, out); big weight matrices in bf16
    (f32 accumulation happens on the MXU), biases and the tiny label rows
    of W1 kept in f32.
    """
    d_in = dim_z + 2
    ks = jax.random.split(key, 6)

    def linear(kw, kb, fan_in, fan_out):
        lim = 1.0 / jnp.sqrt(jnp.float32(fan_in))
        w = jax.random.uniform(kw, (fan_in, fan_out), jnp.float32, -lim, lim)
        b = jax.random.uniform(kb, (1, fan_out), jnp.float32, -lim, lim)
        return w, b

    w1, b1 = linear(ks[0], ks[1], d_in, dim_h)
    w2, b2 = linear(ks[2], ks[3], dim_h, dim_h)
    w3, b3 = linear(ks[4], ks[5], dim_h, d_out)

    w1z = w1[:dim_z, :].astype(jnp.bfloat16)   # (dim_z, dim_h)  bf16
    w1c = w1[dim_z:, :]                        # (2, dim_h)      f32 (tiny)
    return (w1z, w1c, b1,
            w2.astype(jnp.bfloat16), b2,
            w3.astype(jnp.bfloat16), b3)


if __name__ == "__main__":
    key = jax.random.PRNGKey(0)
    k_param, k_z, k_c = jax.random.split(key, 3)

    B, dim_z, dim_h, d_out = 8, 64, 1024, 256
    params = init_params(k_param, dim_z=dim_z, dim_h=dim_h, d_out=d_out)

    z = jax.random.normal(k_z, (B, dim_z), dtype=jnp.float32)
    c = jax.random.randint(k_c, (B,), 0, 2, dtype=jnp.int32)

    out = generator_forward(z, c, params)
    out = jax.block_until_ready(out)

    assert out.shape == (B, d_out), out.shape
    assert bool(jnp.all(jnp.isfinite(out)))
    # Rows should be unit-norm after the final normalization.
    norms = jnp.linalg.norm(out, axis=1)
    assert bool(jnp.all(jnp.abs(norms - 1.0) < 1e-3)), norms
    print("KERNEL_OK")
</pallas_src>

<mosaic_0001>
module attributes {stable_mosaic.version = 11 : i64} {
  func.func @_generator_kernel(%arg0: memref<8x1xi32, #tpu.memory_space<vmem>>, %arg1: memref<8x64xf32, #tpu.memory_space<vmem>>, %arg2: memref<64x1024xbf16, #tpu.memory_space<vmem>>, %arg3: memref<2x1024xf32, #tpu.memory_space<vmem>>, %arg4: memref<1x1024xf32, #tpu.memory_space<vmem>>, %arg5: memref<1024x1024xbf16, #tpu.memory_space<vmem>>, %arg6: memref<1x1024xf32, #tpu.memory_space<vmem>>, %arg7: memref<1024x256xbf16, #tpu.memory_space<vmem>>, %arg8: memref<1x256xf32, #tpu.memory_space<vmem>>, %arg9: memref<8x256xf32, #tpu.memory_space<vmem>>) attributes {dimension_semantics = [], scalar_prefetch = 0 : i64, scratch_operands = 0 : i64, tpu.core_type = #tpu.core_type<tc>} {
    %c0 = arith.constant 0 : index
    %c0_0 = arith.constant 0 : index
    %0 = vector.load %arg1[%c0, %c0_0] : memref<8x64xf32, #tpu.memory_space<vmem>>, vector<8x64xf32>
    %1 = arith.truncf %0 : vector<8x64xf32> to vector<8x64xbf16>
    %c0_1 = arith.constant 0 : index
    %c0_2 = arith.constant 0 : index
    %2 = vector.load %arg2[%c0_1, %c0_2] : memref<64x1024xbf16, #tpu.memory_space<vmem>>, vector<64x1024xbf16>
    %cst = arith.constant dense<0.000000e+00> : vector<8x1024xf32>
    %3 = tpu.matmul %1, %2, %cst {dimension_numbers = #tpu.dot_dimension_numbers<[1], [0], [0], [1], [0, 0, 1, 1], [], []>} : vector<8x64xbf16>, vector<64x1024xbf16>, vector<8x1024xf32> -> vector<8x1024xf32>
    %c0_3 = arith.constant 0 : index
    %c0_4 = arith.constant 0 : index
    %4 = vector.load %arg3[%c0_3, %c0_4] : memref<2x1024xf32, #tpu.memory_space<vmem>>, vector<2x1024xf32>
    %c0_5 = arith.constant 0 : index
    %c0_6 = arith.constant 0 : index
    %5 = vector.load %arg0[%c0_5, %c0_6] : memref<8x1xi32, #tpu.memory_space<vmem>>, vector<8x1xi32>
    %c1_i32 = arith.constant 1 : i32
    %6 = vector.broadcast %c1_i32 : i32 to vector<8x1xi32>
    %7 = arith.cmpi eq, %5, %6 : vector<8x1xi32>
    %8 = vector.extract_strided_slice %4 {offsets = [1, 0], sizes = [1, 1024], strides = [1, 1]} : vector<2x1024xf32> to vector<1x1024xf32>
    %9 = vector.extract_strided_slice %4 {offsets = [0, 0], sizes = [1, 1024], strides = [1, 1]} : vector<2x1024xf32> to vector<1x1024xf32>
    %10 = vector.shape_cast %7 : vector<8x1xi1> to vector<8x1xi1>
    %11 = vector.broadcast %10 : vector<8x1xi1> to vector<8x1024xi1>
    %12 = vector.shape_cast %8 : vector<1x1024xf32> to vector<1x1024xf32>
    %13 = vector.broadcast %12 : vector<1x1024xf32> to vector<8x1024xf32>
    %14 = vector.shape_cast %9 : vector<1x1024xf32> to vector<1x1024xf32>
    %15 = vector.broadcast %14 : vector<1x1024xf32> to vector<8x1024xf32>
    %16 = arith.select %11, %13, %15 : vector<8x1024xi1>, vector<8x1024xf32>
    %17 = arith.addf %3, %16 : vector<8x1024xf32>
    %c0_7 = arith.constant 0 : index
    %c0_8 = arith.constant 0 : index
    %18 = vector.load %arg4[%c0_7, %c0_8] : memref<1x1024xf32, #tpu.memory_space<vmem>>, vector<1x1024xf32>
    %19 = vector.broadcast %18 : vector<1x1024xf32> to vector<8x1024xf32>
    %20 = arith.addf %17, %19 : vector<8x1024xf32>
    %cst_9 = arith.constant 0.000000e+00 : f32
    %21 = vector.broadcast %cst_9 : f32 to vector<8x1024xf32>
    %22 = arith.cmpf oge, %20, %21 : vector<8x1024xf32>
    %cst_10 = arith.constant 2.000000e-02 : f32
    %23 = vector.broadcast %cst_10 : f32 to vector<8x1024xf32>
    %24 = arith.mulf %23, %20 : vector<8x1024xf32>
    %25 = arith.select %22, %20, %24 : vector<8x1024xi1>, vector<8x1024xf32>
    %26 = arith.truncf %25 : vector<8x1024xf32> to vector<8x1024xbf16>
    %c0_11 = arith.constant 0 : index
    %c0_12 = arith.constant 0 : index
    %27 = vector.load %arg5[%c0_11, %c0_12] : memref<1024x1024xbf16, #tpu.memory_space<vmem>>, vector<1024x1024xbf16>
    %cst_13 = arith.constant dense<0.000000e+00> : vector<8x1024xf32>
    %28 = tpu.matmul %26, %27, %cst_13 {dimension_numbers = #tpu.dot_dimension_numbers<[1], [0], [0], [1], [0, 0, 1, 1], [], []>} : vector<8x1024xbf16>, vector<1024x1024xbf16>, vector<8x1024xf32> -> vector<8x1024xf32>
    %c0_14 = arith.constant 0 : index
    %c0_15 = arith.constant 0 : index
    %29 = vector.load %arg6[%c0_14, %c0_15] : memref<1x1024xf32, #tpu.memory_space<vmem>>, vector<1x1024xf32>
    %30 = vector.broadcast %29 : vector<1x1024xf32> to vector<8x1024xf32>
    %31 = arith.addf %28, %30 : vector<8x1024xf32>
    %cst_16 = arith.constant 0.000000e+00 : f32
    %32 = vector.broadcast %cst_16 : f32 to vector<8x1024xf32>
    %33 = arith.cmpf oge, %31, %32 : vector<8x1024xf32>
    %cst_17 = arith.constant 2.000000e-02 : f32
    %34 = vector.broadcast %cst_17 : f32 to vector<8x1024xf32>
    %35 = arith.mulf %34, %31 : vector<8x1024xf32>
    %36 = arith.select %33, %31, %35 : vector<8x1024xi1>, vector<8x1024xf32>
    %37 = arith.truncf %36 : vector<8x1024xf32> to vector<8x1024xbf16>
    %c0_18 = arith.constant 0 : index
    %c0_19 = arith.constant 0 : index
    %38 = vector.load %arg7[%c0_18, %c0_19] : memref<1024x256xbf16, #tpu.memory_space<vmem>>, vector<1024x256xbf16>
    %cst_20 = arith.constant dense<0.000000e+00> : vector<8x256xf32>
    %39 = tpu.matmul %37, %38, %cst_20 {dimension_numbers = #tpu.dot_dimension_numbers<[1], [0], [0], [1], [0, 0, 1, 1], [], []>} : vector<8x1024xbf16>, vector<1024x256xbf16>, vector<8x256xf32> -> vector<8x256xf32>
    %c0_21 = arith.constant 0 : index
    %c0_22 = arith.constant 0 : index
    %40 = vector.load %arg8[%c0_21, %c0_22] : memref<1x256xf32, #tpu.memory_space<vmem>>, vector<1x256xf32>
    %41 = vector.broadcast %40 : vector<1x256xf32> to vector<8x256xf32>
    %42 = arith.addf %39, %41 : vector<8x256xf32>
    %cst_23 = arith.constant 0.000000e+00 : f32
    %43 = vector.broadcast %cst_23 : f32 to vector<8x256xf32>
    %44 = arith.maximumf %42, %43 : vector<8x256xf32>
    %45 = arith.mulf %44, %44 : vector<8x256xf32>
    %cst_24 = arith.constant dense<0.000000e+00> : vector<8xf32>
    %46 = vector.multi_reduction <add>, %45, %cst_24 [1] : vector<8x256xf32> to vector<8xf32>
    %47 = vector.shape_cast %46 : vector<8xf32> to vector<8x1xf32>
    %48 = math.rsqrt %47 : vector<8x1xf32>
    %49 = vector.broadcast %48 : vector<8x1xf32> to vector<8x256xf32>
    %50 = arith.mulf %44, %49 : vector<8x256xf32>
    %c0_25 = arith.constant 0 : index
    %c0_26 = arith.constant 0 : index
    %51 = vector.load %arg9[%c0_25, %c0_26] : memref<8x256xf32, #tpu.memory_space<vmem>>, vector<8x256xf32>
    tpu.vector_store %arg9[%c0_25, %c0_26], %50 {strides = array<i32>} : memref<8x256xf32, #tpu.memory_space<vmem>>, vector<8x256xf32>,
    return
  }
}

</mosaic_0001>

<bundles_post_ra>
// kernel: tpu_custom_call.1
= control target key start
LH: loop header
LB: loop body
LE: loop exit
PB: predicated region body
PF: predicated region fallthrough
CT: control target
= control target key end

     0   :  { %14 = vsyncpa [#allocation3], 0  ;;  %s6947_s0 = inlined_call_operand.vmem [shape: s32[8,1], index: 0, kind: input, shape index: {}]   ;;  %s6948_s1 = inlined_call_operand.hbm [shape: f32[8,64], index: 1, kind: input, shape index: {}]   ;;  %s6949_s2 = inlined_call_operand.hbm [shape: bf16[64,1024], index: 2, kind: input, shape index: {}]   ;;  %s6950_s3 = inlined_call_operand.hbm [shape: f32[2,1024], index: 3, kind: input, shape index: {}]   ;;  %s6951_s4 = inlined_call_operand.hbm [shape: f32[1,1024], index: 4, kind: input, shape index: {}]   ;;  %s6952_s5 = inlined_call_operand.hbm [shape: bf16[1024,1024], index: 5, kind: input, shape index: {}]   ;;  %s6953_s6 = inlined_call_operand.hbm [shape: f32[1,1024], index: 6, kind: input, shape index: {}]   ;;  %s6954_s7 = inlined_call_operand.hbm [shape: bf16[1024,256], index: 7, kind: input, shape index: {}]   ;;  %s6955_s8 = inlined_call_operand.hbm [shape: f32[1,256], index: 8, kind: input, shape index: {}]   ;;  %s6956_s9 = inlined_call_operand.hbm [shape: f32[8,256], index: 9, kind: output, shape index: {}]  }
   0x1   :  { %15 = vsyncpa [#allocation6], 0 }
   0x2   :  { %16 = vsyncpa [#allocation9], 0 }
   0x3   :  { %17 = vsyncpa [#allocation12], 0 }
   0x4   :  { %18 = vsyncpa [#allocation15], 0 }
   0x5   :  { %19 = vsyncpa [#allocation4], 0  ;;  %s6595_s30 = smov [#allocation5]  }
   0x6   :  { %s37_s10 = sshll.u32 %s6595_s30, 4  ;;  %s38_s10 = int_to_ptr.vmem [resolvable:$true] %s37_s10 }
   0x7   :  { %s6411_s11 = scalar_lea.vmem %s38_s10, 4096  ;;  %p6416_p1 = scmp.lt.s32.totalorder %s38_s10, %s38_s10 }
   0x8   :  { %p6412_p0 = scmp.ne.s32.totalorder %s38_s10, %s6411_s11  ;;  %p6417_p2 = scmp.lt.s32.totalorder %s6411_s11, %s6411_s11 }
   0xa   :  { %p6418_p3 = por %p6417_p2, %p6416_p1 }
   0xc   :  { %p6419_p4 = pnand %p6418_p3, %p6412_p0 }
   0xe   :  { %6422 = shalt.err (!%p6419_p4)
}
   0xf   :  { %s6596_s12 = smov 512   ;;  %s6597_s13 = smov 32  }
  0x10   :  { %43 = dma.hbm_to_vmem [thread:$0]  %s6949_s2, 4096, %s38_s10, [#allocation6], %s6596_s12, %s6596_s12, %s6597_s13  }
  0x11   :  { %s6598_s16 = smov [#allocation8]   ;;  %s6599_s18 = smov [#allocation11]  }
  0x12   :  { %s60_s17 = sshll.u32 %s6598_s16, 4  ;;  %s82_s19 = sshll.u32 %s6599_s18, 4  ;;  %s61_s17 = int_to_ptr.vmem [resolvable:$true] %s60_s17  ;;  %s83_s19 = int_to_ptr.vmem [resolvable:$true] %s82_s19 }
  0x13   :  { %s6431_s20 = scalar_lea.vmem %s61_s17, 128  ;;  %p6436_p6 = scmp.lt.s32.totalorder %s61_s17, %s61_s17 }
  0x14   :  { %p6432_p5 = scmp.ne.s32.totalorder %s61_s17, %s6431_s20  ;;  %p6437_p7 = scmp.lt.s32.totalorder %s6431_s20, %s6431_s20 }
  0x16   :  { %p6438_p8 = por %p6437_p7, %p6436_p6 }
  0x18   :  { %p6439_p9 = pnand %p6438_p8, %p6432_p5 }
  0x1a   :  { %6442 = shalt.err (!%p6439_p9)
}
  0x1b   :  { %63 = dma.hbm_to_vmem [thread:$0]  %s6951_s4, 128, %s61_s17, [#allocation9]  }
  0x1c   :  { %s6451_s23 = scalar_lea.vmem %s83_s19, 128  ;;  %p6456_p11 = scmp.lt.s32.totalorder %s83_s19, %s83_s19 }
  0x1d   :  { %p6452_p10 = scmp.ne.s32.totalorder %s83_s19, %s6451_s23  ;;  %p6457_p12 = scmp.lt.s32.totalorder %s6451_s23, %s6451_s23 }
  0x1f   :  { %p6458_p13 = por %p6457_p12, %p6456_p11 }
  0x21   :  { %p6459_p0 = pnand %p6458_p13, %p6452_p10 }
  0x23   :  { %6462 = shalt.err (!%p6459_p0)
}
  0x24   :  { %85 = dma.hbm_to_vmem [thread:$0]  %s6953_s6, 128, %s83_s19, [#allocation12]  }
  0x25   :  { %s6600_s25 = smov [#allocation2]   ;;  %s6601_s27 = smov [#allocation7]  }
  0x26   :  { %s28_s26 = sshll.u32 %s6600_s25, 4  ;;  %s50_s28 = sshll.u32 %s6601_s27, 4  ;;  %s29_s26 = int_to_ptr.vmem [resolvable:$true] %s28_s26  ;;  %s51_s28 = int_to_ptr.vmem [resolvable:$true] %s50_s28 }
  0x27   :  { %s6471_s29 = scalar_lea.vmem %s29_s26, 128  ;;  %p6476_p2 = scmp.lt.s32.totalorder %s29_s26, %s29_s26 }
  0x28   :  { %p6472_p1 = scmp.ne.s32.totalorder %s29_s26, %s6471_s29  ;;  %p6477_p3 = scmp.lt.s32.totalorder %s6471_s29, %s6471_s29 }
  0x2a   :  { %p6478_p4 = por %p6477_p3, %p6476_p2 }
  0x2c   :  { %p6479_p5 = pnand %p6478_p4, %p6472_p1 }
  0x2e   :  { %6482 = shalt.err (!%p6479_p5)
}
  0x2f   :  { %31 = dma.hbm_to_vmem [thread:$0]  %s6948_s1, 128, %s29_s26, [#allocation3]  }
  0x30   :  { %s6491_s10 = scalar_lea.vmem %s51_s28, 256  ;;  %p6496_p7 = scmp.lt.s32.totalorder %s51_s28, %s51_s28 }
  0x31   :  { %p6492_p6 = scmp.ne.s32.totalorder %s51_s28, %s6491_s10  ;;  %p6497_p8 = scmp.lt.s32.totalorder %s6491_s10, %s6491_s10 }
  0x33   :  { %p6498_p9 = por %p6497_p8, %p6496_p7 }
  0x35   :  { %p6499_p10 = pnand %p6498_p9, %p6492_p6 }
  0x37   :  { %6502 = shalt.err (!%p6499_p10)
}
  0x38   :  { %53 = dma.hbm_to_vmem [thread:$0]  %s6950_s3, 256, %s51_s28, [#allocation6]  }
  0x39   :  { %s6602_s14 = smov [#allocation10]   ;;  %s6603_s16 = smov [#allocation13]  }
  0x3a   :  { %s69_s15 = sshll.u32 %s6602_s14, 4  ;;  %s91_s17 = sshll.u32 %s6603_s16, 4  ;;  %s70_s15 = int_to_ptr.vmem [resolvable:$true] %s69_s15  ;;  %s92_s17 = int_to_ptr.vmem [resolvable:$true] %s91_s17 }
  0x3b   :  { %s6511_s18 = scalar_lea.vmem %s70_s15, 65536  ;;  %p6516_p12 = scmp.lt.s32.totalorder %s70_s15, %s70_s15 }
  0x3c   :  { %p6512_p11 = scmp.ne.s32.totalorder %s70_s15, %s6511_s18  ;;  %p6517_p13 = scmp.lt.s32.totalorder %s6511_s18, %s6511_s18 }
  0x3e   :  { %p6518_p0 = por %p6517_p13, %p6516_p12 }
  0x40   :  { %p6519_p1 = pnand %p6518_p0, %p6512_p11 }
  0x42   :  { %6522 = shalt.err (!%p6519_p1)
}
  0x43   :  { %75 = dma.hbm_to_vmem [thread:$0]  %s6952_s5, 65536, %s70_s15, [#allocation9], %s6596_s12, %s6596_s12, %s6597_s13  }
  0x44   :  { %s6531_s3 = scalar_lea.vmem %s92_s17, 16384  ;;  %p6536_p3 = scmp.lt.s32.totalorder %s92_s17, %s92_s17 }
  0x45   :  { %p6532_p2 = scmp.ne.s32.totalorder %s92_s17, %s6531_s3  ;;  %p6537_p4 = scmp.lt.s32.totalorder %s6531_s3, %s6531_s3 }
  0x47   :  { %p6538_p5 = por %p6537_p4, %p6536_p3 }
  0x49   :  { %p6539_p6 = pnand %p6538_p5, %p6532_p2 }
  0x4b   :  { %6542 = shalt.err (!%p6539_p6)
}
  0x4c   :  { %s6604_s20 = smov 128   ;;  %s6605_s21 = smov 8  }
  0x4d   :  { %97 = dma.hbm_to_vmem [thread:$0]  %s6954_s7, 16384, %s92_s17, [#allocation12], %s6604_s20, %s6604_s20, %s6605_s21  }
  0x4e   :  { %s6606_s2 = smov [#allocation14]  }
  0x4f   :  { %s104_s24 = sshll.u32 %s6606_s2, 4  ;;  %s105_s24 = int_to_ptr.vmem [resolvable:$true] %s104_s24 }
  0x50   :  { %s6551_s25 = scalar_lea.vmem %s105_s24, 32  ;;  %p6556_p8 = scmp.lt.s32.totalorder %s105_s24, %s105_s24 }
  0x51   :  { %p6552_p7 = scmp.ne.s32.totalorder %s105_s24, %s6551_s25  ;;  %p6557_p9 = scmp.lt.s32.totalorder %s6551_s25, %s6551_s25 }
  0x53   :  { %p6558_p10 = por %p6557_p9, %p6556_p8 }
  0x55   :  { %p6559_p11 = pnand %p6558_p10, %p6552_p7 }
  0x57   :  { %6562 = shalt.err (!%p6559_p11)
}
  0x58   :  { %107 = dma.hbm_to_vmem [thread:$0]  %s6955_s8, 32, %s105_s24, [#allocation15]  }
  0x59   :  { %6583 = dma.done.wait [#allocation3], 128  }
  0x5a   :  { %6584 = vsyncadd [#allocation3], 4294967168 }
  0x5b   :  { %6585 = dma.done.wait [#allocation6], 4352  }
  0x5c   :  { %6586 = vsyncadd [#allocation6], 4294962944 }
  0x5d   :  { %6587 = dma.done.wait [#allocation9], 65664  }
  0x5e   :  { %6588 = vsyncadd [#allocation9], 4294901632 }
  0x5f   :  { %6589 = dma.done.wait [#allocation12], 16512  }
  0x60   :  { %6590 = vsyncadd [#allocation12], 4294950784 }
  0x61   :  { %6591 = dma.done.wait [#allocation15], 32  }
  0x62   :  { %6592 = vsyncadd [#allocation15], 4294967264  ;;  %v6607_v0 = vmov 0   ;;  %v159_v1 = vld [vmem:[#allocation5 + $0xc0] sm:$0xff]  ;;  %v160_v3 = vld [vmem:[#allocation5 + $0xc8] sm:$0xff]  ;;  %vm490_vm1 = vcmask 523264  }
  0x63   :  { %526 = vmatprep.mubr.bf16.mxu0 %v6607_v0  ;;  %567 = vmatprep.mubr.bf16.mxu1 %v6607_v0  ;;  %v163_v2 = vld [vmem:[#allocation5 + $0xe0] sm:$0xff]  ;;  %v164_v5 = vld [vmem:[#allocation5 + $0xe8] sm:$0xff]  ;;  %v161_v31 = vld [vmem:[#allocation5 + $0xd0] sm:$0xff] }
  0x64   :  { %6207 = vset.pattern.permute.xlu0 %v6607_v0  ;;  %v5542_v4 = vcombine.high %v159_v1, %v163_v2  ;;  %v5541_v6 = vcombine.low %v159_v1, %v163_v2  ;;  %v151_v7 = vld [vmem:[#allocation5 + $0x80] sm:$0xff]  ;;  %v5544_v9 = vcombine.high %v160_v3, %v164_v5  ;;  %v5543_v10 = vcombine.low %v160_v3, %v164_v5  ;;  %v152_v12 = vld [vmem:[#allocation5 + $0x88] sm:$0xff]  ;;  %v165_v32 = vld [vmem:[#allocation5 + $0xf0] sm:$0xff] }
  0x65   :  { %v155_v8 = vld [vmem:[#allocation5 + $0xa0] sm:$0xff]  ;;  %v156_v13 = vld [vmem:[#allocation5 + $0xa8] sm:$0xff]  ;;  %v162_v33 = vld [vmem:[#allocation5 + $0xd8] sm:$0xff]  ;;  %v5546_v39 = vcombine.high %v161_v31, %v165_v32  ;;  %v5545_v47 = vcombine.low %v161_v31, %v165_v32 }
  0x66   :  { %v5534_v11 = vcombine.high %v151_v7, %v155_v8  ;;  %v143_v14 = vld [vmem:[#allocation5 + $0x40] sm:$0xff]  ;;  %502 = vmatprep.subr.bf16.mxu0 %v5542_v4  ;;  %v5536_v15 = vcombine.high %v152_v12, %v156_v13  ;;  %v144_v17 = vld [vmem:[#allocation5 + $0x48] sm:$0xff]  ;;  %543 = vmatprep.subr.bf16.mxu1 %v5544_v9  ;;  %v5533_v19 = vcombine.low %v151_v7, %v155_v8  ;;  %v166_v34 = vld [vmem:[#allocation5 + $0xf8] sm:$0xff] }
  0x67   :  { %v147_v16 = vld [vmem:[#allocation5 + $0x60] sm:$0xff]  ;;  %v148_v18 = vld [vmem:[#allocation5 + $0x68] sm:$0xff]  ;;  %503 = vmatpush1.bf16.msra.mxu0 %v5541_v6  ;;  %544 = vmatpush1.bf16.msra.mxu1 %v5543_v10  ;;  %v5535_v20 = vcombine.low %v152_v12, %v156_v13  ;;  %v169_v35 = vld [vmem:[%s6947_s0] sm:$0xff]  ;;  %v5548_v41 = vcombine.high %v162_v33, %v166_v34  ;;  %v5547_v48 = vcombine.low %v162_v33, %v166_v34  ;;  %s6608_s0 = smov [#allocation16]  }
  0x68   :  { %504 = vmatprep.subr.bf16.mxu0 %v5534_v11  ;;  %v5526_v21 = vcombine.high %v143_v14, %v147_v16  ;;  %545 = vmatprep.subr.bf16.mxu1 %v5536_v15  ;;  %v5528_v22 = vcombine.high %v144_v17, %v148_v18  ;;  %v135_v23 = vld [vmem:[#allocation5] sm:$0xff]  ;;  %v136_v25 = vld [vmem:[#allocation5 + $0x8] sm:$0xff]  ;;  %v5525_v27 = vcombine.low %v143_v14, %v147_v16  ;;  %v133_v37 = vld [vmem:[#allocation2] sm:$0xff]  ;;  %vm170_vm0 = vcmp.eq.s32.totalorder %v169_v35, 1  ;;  %s5504_s13 = sshll.u32 %s6608_s0, 4  ;;  %s5505_s13 = int_to_ptr.vmem [resolvable:$true] %s5504_s13 }
  0x69   :  { %v139_v24 = vld [vmem:[#allocation5 + $0x20] sm:$0xff]  ;;  %v140_v26 = vld [vmem:[#allocation5 + $0x28] sm:$0xff]  ;;  %v5527_v28 = vcombine.low %v144_v17, %v148_v18  ;;  %v171_v40 = vsel %vm170_vm0, 1, %v6607_v0  ;;  %v153_v42 = vld [vmem:[#allocation5 + $0x90] sm:$0xff]  ;;  %v6696_v44 = vpack.c.bf16 %v133_v37, %v133_v37  ;;  %s6563_s26 = scalar_lea.vmem %s5505_s13, 256  ;;  %p6568_p13 = scmp.lt.s32.totalorder %s5505_s13, %s5505_s13 }
  0x6a   :  { %v5518_v29 = vcombine.high %v135_v23, %v139_v24  ;;  %v5520_v30 = vcombine.high %v136_v25, %v140_v26  ;;  %v5517_v36 = vcombine.low %v135_v23, %v139_v24  ;;  %v5519_v38 = vcombine.low %v136_v25, %v140_v26  ;;  %v157_v43 = vld [vmem:[#allocation5 + $0xb0] sm:$0xff]  ;;  %173 = vperm.xlu0 %6207, %v171_v40   ;;  %v154_v45 = vld [vmem:[#allocation5 + $0x98] sm:$0xff]  ;;  %p6564_p12 = scmp.ne.s32.totalorder %s5505_s13, %s6563_s26  ;;  %p6569_p0 = scmp.lt.s32.totalorder %s6563_s26, %s6563_s26 }
  0x6b   :  { %505 = vmatpush1.bf16.msra.mxu0 %v5533_v19  ;;  %546 = vmatpush1.bf16.msra.mxu1 %v5535_v20  ;;  %v158_v46 = vld [vmem:[#allocation5 + $0xb8] sm:$0xff]  ;;  %v5538_v49 = vcombine.high %v153_v42, %v157_v43  ;;  %v145_v51 = vld [vmem:[#allocation5 + $0x50] sm:$0xff]  ;;  %v5537_v55 = vcombine.low %v153_v42, %v157_v43 }
  0x6c   :  { %506 = vmatprep.subr.bf16.mxu0 %v5526_v21  ;;  %547 = vmatprep.subr.bf16.mxu1 %v5528_v22  ;;  %v5540_v50 = vcombine.high %v154_v45, %v158_v46  ;;  %v149_v52 = vld [vmem:[#allocation5 + $0x70] sm:$0xff]  ;;  %v146_v53 = vld [vmem:[#allocation5 + $0x58] sm:$0xff]  ;;  %v5539_v56 = vcombine.low %v154_v45, %v158_v46  ;;  %p6570_p1 = por %p6569_p0, %p6568_p13 }
  0x6d   :  { %v150_v54 = vld [vmem:[#allocation5 + $0x78] sm:$0xff]  ;;  %v5530_v57 = vcombine.high %v145_v51, %v149_v52  ;;  %v137_v59 = vld [vmem:[#allocation5 + $0x10] sm:$0xff]  ;;  %v5529_v63 = vcombine.low %v145_v51, %v149_v52 }
  0x6e   :  { %v5532_v58 = vcombine.high %v146_v53, %v150_v54  ;;  %v141_v60 = vld [vmem:[#allocation5 + $0x30] sm:$0xff]  ;;  %v138_v61 = vld [vmem:[#allocation5 + $0x18] sm:$0xff]  ;;  %v5531_v1 = vcombine.low %v146_v53, %v150_v54  ;;  %p6571_p2 = pnand %p6570_p1, %p6564_p12 }
  0x6f   :  { %507 = vmatpush1.bf16.msra.mxu0 %v5525_v27  ;;  %548 = vmatpush1.bf16.msra.mxu1 %v5527_v28  ;;  %v142_v62 = vld [vmem:[#allocation5 + $0x38] sm:$0xff]  ;;  %v5522_v2 = vcombine.high %v137_v59, %v141_v60  ;;  %v5521_v8 = vcombine.low %v137_v59, %v141_v60 }
  0x70   :  { %508 = vmatprep.subr.bf16.mxu0 %v5518_v29  ;;  %549 = vmatprep.subr.bf16.mxu1 %v5520_v30  ;;  %v5524_v3 = vcombine.high %v138_v61, %v142_v62  ;;  %v796_v4 = vld [vmem:[#allocation10 + $0x1c0] sm:$0xff]  ;;  %v5523_v11 = vcombine.low %v138_v61, %v142_v62 }
  0x71   :  { %v800_v5 = vld [vmem:[#allocation10 + $0x1e0] sm:$0xff] }
  0x72   :  { %v924_v6 = vld [vmem:[#allocation10 + $0x5c0] sm:$0xff]  ;;  %v5609_v15 = vcombine.low %v796_v4, %v800_v5 }
  0x73   :  { %509 = vmatpush1.bf16.msra.mxu0 %v5517_v36  ;;  %550 = vmatpush1.bf16.msra.mxu1 %v5519_v38  ;;  %v928_v7 = vld [vmem:[#allocation10 + $0x5e0] sm:$0xff] }
  0x74   :  { %584 = vmatprep.subr.bf16.mxu0 %v5546_v39  ;;  %625 = vmatprep.subr.bf16.mxu1 %v5548_v41  ;;  %v788_v9 = vld [vmem:[#allocation10 + $0x180] sm:$0xff]  ;;  %v5738_v14 = vcombine.high %v924_v6, %v928_v7  ;;  %v5737_v18 = vcombine.low %v924_v6, %v928_v7 }
  0x75   :  { %v792_v10 = vld [vmem:[#allocation10 + $0x1a0] sm:$0xff] }
  0x76   :  { %5549 = vmatmul.mubr.msk.bf16.vlgmr.msra.gmra.mxu0 %vm490_vm1, %v6696_v44  ;;  %5550 = vmatmul.mubr.msk.bf16.vlgmr.msra.gmra.mxu1 %vm490_vm1, %v6696_v44  ;;  %v916_v12 = vld [vmem:[#allocation10 + $0x580] sm:$0xff]  ;;  %v5602_v19 = vcombine.high %v788_v9, %v792_v10  ;;  %v5601_v23 = vcombine.low %v788_v9, %v792_v10 }
  0x77   :  { %585 = vmatpush1.bf16.msra.mxu0 %v5545_v47  ;;  %626 = vmatpush1.bf16.msra.mxu1 %v5547_v48  ;;  %v920_v13 = vld [vmem:[#allocation10 + $0x5a0] sm:$0xff] }
  0x78   :  { %586 = vmatprep.subr.bf16.mxu0 %v5538_v49  ;;  %627 = vmatprep.subr.bf16.mxu1 %v5540_v50  ;;  %v780_v16 = vld [vmem:[#allocation10 + $0x140] sm:$0xff]  ;;  %v5730_v22 = vcombine.high %v916_v12, %v920_v13  ;;  %v5729_v26 = vcombine.low %v916_v12, %v920_v13 }
  0x79   :  { %608 = vmatprep.mubr.bf16.mxu0 %v6607_v0  ;;  %649 = vmatprep.mubr.bf16.mxu1 %v6607_v0  ;;  %v5610_v0 = vcombine.high %v796_v4, %v800_v5  ;;  %v784_v17 = vld [vmem:[#allocation10 + $0x160] sm:$0xff] }
  0x7a   :  { %v908_v20 = vld [vmem:[#allocation10 + $0x540] sm:$0xff]  ;;  %v5594_v27 = vcombine.high %v780_v16, %v784_v17  ;;  %v5593_v31 = vcombine.low %v780_v16, %v784_v17 }
  0x7b   :  { %587 = vmatpush1.bf16.msra.mxu0 %v5537_v55  ;;  %628 = vmatpush1.bf16.msra.mxu1 %v5539_v56  ;;  %v912_v21 = vld [vmem:[#allocation10 + $0x560] sm:$0xff] }
  0x7c   :  { %588 = vmatprep.subr.bf16.mxu0 %v5530_v57  ;;  %629 = vmatprep.subr.bf16.mxu1 %v5532_v58  ;;  %v772_v24 = vld [vmem:[#allocation10 + $0x100] sm:$0xff]  ;;  %v5722_v30 = vcombine.high %v908_v20, %v912_v21  ;;  %v5721_v34 = vcombine.low %v908_v20, %v912_v21 }
  0x7d   :  { %v776_v25 = vld [vmem:[#allocation10 + $0x120] sm:$0xff] }
  0x7e   :  { %v900_v28 = vld [vmem:[#allocation10 + $0x500] sm:$0xff]  ;;  %v5586_v35 = vcombine.high %v772_v24, %v776_v25  ;;  %v5585_v39 = vcombine.low %v772_v24, %v776_v25 }
  0x7f   :  { %589 = vmatpush1.bf16.msra.mxu0 %v5529_v63  ;;  %630 = vmatpush1.bf16.msra.mxu1 %v5531_v1  ;;  %v904_v29 = vld [vmem:[#allocation10 + $0x520] sm:$0xff] }
  0x80   :  { %590 = vmatprep.subr.bf16.mxu0 %v5522_v2  ;;  %631 = vmatprep.subr.bf16.mxu1 %v5524_v3  ;;  %v764_v32 = vld [vmem:[#allocation10 + $0xc0] sm:$0xff]  ;;  %v5714_v38 = vcombine.high %v900_v28, %v904_v29  ;;  %v5713_v42 = vcombine.low %v900_v28, %v904_v29 }
  0x81   :  { %v768_v33 = vld [vmem:[#allocation10 + $0xe0] sm:$0xff] }
  0x82   :  { %v892_v36 = vld [vmem:[#allocation10 + $0x4c0] sm:$0xff]  ;;  %v5578_v43 = vcombine.high %v764_v32, %v768_v33  ;;  %v5577_v47 = vcombine.low %v764_v32, %v768_v33 }
  0x83   :  { %591 = vmatpush1.bf16.msra.mxu0 %v5521_v8  ;;  %632 = vmatpush1.bf16.msra.mxu1 %v5523_v11  ;;  %v896_v37 = vld [vmem:[#allocation10 + $0x4e0] sm:$0xff] }
  0x84   :  { %3854 = vmatprep.subr.bf16.mxu0 %v5610_v0  ;;  %3895 = vmatprep.subr.bf16.mxu1 %v5738_v14  ;;  %v756_v40 = vld [vmem:[#allocation10 + $0x80] sm:$0xff]  ;;  %v5706_v46 = vcombine.high %v892_v36, %v896_v37  ;;  %v5705_v50 = vcombine.low %v892_v36, %v896_v37 }
  0x85   :  { %v760_v41 = vld [vmem:[#allocation10 + $0xa0] sm:$0xff] }
  0x86   :  { %5551 = vmatmul.mubr.msk.bf16.vlgmr.msra.gmra.mxu0 %vm490_vm1, %v6696_v44  ;;  %5552 = vmatmul.mubr.msk.bf16.vlgmr.msra.gmra.mxu1 %vm490_vm1, %v6696_v44  ;;  %v884_v44 = vld [vmem:[#allocation10 + $0x480] sm:$0xff]  ;;  %v5570_v51 = vcombine.high %v756_v40, %v760_v41  ;;  %v5569_v55 = vcombine.low %v756_v40, %v760_v41 }
  0x87   :  { %3855 = vmatpush1.bf16.msra.mxu0 %v5609_v15  ;;  %3896 = vmatpush1.bf16.msra.mxu1 %v5737_v18  ;;  %v888_v45 = vld [vmem:[#allocation10 + $0x4a0] sm:$0xff] }
  0x88   :  { %3856 = vmatprep.subr.bf16.mxu0 %v5602_v19  ;;  %3897 = vmatprep.subr.bf16.mxu1 %v5730_v22  ;;  %v748_v48 = vld [vmem:[#allocation10 + $0x40] sm:$0xff]  ;;  %v5698_v54 = vcombine.high %v884_v44, %v888_v45  ;;  %v5697_v58 = vcombine.low %v884_v44, %v888_v45 }
  0x89   :  { %v752_v49 = vld [vmem:[#allocation10 + $0x60] sm:$0xff] }
  0x8a   :  { %v876_v52 = vld [vmem:[#allocation10 + $0x440] sm:$0xff]  ;;  %v5562_v59 = vcombine.high %v748_v48, %v752_v49  ;;  %v5561_v63 = vcombine.low %v748_v48, %v752_v49 }
  0x8b   :  { %3857 = vmatpush1.bf16.msra.mxu0 %v5601_v23  ;;  %3898 = vmatpush1.bf16.msra.mxu1 %v5729_v26  ;;  %v880_v53 = vld [vmem:[#allocation10 + $0x460] sm:$0xff] }
  0x8c   :  { %3858 = vmatprep.subr.bf16.mxu0 %v5594_v27  ;;  %3899 = vmatprep.subr.bf16.mxu1 %v5722_v30  ;;  %v740_v56 = vld [vmem:[#allocation10] sm:$0xff]  ;;  %v5690_v62 = vcombine.high %v876_v52, %v880_v53  ;;  %v5689_v3 = vcombine.low %v876_v52, %v880_v53 }
  0x8d   :  { %v744_v57 = vld [vmem:[#allocation10 + $0x20] sm:$0xff] }
  0x8e   :  { %v868_v60 = vld [vmem:[#allocation10 + $0x400] sm:$0xff]  ;;  %v5554_v4 = vcombine.high %v740_v56, %v744_v57  ;;  %v5553_v8 = vcombine.low %v740_v56, %v744_v57 }
  0x8f   :  { %3859 = vmatpush1.bf16.msra.mxu0 %v5593_v31  ;;  %3900 = vmatpush1.bf16.msra.mxu1 %v5721_v34  ;;  %v872_v61 = vld [vmem:[#allocation10 + $0x420] sm:$0xff] }
  0x90   :  { %3860 = vmatprep.subr.bf16.mxu0 %v5586_v35  ;;  %3901 = vmatprep.subr.bf16.mxu1 %v5714_v38  ;;  %v860_v1 = vld [vmem:[#allocation10 + $0x3c0] sm:$0xff]  ;;  %v5682_v7 = vcombine.high %v868_v60, %v872_v61  ;;  %v5681_v11 = vcombine.low %v868_v60, %v872_v61 }
  0x91   :  { %v864_v2 = vld [vmem:[#allocation10 + $0x3e0] sm:$0xff] }
  0x92   :  { %v988_v5 = vld [vmem:[#allocation10 + $0x7c0] sm:$0xff]  ;;  %v5674_v0 = vcombine.high %v860_v1, %v864_v2  ;;  %v5673_v15 = vcombine.low %v860_v1, %v864_v2 }
  0x93   :  { %3861 = vmatpush1.bf16.msra.mxu0 %v5585_v39  ;;  %3902 = vmatpush1.bf16.msra.mxu1 %v5713_v42  ;;  %v992_v6 = vld [vmem:[#allocation10 + $0x7e0] sm:$0xff] }
  0x94   :  { %3862 = vmatprep.subr.bf16.mxu0 %v5578_v43  ;;  %3903 = vmatprep.subr.bf16.mxu1 %v5706_v46  ;;  %v852_v9 = vld [vmem:[#allocation10 + $0x380] sm:$0xff]  ;;  %v5802_v14 = vcombine.high %v988_v5, %v992_v6  ;;  %v5801_v18 = vcombine.low %v988_v5, %v992_v6 }
  0x95   :  { %v856_v10 = vld [vmem:[#allocation10 + $0x3a0] sm:$0xff] }
  0x96   :  { %v980_v12 = vld [vmem:[#allocation10 + $0x780] sm:$0xff]  ;;  %v5666_v19 = vcombine.high %v852_v9, %v856_v10  ;;  %v5665_v23 = vcombine.low %v852_v9, %v856_v10 }
  0x97   :  { %3863 = vmatpush1.bf16.msra.mxu0 %v5577_v47  ;;  %3904 = vmatpush1.bf16.msra.mxu1 %v5705_v50  ;;  %v984_v13 = vld [vmem:[#allocation10 + $0x7a0] sm:$0xff] }
  0x98   :  { %3864 = vmatprep.subr.bf16.mxu0 %v5570_v51  ;;  %3905 = vmatprep.subr.bf16.mxu1 %v5698_v54  ;;  %v844_v16 = vld [vmem:[#allocation10 + $0x340] sm:$0xff]  ;;  %v5794_v22 = vcombine.high %v980_v12, %v984_v13  ;;  %v5793_v26 = vcombine.low %v980_v12, %v984_v13  ;;  %v178_v13 = vlaneseq }
  0x99   :  { %v848_v17 = vld [vmem:[#allocation10 + $0x360] sm:$0xff] }
  0x9a   :  { %v972_v20 = vld [vmem:[#allocation10 + $0x740] sm:$0xff]  ;;  %v5658_v27 = vcombine.high %v844_v16, %v848_v17  ;;  %v5657_v31 = vcombine.low %v844_v16, %v848_v17  ;;  %v167_v17 = vld [vmem:[#allocation7] sm:$0xff] }
  0x9b   :  { %3865 = vmatpush1.bf16.msra.mxu0 %v5569_v55  ;;  %3906 = vmatpush1.bf16.msra.mxu1 %v5697_v58  ;;  %v976_v21 = vld [vmem:[#allocation10 + $0x760] sm:$0xff] }
  0x9c   :  { %3866 = vmatprep.subr.bf16.mxu0 %v5562_v59  ;;  %3907 = vmatprep.subr.bf16.mxu1 %v5690_v62  ;;  %v836_v24 = vld [vmem:[#allocation10 + $0x300] sm:$0xff]  ;;  %v5786_v29 = vcombine.high %v972_v20, %v976_v21  ;;  %v5785_v32 = vcombine.low %v972_v20, %v976_v21 }
  0x9d   :  { %v840_v25 = vld [vmem:[#allocation10 + $0x320] sm:$0xff] }
  0x9e   :  { %v964_v28 = vld [vmem:[#allocation10 + $0x700] sm:$0xff]  ;;  %v5650_v33 = vcombine.high %v836_v24, %v840_v25  ;;  %v5649_v39 = vcombine.low %v836_v24, %v840_v25 }
  0x9f   :  { %3867 = vmatpush1.bf16.msra.mxu0 %v5561_v63  ;;  %3908 = vmatpush1.bf16.msra.mxu1 %v5689_v3  ;;  %v968_v30 = vld [vmem:[#allocation10 + $0x720] sm:$0xff] }
  0xa0   :  { %3868 = vmatprep.subr.bf16.mxu0 %v5554_v4  ;;  %3909 = vmatprep.subr.bf16.mxu1 %v5682_v7  ;;  %v5778_v34 = vcombine.high %v964_v28, %v968_v30  ;;  %v828_v35 = vld [vmem:[#allocation10 + $0x2c0] sm:$0xff]  ;;  %v5777_v40 = vcombine.low %v964_v28, %v968_v30 }
  0xa1   :  { %v832_v36 = vld [vmem:[#allocation10 + $0x2e0] sm:$0xff] }
  0xa2   :  { %v956_v37 = vld [vmem:[#allocation10 + $0x6c0] sm:$0xff]  ;;  %v5642_v41 = vcombine.high %v828_v35, %v832_v36  ;;  %v5641_v43 = vcombine.low %v828_v35, %v832_v36 }
  0xa3   :  { %3869 = vmatpush1.bf16.msra.mxu0 %v5553_v8  ;;  %3910 = vmatpush1.bf16.msra.mxu1 %v5681_v11  ;;  %v960_v38 = vld [vmem:[#allocation10 + $0x6e0] sm:$0xff] }
  0xa4   :  { %3870 = vmatprep.subr.bf16.mxu0 %v5674_v0  ;;  %3911 = vmatprep.subr.bf16.mxu1 %v5802_v14  ;;  %v5770_v42 = vcombine.high %v956_v37, %v960_v38  ;;  %v5769_v44 = vcombine.low %v956_v37, %v960_v38  ;;  %v820_v45 = vld [vmem:[#allocation10 + $0x280] sm:$0xff]  ;;  %v179_v14 = vshrl.u32 %v178_v13, 7  ;;  %v6755_v37 = vld [vmem:[#allocation8] sm:$0xff] }
  0xa5   :  { %v824_v46 = vld [vmem:[#allocation10 + $0x2a0] sm:$0xff] }
  0xa6   :  { %v948_v47 = vld [vmem:[#allocation10 + $0x680] sm:$0xff]  ;;  %v5634_v48 = vcombine.high %v820_v45, %v824_v46  ;;  %v5633_v51 = vcombine.low %v820_v45, %v824_v46  ;;  %v6726_v16 = vsub.s32 0, %v179_v14  ;;  %v6732_v20 = vsub.s32 2, %v179_v14 }
  0xa7   :  { %3871 = vmatpush2.bf16.msra.mxu0 %v5673_v15  ;;  %3912 = vmatpush2.bf16.msra.mxu1 %v5801_v18  ;;  %v952_v49 = vld [vmem:[#allocation10 + $0x6a0] sm:$0xff]  ;;  %v6724_v15 = vsub.s32 1, %v179_v14  ;;  %v6728_v18 = vsub.s32 5, %v179_v14  ;;  %v6734_v21 = vsub.s32 3, %v179_v14 }
  0xa8   :  { %3872 = vmatprep.subr.bf16.mxu0 %v5666_v19  ;;  %3913 = vmatprep.subr.bf16.mxu1 %v5794_v22  ;;  %v5762_v50 = vcombine.high %v948_v47, %v952_v49  ;;  %v5761_v52 = vcombine.low %v948_v47, %v952_v49  ;;  %v812_v53 = vld [vmem:[#allocation10 + $0x240] sm:$0xff]  ;;  %v6730_v19 = vsub.s32 4, %v179_v14  ;;  %v6736_v22 = vsub.s32 7, %v179_v14 }
  0xa9   :  { %v816_v54 = vld [vmem:[#allocation10 + $0x260] sm:$0xff]  ;;  %v181_v24 = vrot.slane %v167_v17, %v6724_v15  ;;  %v253_v25 = vrot.slane %v167_v17, %v6726_v16  ;;  %v257_v30 = vrot.slane %v167_v17, %v6732_v20  ;;  %v671_v46 = vrot.slane %v6755_v37, %v6732_v20 }
  0xaa   :  { %v940_v55 = vld [vmem:[#allocation10 + $0x640] sm:$0xff]  ;;  %v5626_v56 = vcombine.high %v812_v53, %v816_v54  ;;  %v5625_v58 = vcombine.low %v812_v53, %v816_v54  ;;  %v675_v54 = vrot.slane %v6755_v37, %v6734_v21 }
  0xab   :  { %3873 = vmatpush2.bf16.msra.mxu0 %v5665_v23  ;;  %3914 = vmatpush2.bf16.msra.mxu1 %v5793_v26  ;;  %v944_v57 = vld [vmem:[#allocation10 + $0x660] sm:$0xff]  ;;  %v6738_v23 = vsub.s32 6, %v179_v14  ;;  %v189_v26 = vrot.slane %v167_v17, %v6728_v18 }
  0xac   :  { %3874 = vmatprep.subr.bf16.mxu0 %v5658_v27  ;;  %3915 = vmatprep.subr.bf16.mxu1 %v5786_v29  ;;  %v5754_v59 = vcombine.high %v940_v55, %v944_v57  ;;  %v5753_v60 = vcombine.low %v940_v55, %v944_v57  ;;  %v804_v61 = vld [vmem:[#allocation10 + $0x200] sm:$0xff]  ;;  %v261_v27 = vrot.slane %v167_v17, %v6730_v19 }
  0xad   :  { %v808_v62 = vld [vmem:[#allocation10 + $0x220] sm:$0xff]  ;;  %v185_v29 = vrot.slane %v167_v17, %v6734_v21  ;;  %v229_v35 = vrot.slane %v189_v26, %v6724_v15 }
  0xae   :  { %v932_v63 = vld [vmem:[#allocation10 + $0x600] sm:$0xff]  ;;  %v5618_v1 = vcombine.high %v804_v61, %v808_v62  ;;  %v5617_v4 = vcombine.low %v804_v61, %v808_v62  ;;  %v301_v36 = vrot.slane %v261_v27, %v6726_v16 }
  0xaf   :  { %3875 = vmatpush2.bf16.msra.mxu0 %v5657_v31  ;;  %3916 = vmatpush2.bf16.msra.mxu1 %v5785_v32  ;;  %v936_v2 = vld [vmem:[#allocation10 + $0x620] sm:$0xff]  ;;  %v193_v31 = vrot.slane %v167_v17, %v6736_v22  ;;  %v265_v32 = vrot.slane %v167_v17, %v6738_v23  ;;  %v225_v38 = vrot.slane %v185_v29, %v6724_v15 }
  0xb0   :  { %3876 = vmatprep.subr.bf16.mxu0 %v5650_v33  ;;  %3917 = vmatprep.subr.bf16.mxu1 %v5778_v34  ;;  %v5746_v3 = vcombine.high %v932_v63, %v936_v2  ;;  %v5745_v5 = vcombine.low %v932_v63, %v936_v2  ;;  %v6708_v6 = vld [vmem:[#allocation10 + $0x9c0] sm:$0xff]  ;;  %v221_v33 = vrot.slane %v181_v24, %v6724_v15 }
  0xb1   :  { %v6710_v7 = vld [vmem:[#allocation10 + $0x9e0] sm:$0xff]  ;;  %v293_v34 = vrot.slane %v253_v25, %v6726_v16 }
  0xb2   :  { %v6712_v8 = vld [vmem:[#allocation10 + $0xdc0] sm:$0xff]  ;;  %v5866_v9 = vcombine.high %v6708_v6, %v6710_v7  ;;  %v5865_v11 = vcombine.low %v6708_v6, %v6710_v7 }
  0xb3   :  { %3877 = vmatpush2.bf16.msra.mxu0 %v5649_v39  ;;  %3918 = vmatpush2.bf16.msra.mxu1 %v5777_v40  ;;  %v6716_v10 = vld [vmem:[#allocation10 + $0xde0] sm:$0xff]  ;;  %v297_v39 = vrot.slane %v257_v30, %v6726_v16  ;;  %v233_v40 = vrot.slane %v193_v31, %v6724_v15 }
  0xb4   :  { %3878 = vmatprep.subr.bf16.mxu0 %v5642_v41  ;;  %3919 = vmatprep.subr.bf16.mxu1 %v5770_v42  ;;  %v5993_v0 = vcombine.low %v6712_v8, %v6716_v10  ;;  %v5994_v12 = vcombine.high %v6712_v8, %v6716_v10  ;;  %v305_v41 = vrot.slane %v265_v32, %v6726_v16  ;;  %v1044_v26 = vld [vmem:[#allocation10 + $0x980] sm:$0xff] }
  0xb5   :  { %v1048_v27 = vld [vmem:[#allocation10 + $0x9a0] sm:$0xff]  ;;  %v683_v8 = vrot.slane %v6755_v37, %v6728_v18 }
  0xb6   :  { %v1172_v31 = vld [vmem:[#allocation10 + $0xd80] sm:$0xff] }
  0xb7   :  { %3879 = vmatpush2.bf16.msra.mxu0 %v5641_v43  ;;  %3920 = vmatpush2.bf16.msra.mxu1 %v5769_v44  ;;  %v663_v43 = vrot.slane %v6755_v37, %v6726_v16  ;;  %v1176_v32 = vld [vmem:[#allocation10 + $0xda0] sm:$0xff] }
  0xb8   :  { %3880 = vmatprep.subr.bf16.mxu0 %v5634_v48  ;;  %3921 = vmatprep.subr.bf16.mxu1 %v5762_v50  ;;  %v667_v50 = vrot.slane %v6755_v37, %v6724_v15 }
  0xbb   :  { %3881 = vmatpush2.bf16.msra.mxu0 %v5633_v51  ;;  %3922 = vmatpush2.bf16.msra.mxu1 %v5761_v52 }
  0xbc   :  { %3882 = vmatprep.subr.bf16.mxu0 %v5626_v56  ;;  %3923 = vmatprep.subr.bf16.mxu1 %v5754_v59 }
  0xbf   :  { %3883 = vmatpush2.bf16.msra.mxu0 %v5625_v58  ;;  %3924 = vmatpush2.bf16.msra.mxu1 %v5753_v60  ;;  %v168_v58 = vld [vmem:[#allocation7 + $0x8] sm:$0xff] }
  0xc0   :  { %3884 = vmatprep.subr.bf16.mxu0 %v5618_v1  ;;  %3925 = vmatprep.subr.bf16.mxu1 %v5746_v3  ;;  %v269_v13 = vrot.slane %v168_v58, %v6726_v16  ;;  %v205_v14 = vrot.slane %v168_v58, %v6728_v18  ;;  %v277_v25 = vrot.slane %v168_v58, %v6730_v19 }
  0xc3   :  { %3885 = vmatpush2.bf16.msra.mxu0 %v5617_v4  ;;  %3926 = vmatpush2.bf16.msra.mxu1 %v5745_v5  ;;  %v197_v5 = vrot.slane %v168_v58, %v6724_v15 }
  0xc4   :  { %3936 = vmatprep.subr.bf16.mxu0 %v5866_v9  ;;  %3977 = vmatprep.subr.bf16.mxu1 %v5994_v12 }
  0xe5   :  { %v6744_v28 = vpop.permute.xlu0 %173 }
  0xe6   :  { %vm175_vm2 = vcmp.eq.s32.totalorder %v6744_v28, 1 }
  0xe7   :  { %v322_v42 = vsel %vm175_vm2, %v221_v33, %v293_v34  ;;  %v324_v44 = vsel %vm175_vm2, %v229_v35, %v301_v36  ;;  %v323_v47 = vsel %vm175_vm2, %v225_v38, %v297_v39  ;;  %v325_v51 = vsel %vm175_vm2, %v233_v40, %v305_v41 }
  0xe8   :  { %v201_v33 = vrot.slane %v168_v58, %v6734_v21  ;;  %v273_v34 = vrot.slane %v168_v58, %v6732_v20  ;;  %v209_v38 = vrot.slane %v168_v58, %v6736_v22  ;;  %v281_v39 = vrot.slane %v168_v58, %v6738_v23 }
  0xe9   :  { %v679_v58 = vrot.slane %v6755_v37, %v6730_v19 }
 0x136   :  { %v528_v45 = vpop.f32.mrf.mxu0  ;;  %v569_v49 = vpop.f32.mrf.mxu1 }
 0x137   :  { %v529_v48 = vadd.f32 %v528_v45, %v322_v42  ;;  %v570_v52 = vadd.f32 %v569_v49, %v324_v44  ;;  %v237_v42 = vrot.slane %v197_v5, %v6724_v15  ;;  %v309_v45 = vrot.slane %v269_v13, %v6726_v16  ;;  %v1040_v49 = vld [vmem:[#allocation10 + $0x960] sm:$0xff] }
 0x138   :  { %v530_v53 = vpop.f32.mrf.mxu0  ;;  %v571_v57 = vpop.f32.mrf.mxu1  ;;  %v1160_v5 = vld [vmem:[#allocation10 + $0xd20] sm:$0xff] }
 0x139   :  { %v700_v55 = vadd.f32 %v663_v43, %v529_v48  ;;  %v531_v56 = vadd.f32 %v530_v53, %v323_v47  ;;  %v702_v59 = vadd.f32 %v671_v46, %v570_v52  ;;  %v572_v60 = vadd.f32 %v571_v57, %v325_v51  ;;  %v1036_v48 = vld [vmem:[#allocation10 + $0x940] sm:$0xff] }
 0x13a   :  { %v532_v61 = vpop.f32.mrf.mxu0  ;;  %v573_v1 = vpop.f32.mrf.mxu1  ;;  %v5858_v43 = vcombine.high %v1044_v26, %v1048_v27  ;;  %v245_v46 = vrot.slane %v205_v14, %v6724_v15  ;;  %v5986_v47 = vcombine.high %v1172_v31, %v1176_v32  ;;  %v241_v51 = vrot.slane %v201_v33, %v6724_v15  ;;  %v1164_v53 = vld [vmem:[#allocation10 + $0xd40] sm:$0xff] }
 0x13b   :  { %vm708_vm3 = vcmp.ge.f32.partialorder %v700_v55, 0.0  ;;  %v716_v62 = vmul.f32 0.02, %v700_v55  ;;  %v701_v63 = vadd.f32 %v667_v50, %v531_v56  ;;  %vm710_vm4 = vcmp.ge.f32.partialorder %v702_v59, 0.0  ;;  %v1028_v61 = vld [vmem:[#allocation10 + $0x900] sm:$0xff] }
 0x13c   :  { %v718_v2 = vmul.f32 0.02, %v702_v59  ;;  %v703_v3 = vadd.f32 %v675_v54, %v572_v60  ;;  %v533_v4 = vpop.f32.mrf.mxu0  ;;  %v574_v12 = vpop.f32.mrf.mxu1  ;;  %v317_v50 = vrot.slane %v277_v25, %v6726_v16  ;;  %v313_v52 = vrot.slane %v273_v34, %v6726_v16  ;;  %v1168_v54 = vld [vmem:[#allocation10 + $0xd60] sm:$0xff] }
 0x13d   :  { %vm709_vm5 = vcmp.ge.f32.partialorder %v701_v63, 0.0  ;;  %v717_v9 = vmul.f32 0.02, %v701_v63  ;;  %v724_v17 = vsel %vm708_vm3, %v700_v55, %v716_v62  ;;  %v5857_v55 = vcombine.low %v1044_v26, %v1048_v27  ;;  %v1032_v62 = vld [vmem:[#allocation10 + $0x920] sm:$0xff] }
 0x13e   :  { %vm711_vm6 = vcmp.ge.f32.partialorder %v703_v3, 0.0  ;;  %v719_v24 = vmul.f32 0.02, %v703_v3  ;;  %v726_v29 = vsel %vm710_vm4, %v702_v59, %v718_v2  ;;  %v6788_v40 = vpack.c.bf16 %v724_v17, %v724_v17  ;;  %v1156_v4 = vld [vmem:[#allocation10 + $0xd00] sm:$0xff] }
 0x13f   :  { %v725_v30 = vsel %vm709_vm5, %v701_v63, %v717_v9  ;;  %v6793_v44 = vpack.c.bf16 %v726_v29, %v726_v29  ;;  %v249_v56 = vrot.slane %v209_v38, %v6724_v15  ;;  %v321_v57 = vrot.slane %v281_v39, %v6726_v16  ;;  %v1152_v38 = vld [vmem:[#allocation10 + $0xce0] sm:$0xff] }
 0x140   :  { %v6784_v35 = vpack.c.bf16 %v725_v30, %v725_v30  ;;  %v727_v36 = vsel %vm711_vm6, %v703_v3, %v719_v24  ;;  %v5985_v59 = vcombine.low %v1172_v31, %v1176_v32  ;;  %v5850_v60 = vcombine.high %v1036_v48, %v1040_v49  ;;  %v1020_v31 = vld [vmem:[#allocation10 + $0x8c0] sm:$0xff] }
 0x141   :  { %v6790_v41 = vpack.c.bf16 %v727_v36, %v727_v36  ;;  %v326_v6 = vsel %vm175_vm2, %v237_v42, %v309_v45  ;;  %v5978_v10 = vcombine.high %v1164_v53, %v1168_v54  ;;  %v328_v63 = vsel %vm175_vm2, %v245_v46, %v317_v50  ;;  %v1024_v32 = vld [vmem:[#allocation10 + $0x8e0] sm:$0xff] }
 0x142   :  { %3886 = vmatprep.mubr.bf16.mxu0 %v6784_v35  ;;  %v691_v2 = vrot.slane %v6755_v37, %v6736_v22  ;;  %v5849_v3 = vcombine.low %v1036_v48, %v1040_v49  ;;  %v327_v12 = vsel %vm175_vm2, %v241_v51, %v313_v52  ;;  %v5977_v14 = vcombine.low %v1164_v53, %v1168_v54  ;;  %v1148_v36 = vld [vmem:[#allocation10 + $0xcc0] sm:$0xff] }
 0x143   :  { %3927 = vmatprep.mubr.bf16.mxu1 %v6790_v41  ;;  %3887 = vmatmul.mubr.bf16.vlgmr.msra.gmra.mxu0 %v6788_v40  ;;  %v5842_v17 = vcombine.high %v1028_v61, %v1032_v62  ;;  %v329_v26 = vsel %vm175_vm2, %v249_v56, %v321_v57  ;;  %v5970_v30 = vcombine.high %v1156_v4, %v1160_v5  ;;  %v1012_v51 = vld [vmem:[#allocation10 + $0x880] sm:$0xff] }
 0x144   :  { %3928 = vmatmul.mubr.bf16.vlgmr.msra.gmra.mxu1 %v6793_v44  ;;  %3937 = vmatpush1.bf16.msra.mxu0 %v5865_v11  ;;  %v687_v11 = vrot.slane %v6755_v37, %v6738_v23  ;;  %v5969_v46 = vcombine.low %v1156_v4, %v1160_v5  ;;  %v5962_v50 = vcombine.high %v1148_v36, %v1152_v38  ;;  %v1016_v52 = vld [vmem:[#allocation10 + $0x8a0] sm:$0xff] }
 0x145   :  { %3978 = vmatpush1.bf16.msra.mxu1 %v5993_v0  ;;  %3938 = vmatprep.subr.bf16.mxu0 %v5858_v43  ;;  %v5841_v43 = vcombine.low %v1028_v61, %v1032_v62  ;;  %v1140_v54 = vld [vmem:[#allocation10 + $0xc80] sm:$0xff]  ;;  %v5826_v61 = vcombine.high %v1012_v51, %v1016_v52 }
 0x146   :  { %v610_v7 = vpop.f32.mrf.mxu0  ;;  %3979 = vmatprep.subr.bf16.mxu1 %v5986_v47  ;;  %v651_v1 = vpop.f32.mrf.mxu1  ;;  %v5834_v47 = vcombine.high %v1020_v31, %v1024_v32  ;;  %v1124_v4 = vld [vmem:[#allocation10 + $0xc00] sm:$0xff] }
 0x147   :  { %v611_v0 = vadd.f32 %v610_v7, %v326_v6  ;;  %v652_v9 = vadd.f32 %v651_v1, %v328_v63  ;;  %v1004_v6 = vld [vmem:[#allocation10 + $0x840] sm:$0xff] }
 0x148   :  { %3939 = vmatpush1.bf16.msra.mxu0 %v5857_v55  ;;  %v612_v13 = vpop.f32.mrf.mxu0  ;;  %v653_v27 = vpop.f32.mrf.mxu1  ;;  %v1144_v55 = vld [vmem:[#allocation10 + $0xca0] sm:$0xff] }
 0x149   :  { %v6826_v24 = vadd.f32 %v679_v58, %v611_v0  ;;  %3980 = vmatpush1.bf16.msra.mxu1 %v5985_v59  ;;  %v613_v25 = vadd.f32 %v612_v13, %v327_v12  ;;  %3940 = vmatprep.subr.bf16.mxu0 %v5850_v60  ;;  %v6830_v37 = vadd.f32 %v687_v11, %v652_v9  ;;  %v1008_v7 = vld [vmem:[#allocation10 + $0x860] sm:$0xff] }
 0x14a   :  { %v654_v29 = vadd.f32 %v653_v27, %v329_v26  ;;  %3981 = vmatprep.subr.bf16.mxu1 %v5978_v10  ;;  %v614_v33 = vpop.f32.mrf.mxu0  ;;  %v655_v39 = vpop.f32.mrf.mxu1  ;;  %v5833_v58 = vcombine.low %v1020_v31, %v1024_v32  ;;  %v5961_v60 = vcombine.low %v1148_v36, %v1152_v38  ;;  %v5954_v62 = vcombine.high %v1140_v54, %v1144_v55  ;;  %v1132_v11 = vld [vmem:[#allocation10 + $0xc40] sm:$0xff] }
 0x14b   :  { %v705_v34 = vadd.f32 %v683_v8, %v613_v25  ;;  %v1136_v8 = vld [vmem:[#allocation10 + $0xc60] sm:$0xff]  ;;  %v5825_v10 = vcombine.low %v1012_v51, %v1016_v52  ;;  %v5953_v0 = vcombine.low %v1140_v54, %v1144_v55  ;;  %v5818_v63 = vcombine.high %v1004_v6, %v1008_v7 }
 0x14c   :  { %v707_v42 = vadd.f32 %v691_v2, %v654_v29  ;;  %3941 = vmatpush1.bf16.msra.mxu0 %v5849_v3  ;;  %v615_v45 = vpop.f32.mrf.mxu0  ;;  %v656_v48 = vpop.f32.mrf.mxu1  ;;  %v5946_v1 = vcombine.high %v1132_v11, %v1136_v8  ;;  %v996_v2 = vld [vmem:[#allocation10 + $0x800] sm:$0xff]  ;;  %v5817_v9 = vcombine.low %v1004_v6, %v1008_v7  ;;  %v5945_v12 = vcombine.low %v1132_v11, %v1136_v8 }
 0x14d   :  { %vm713_vm7 = vcmp.ge.f32.partialorder %v705_v34, 0.0  ;;  %v721_v28 = vmul.f32 0.02, %v705_v34  ;;  %3982 = vmatpush1.bf16.msra.mxu1 %v5977_v14  ;;  %3942 = vmatprep.subr.bf16.mxu0 %v5842_v17  ;;  %v1000_v3 = vld [vmem:[#allocation10 + $0x820] sm:$0xff]  ;;  %vm712_vm9 = vcmp.ge.f32.partialorder %v6826_v24, 0.0  ;;  %vm714_vm10 = vcmp.ge.f32.partialorder %v6830_v37, 0.0 }
 0x14e   :  { %vm715_vm8 = vcmp.ge.f32.partialorder %v707_v42, 0.0  ;;  %v723_v49 = vmul.f32 0.02, %v707_v42  ;;  %3983 = vmatprep.subr.bf16.mxu1 %v5970_v30  ;;  %v1128_v5 = vld [vmem:[#allocation10 + $0xc20] sm:$0xff]  ;;  %v5810_v13 = vcombine.high %v996_v2, %v1000_v3  ;;  %v5809_v29 = vcombine.low %v996_v2, %v1000_v3 }
 0x14f   :  { %v729_v53 = vsel %vm713_vm7, %v705_v34, %v721_v28  ;;  %v5938_v14 = vcombine.high %v1124_v4, %v1128_v5  ;;  %v1116_v17 = vld [vmem:[#allocation10 + $0xbc0] sm:$0xff]  ;;  %v5937_v30 = vcombine.low %v1124_v4, %v1128_v5 }
 0x150   :  { %v6832_v56 = vpack.c.bf16 %v729_v53, %v729_v53  ;;  %v731_v57 = vsel %vm715_vm8, %v707_v42, %v723_v49  ;;  %3943 = vmatpush1.bf16.msra.mxu0 %v5841_v43  ;;  %v1120_v25 = vld [vmem:[#allocation10 + $0xbe0] sm:$0xff] }
 0x151   :  { %v6834_v59 = vpack.c.bf16 %v731_v57, %v731_v57  ;;  %3984 = vmatpush1.bf16.msra.mxu1 %v5969_v46  ;;  %3944 = vmatprep.subr.bf16.mxu0 %v5834_v47  ;;  %v1244_v26 = vld [vmem:[#allocation10 + $0xfc0] sm:$0xff]  ;;  %v5930_v31 = vcombine.high %v1116_v17, %v1120_v25  ;;  %v5929_v39 = vcombine.low %v1116_v17, %v1120_v25 }
 0x152   :  { %3968 = vmatprep.mubr.bf16.mxu0 %v6832_v56  ;;  %3985 = vmatprep.subr.bf16.mxu1 %v5962_v50  ;;  %v1248_v27 = vld [vmem:[#allocation10 + $0xfe0] sm:$0xff] }
 0x153   :  { %4009 = vmatprep.mubr.bf16.mxu1 %v6834_v59  ;;  %v6058_v32 = vcombine.high %v1244_v26, %v1248_v27  ;;  %v1108_v33 = vld [vmem:[#allocation10 + $0xb80] sm:$0xff]  ;;  %v6057_v42 = vcombine.low %v1244_v26, %v1248_v27 }
 0x154   :  { %3945 = vmatpush1.bf16.msra.mxu0 %v5833_v58  ;;  %v1112_v34 = vld [vmem:[#allocation10 + $0xba0] sm:$0xff] }
 0x155   :  { %3986 = vmatpush1.bf16.msra.mxu1 %v5961_v60  ;;  %3946 = vmatprep.subr.bf16.mxu0 %v5826_v61  ;;  %v1236_v36 = vld [vmem:[#allocation10 + $0xf80] sm:$0xff]  ;;  %v5922_v43 = vcombine.high %v1108_v33, %v1112_v34  ;;  %v5921_v49 = vcombine.low %v1108_v33, %v1112_v34 }
 0x156   :  { %3987 = vmatprep.subr.bf16.mxu1 %v5954_v62  ;;  %v1240_v38 = vld [vmem:[#allocation10 + $0xfa0] sm:$0xff] }
 0x157   :  { %v6050_v45 = vcombine.high %v1236_v36, %v1240_v38  ;;  %v1100_v28 = vld [vmem:[#allocation10 + $0xb40] sm:$0xff]  ;;  %v6049_v50 = vcombine.low %v1236_v36, %v1240_v38 }
 0x158   :  { %3947 = vmatpush1.bf16.msra.mxu0 %v5825_v10  ;;  %v1104_v46 = vld [vmem:[#allocation10 + $0xb60] sm:$0xff] }
 0x159   :  { %3988 = vmatpush1.bf16.msra.mxu1 %v5953_v0  ;;  %3948 = vmatprep.subr.bf16.mxu0 %v5818_v63  ;;  %v1228_v47 = vld [vmem:[#allocation10 + $0xf40] sm:$0xff]  ;;  %v5914_v51 = vcombine.high %v1100_v28, %v1104_v46  ;;  %v5913_v58 = vcombine.low %v1100_v28, %v1104_v46  ;;  %v797_v46 = vld [vmem:[#allocation10 + $0x1c8] sm:$0xff] }
 0x15a   :  { %3989 = vmatprep.subr.bf16.mxu1 %v5946_v1  ;;  %v1232_v48 = vld [vmem:[#allocation10 + $0xf60] sm:$0xff] }
 0x15b   :  { %v6042_v52 = vcombine.high %v1228_v47, %v1232_v48  ;;  %v1092_v53 = vld [vmem:[#allocation10 + $0xb00] sm:$0xff]  ;;  %v6041_v60 = vcombine.low %v1228_v47, %v1232_v48  ;;  %v801_v47 = vld [vmem:[#allocation10 + $0x1e8] sm:$0xff]  ;;  %v722_v48 = vmul.f32 0.02, %v6830_v37 }
 0x15c   :  { %3949 = vmatpush1.bf16.msra.mxu0 %v5817_v9  ;;  %v1096_v54 = vld [vmem:[#allocation10 + $0xb20] sm:$0xff] }
 0x15d   :  { %3990 = vmatpush1.bf16.msra.mxu1 %v5945_v12  ;;  %3950 = vmatprep.subr.bf16.mxu0 %v5810_v13  ;;  %v1220_v55 = vld [vmem:[#allocation10 + $0xf00] sm:$0xff]  ;;  %v5906_v61 = vcombine.high %v1092_v53, %v1096_v54  ;;  %v5905_v10 = vcombine.low %v1092_v53, %v1096_v54  ;;  %v5612_v53 = vcombine.high %v797_v46, %v801_v47 }
 0x15e   :  { %3991 = vmatprep.subr.bf16.mxu1 %v5938_v14  ;;  %v1224_v57 = vld [vmem:[#allocation10 + $0xf20] sm:$0xff] }
 0x15f   :  { %v6034_v62 = vcombine.high %v1220_v55, %v1224_v57  ;;  %v1084_v6 = vld [vmem:[#allocation10 + $0xac0] sm:$0xff]  ;;  %v6033_v0 = vcombine.low %v1220_v55, %v1224_v57  ;;  %v730_v57 = vsel %vm714_vm10, %v6830_v37, %v722_v48 }
 0x160   :  { %3951 = vmatpush1.bf16.msra.mxu0 %v5809_v29  ;;  %v1088_v7 = vld [vmem:[#allocation10 + $0xae0] sm:$0xff] }
 0x161   :  { %3992 = vmatpush1.bf16.msra.mxu1 %v5937_v30  ;;  %3952 = vmatprep.subr.bf16.mxu0 %v5930_v31  ;;  %v1212_v11 = vld [vmem:[#allocation10 + $0xec0] sm:$0xff]  ;;  %v5898_v63 = vcombine.high %v1084_v6, %v1088_v7  ;;  %v5897_v9 = vcombine.low %v1084_v6, %v1088_v7  ;;  %v921_v6 = vld [vmem:[#allocation10 + $0x5a8] sm:$0xff] }
 0x162   :  { %3993 = vmatprep.subr.bf16.mxu1 %v6058_v32  ;;  %v1216_v8 = vld [vmem:[#allocation10 + $0xee0] sm:$0xff] }
 0x163   :  { %v6026_v1 = vcombine.high %v1212_v11, %v1216_v8  ;;  %v1076_v2 = vld [vmem:[#allocation10 + $0xa80] sm:$0xff]  ;;  %v6025_v12 = vcombine.low %v1212_v11, %v1216_v8  ;;  %v6846_v8 = vpack.c.bf16 %v730_v57, %v730_v57 }
 0x164   :  { %3953 = vmatpush2.bf16.msra.mxu0 %v5929_v39  ;;  %v1080_v3 = vld [vmem:[#allocation10 + $0xaa0] sm:$0xff] }
 0x165   :  { %3994 = vmatpush2.bf16.msra.mxu1 %v6057_v42  ;;  %3954 = vmatprep.subr.bf16.mxu0 %v5922_v43  ;;  %v1204_v4 = vld [vmem:[#allocation10 + $0xe80] sm:$0xff]  ;;  %v5890_v13 = vcombine.high %v1076_v2, %v1080_v3  ;;  %v5889_v29 = vcombine.low %v1076_v2, %v1080_v3 }
 0x166   :  { %3995 = vmatprep.subr.bf16.mxu1 %v6050_v45  ;;  %v1208_v5 = vld [vmem:[#allocation10 + $0xea0] sm:$0xff]  ;;  %v720_v45 = vmul.f32 0.02, %v6826_v24 }
 0x167   :  { %v6018_v14 = vcombine.high %v1204_v4, %v1208_v5  ;;  %v1068_v17 = vld [vmem:[#allocation10 + $0xa40] sm:$0xff]  ;;  %v6017_v30 = vcombine.low %v1204_v4, %v1208_v5 }
 0x168   :  { %3955 = vmatpush2.bf16.msra.mxu0 %v5921_v49  ;;  %v1072_v25 = vld [vmem:[#allocation10 + $0xa60] sm:$0xff]  ;;  %v925_v49 = vld [vmem:[#allocation10 + $0x5c8] sm:$0xff]  ;;  %v728_v54 = vsel %vm712_vm9, %v6826_v24, %v720_v45 }
 0x169   :  { %3996 = vmatpush2.bf16.msra.mxu1 %v6049_v50  ;;  %3956 = vmatprep.subr.bf16.mxu0 %v5914_v51  ;;  %v1196_v26 = vld [vmem:[#allocation10 + $0xe40] sm:$0xff]  ;;  %v5882_v31 = vcombine.high %v1068_v17, %v1072_v25  ;;  %v5881_v39 = vcombine.low %v1068_v17, %v1072_v25  ;;  %v929_v50 = vld [vmem:[#allocation10 + $0x5e8] sm:$0xff]  ;;  %v6844_v7 = vpack.c.bf16 %v728_v54, %v728_v54 }
 0x16a   :  { %3997 = vmatprep.subr.bf16.mxu1 %v6042_v52  ;;  %v1200_v27 = vld [vmem:[#allocation10 + $0xe60] sm:$0xff]  ;;  %v5740_v55 = vcombine.high %v925_v49, %v929_v50  ;;  %v5739_v11 = vcombine.low %v925_v49, %v929_v50  ;;  %v781_v24 = vld [vmem:[#allocation10 + $0x148] sm:$0xff] }
 0x16b   :  { %v6010_v32 = vcombine.high %v1196_v26, %v1200_v27  ;;  %v1060_v33 = vld [vmem:[#allocation10 + $0xa00] sm:$0xff]  ;;  %v6009_v42 = vcombine.low %v1196_v26, %v1200_v27  ;;  %v889_v45 = vld [vmem:[#allocation10 + $0x4a8] sm:$0xff] }
 0x16c   :  { %3957 = vmatpush2.bf16.msra.mxu0 %v5913_v58  ;;  %v1064_v34 = vld [vmem:[#allocation10 + $0xa20] sm:$0xff]  ;;  %v789_v58 = vld [vmem:[#allocation10 + $0x188] sm:$0xff] }
 0x16d   :  { %3998 = vmatpush2.bf16.msra.mxu1 %v6041_v60  ;;  %3958 = vmatprep.subr.bf16.mxu0 %v5906_v61  ;;  %v1188_v36 = vld [vmem:[#allocation10 + $0xe00] sm:$0xff]  ;;  %v5874_v43 = vcombine.high %v1060_v33, %v1064_v34  ;;  %v5873_v51 = vcombine.low %v1060_v33, %v1064_v34  ;;  %v793_v60 = vld [vmem:[#allocation10 + $0x1a8] sm:$0xff]  ;;  %v5611_v61 = vcombine.low %v797_v46, %v801_v47 }
 0x16e   :  { %3999 = vmatprep.subr.bf16.mxu1 %v6034_v62  ;;  %v1192_v38 = vld [vmem:[#allocation10 + $0xe20] sm:$0xff]  ;;  %v917_v62 = vld [vmem:[#allocation10 + $0x588] sm:$0xff]  ;;  %v5603_v2 = vcombine.low %v789_v58, %v793_v60 }
 0x16f   :  { %v6002_v28 = vcombine.high %v1188_v36, %v1192_v38  ;;  %v6001_v52 = vcombine.low %v1188_v36, %v1192_v38  ;;  %v5732_v37 = vcombine.high %v917_v62, %v921_v6  ;;  %v5731_v3 = vcombine.low %v917_v62, %v921_v6  ;;  %v749_v49 = vld [vmem:[#allocation10 + $0x48] sm:$0xff] }
 0x170   :  { %3959 = vmatpush2.bf16.msra.mxu0 %v5905_v10  ;;  %v5604_v10 = vcombine.high %v789_v58, %v793_v60  ;;  %v753_v50 = vld [vmem:[#allocation10 + $0x68] sm:$0xff] }
 0x171   :  { %4000 = vmatpush2.bf16.msra.mxu1 %v6033_v0  ;;  %3960 = vmatprep.subr.bf16.mxu0 %v5898_v63  ;;  %v785_v0 = vld [vmem:[#allocation10 + $0x168] sm:$0xff]  ;;  %v5563_v6 = vcombine.low %v749_v49, %v753_v50 }
 0x172   :  { %4001 = vmatprep.subr.bf16.mxu1 %v6026_v1  ;;  %v909_v63 = vld [vmem:[#allocation10 + $0x548] sm:$0xff]  ;;  %v5596_v4 = vcombine.high %v781_v24, %v785_v0  ;;  %v5595_v17 = vcombine.low %v781_v24, %v785_v0 }
 0x173   :  { %v913_v1 = vld [vmem:[#allocation10 + $0x568] sm:$0xff] }
 0x174   :  { %3961 = vmatpush2.bf16.msra.mxu0 %v5897_v9  ;;  %v5724_v5 = vcombine.high %v909_v63, %v913_v1  ;;  %v773_v9 = vld [vmem:[#allocation10 + $0x108] sm:$0xff]  ;;  %v5723_v25 = vcombine.low %v909_v63, %v913_v1 }
 0x175   :  { %4002 = vmatpush2.bf16.msra.mxu1 %v6025_v12  ;;  %3962 = vmatprep.subr.bf16.mxu0 %v5890_v13  ;;  %v777_v12 = vld [vmem:[#allocation10 + $0x128] sm:$0xff] }
 0x176   :  { %4003 = vmatprep.subr.bf16.mxu1 %v6018_v14  ;;  %v901_v13 = vld [vmem:[#allocation10 + $0x508] sm:$0xff]  ;;  %v5588_v26 = vcombine.high %v773_v9, %v777_v12  ;;  %v5587_v33 = vcombine.low %v773_v9, %v777_v12 }
 0x177   :  { %v905_v14 = vld [vmem:[#allocation10 + $0x528] sm:$0xff] }
 0x178   :  { %3963 = vmatpush2.bf16.msra.mxu0 %v5889_v29  ;;  %v5716_v27 = vcombine.high %v901_v13, %v905_v14  ;;  %v765_v29 = vld [vmem:[#allocation10 + $0xc8] sm:$0xff]  ;;  %v5715_v34 = vcombine.low %v901_v13, %v905_v14 }
 0x179   :  { %4004 = vmatpush2.bf16.msra.mxu1 %v6017_v30  ;;  %3964 = vmatprep.subr.bf16.mxu0 %v5882_v31  ;;  %v769_v30 = vld [vmem:[#allocation10 + $0xe8] sm:$0xff] }
 0x17a   :  { %4005 = vmatprep.subr.bf16.mxu1 %v6010_v32  ;;  %v893_v31 = vld [vmem:[#allocation10 + $0x4c8] sm:$0xff]  ;;  %v5580_v36 = vcombine.high %v765_v29, %v769_v30 }
 0x17b   :  { %v897_v32 = vld [vmem:[#allocation10 + $0x4e8] sm:$0xff] }
 0x17c   :  { %3965 = vmatpush2.bf16.msra.mxu0 %v5881_v39  ;;  %v5708_v38 = vcombine.high %v893_v31, %v897_v32  ;;  %v757_v39 = vld [vmem:[#allocation10 + $0x88] sm:$0xff]  ;;  %v5707_v46 = vcombine.low %v893_v31, %v897_v32 }
 0x17d   :  { %4006 = vmatpush2.bf16.msra.mxu1 %v6009_v42  ;;  %3966 = vmatprep.subr.bf16.mxu0 %v5874_v43  ;;  %v761_v42 = vld [vmem:[#allocation10 + $0xa8] sm:$0xff] }
 0x17e   :  { %4007 = vmatprep.subr.bf16.mxu1 %v6002_v28  ;;  %v885_v43 = vld [vmem:[#allocation10 + $0x488] sm:$0xff]  ;;  %v5579_v28 = vcombine.low %v765_v29, %v769_v30  ;;  %v5572_v47 = vcombine.high %v757_v39, %v761_v42 }
 0x17f   :  { %v5700_v48 = vcombine.high %v885_v43, %v889_v45  ;;  %v5699_v54 = vcombine.low %v885_v43, %v889_v45  ;;  %v741_v58 = vld [vmem:[#allocation10 + $0x8] sm:$0xff] }
 0x180   :  { %3967 = vmatpush2.bf16.msra.mxu0 %v5873_v51  ;;  %v877_v51 = vld [vmem:[#allocation10 + $0x448] sm:$0xff] }
 0x181   :  { %4008 = vmatpush2.bf16.msra.mxu1 %v6001_v52  ;;  %4018 = vmatprep.subr.bf16.mxu0 %v5612_v53  ;;  %v881_v52 = vld [vmem:[#allocation10 + $0x468] sm:$0xff]  ;;  %v5571_v53 = vcombine.low %v757_v39, %v761_v42 }
 0x182   :  { %4059 = vmatprep.subr.bf16.mxu1 %v5740_v55  ;;  %v5564_v55 = vcombine.high %v749_v49, %v753_v50  ;;  %v5692_v57 = vcombine.high %v877_v51, %v881_v52  ;;  %v745_v60 = vld [vmem:[#allocation10 + $0x28] sm:$0xff] }
 0x183   :  { %3969 = vmatmul.mubr.bf16.vlgmr.msra.gmra.mxu0 %v6844_v7  ;;  %v873_v62 = vld [vmem:[#allocation10 + $0x428] sm:$0xff] }
 0x184   :  { %4010 = vmatmul.mubr.bf16.vlgmr.msra.gmra.mxu1 %v6846_v8  ;;  %4019 = vmatpush1.bf16.msra.mxu0 %v5611_v61  ;;  %v869_v61 = vld [vmem:[#allocation10 + $0x408] sm:$0xff] }
 0x185   :  { %4050 = vmatprep.mubr.bf16.mxu0 %v6784_v35  ;;  %4060 = vmatpush1.bf16.msra.mxu1 %v5739_v11  ;;  %v5691_v11 = vcombine.low %v877_v51, %v881_v52  ;;  %v5684_v24 = vcombine.high %v869_v61, %v873_v62  ;;  %v861_v0 = vld [vmem:[#allocation10 + $0x3c8] sm:$0xff] }
 0x186   :  { %4091 = vmatprep.mubr.bf16.mxu1 %v6790_v41  ;;  %4020 = vmatprep.subr.bf16.mxu0 %v5604_v10  ;;  %v5556_v10 = vcombine.high %v741_v58, %v745_v60  ;;  %v989_v63 = vld [vmem:[#allocation10 + $0x7c8] sm:$0xff] }
 0x187   :  { %4061 = vmatprep.subr.bf16.mxu1 %v5732_v37  ;;  %v865_v37 = vld [vmem:[#allocation10 + $0x3e8] sm:$0xff] }
 0x188   :  { %4021 = vmatpush1.bf16.msra.mxu0 %v5603_v2  ;;  %v993_v1 = vld [vmem:[#allocation10 + $0x7e8] sm:$0xff]  ;;  %v5555_v2 = vcombine.low %v741_v58, %v745_v60 }
 0x189   :  { %4062 = vmatpush1.bf16.msra.mxu1 %v5731_v3  ;;  %4022 = vmatprep.subr.bf16.mxu0 %v5596_v4  ;;  %v5683_v3 = vcombine.low %v869_v61, %v873_v62  ;;  %v5676_v4 = vcombine.high %v861_v0, %v865_v37  ;;  %v853_v9 = vld [vmem:[#allocation10 + $0x388] sm:$0xff] }
 0x18a   :  { %4063 = vmatprep.subr.bf16.mxu1 %v5724_v5  ;;  %v5804_v5 = vcombine.high %v989_v63, %v993_v1  ;;  %v857_v12 = vld [vmem:[#allocation10 + $0x3a8] sm:$0xff] }
 0x18b   :  { %v981_v13 = vld [vmem:[#allocation10 + $0x788] sm:$0xff] }
 0x18c   :  { %4023 = vmatpush1.bf16.msra.mxu0 %v5595_v17  ;;  %v985_v14 = vld [vmem:[#allocation10 + $0x7a8] sm:$0xff]  ;;  %v5675_v17 = vcombine.low %v861_v0, %v865_v37 }
 0x18d   :  { %4064 = vmatpush1.bf16.msra.mxu1 %v5723_v25  ;;  %4024 = vmatprep.subr.bf16.mxu0 %v5588_v26  ;;  %v5803_v25 = vcombine.low %v989_v63, %v993_v1  ;;  %v5668_v26 = vcombine.high %v853_v9, %v857_v12  ;;  %v845_v29 = vld [vmem:[#allocation10 + $0x348] sm:$0xff] }
 0x18e   :  { %4065 = vmatprep.subr.bf16.mxu1 %v5716_v27  ;;  %v5796_v27 = vcombine.high %v981_v13, %v985_v14  ;;  %v849_v30 = vld [vmem:[#allocation10 + $0x368] sm:$0xff] }
 0x18f   :  { %v973_v31 = vld [vmem:[#allocation10 + $0x748] sm:$0xff] }
 0x190   :  { %4025 = vmatpush1.bf16.msra.mxu0 %v5587_v33  ;;  %v977_v32 = vld [vmem:[#allocation10 + $0x768] sm:$0xff]  ;;  %v5667_v33 = vcombine.low %v853_v9, %v857_v12 }
 0x191   :  { %4066 = vmatpush1.bf16.msra.mxu1 %v5715_v34  ;;  %4026 = vmatprep.subr.bf16.mxu0 %v5580_v36  ;;  %v5795_v34 = vcombine.low %v981_v13, %v985_v14  ;;  %v5660_v36 = vcombine.high %v845_v29, %v849_v30  ;;  %v837_v39 = vld [vmem:[#allocation10 + $0x308] sm:$0xff] }
 0x192   :  { %4067 = vmatprep.subr.bf16.mxu1 %v5708_v38  ;;  %v5788_v38 = vcombine.high %v973_v31, %v977_v32  ;;  %v841_v42 = vld [vmem:[#allocation10 + $0x328] sm:$0xff] }
 0x193   :  { %v965_v43 = vld [vmem:[#allocation10 + $0x708] sm:$0xff] }
 0x194   :  { %4027 = vmatpush1.bf16.msra.mxu0 %v5579_v28  ;;  %v969_v45 = vld [vmem:[#allocation10 + $0x728] sm:$0xff]  ;;  %v5659_v28 = vcombine.low %v845_v29, %v849_v30 }
 0x195   :  { %4068 = vmatpush1.bf16.msra.mxu1 %v5707_v46  ;;  %4028 = vmatprep.subr.bf16.mxu0 %v5572_v47  ;;  %v5787_v46 = vcombine.low %v973_v31, %v977_v32  ;;  %v5652_v47 = vcombine.high %v837_v39, %v841_v42  ;;  %v829_v49 = vld [vmem:[#allocation10 + $0x2c8] sm:$0xff] }
 0x196   :  { %4069 = vmatprep.subr.bf16.mxu1 %v5700_v48  ;;  %v5780_v48 = vcombine.high %v965_v43, %v969_v45  ;;  %v833_v50 = vld [vmem:[#allocation10 + $0x2e8] sm:$0xff] }
 0x197   :  { %v957_v51 = vld [vmem:[#allocation10 + $0x6c8] sm:$0xff] }
 0x198   :  { %4029 = vmatpush1.bf16.msra.mxu0 %v5571_v53  ;;  %v961_v52 = vld [vmem:[#allocation10 + $0x6e8] sm:$0xff]  ;;  %v5651_v53 = vcombine.low %v837_v39, %v841_v42 }
 0x199   :  { %4070 = vmatpush1.bf16.msra.mxu1 %v5699_v54  ;;  %4030 = vmatprep.subr.bf16.mxu0 %v5564_v55  ;;  %v5779_v54 = vcombine.low %v965_v43, %v969_v45  ;;  %v5644_v55 = vcombine.high %v829_v49, %v833_v50  ;;  %v821_v58 = vld [vmem:[#allocation10 + $0x288] sm:$0xff] }
 0x19a   :  { %4071 = vmatprep.subr.bf16.mxu1 %v5692_v57  ;;  %v5772_v57 = vcombine.high %v957_v51, %v961_v52  ;;  %v825_v60 = vld [vmem:[#allocation10 + $0x2a8] sm:$0xff] }
 0x19b   :  { %v949_v61 = vld [vmem:[#allocation10 + $0x688] sm:$0xff] }
 0x19c   :  { %4031 = vmatpush1.bf16.msra.mxu0 %v5563_v6  ;;  %v953_v62 = vld [vmem:[#allocation10 + $0x6a8] sm:$0xff]  ;;  %v5643_v6 = vcombine.low %v829_v49, %v833_v50 }
 0x19d   :  { %4072 = vmatpush1.bf16.msra.mxu1 %v5691_v11  ;;  %4032 = vmatprep.subr.bf16.mxu0 %v5556_v10  ;;  %v5771_v11 = vcombine.low %v957_v51, %v961_v52  ;;  %v5636_v10 = vcombine.high %v821_v58, %v825_v60  ;;  %v813_v0 = vld [vmem:[#allocation10 + $0x248] sm:$0xff] }
 0x19e   :  { %4073 = vmatprep.subr.bf16.mxu1 %v5684_v24  ;;  %v5764_v24 = vcombine.high %v949_v61, %v953_v62  ;;  %v817_v37 = vld [vmem:[#allocation10 + $0x268] sm:$0xff] }
 0x19f   :  { %v941_v63 = vld [vmem:[#allocation10 + $0x648] sm:$0xff] }
 0x1a0   :  { %4033 = vmatpush1.bf16.msra.mxu0 %v5555_v2  ;;  %v945_v1 = vld [vmem:[#allocation10 + $0x668] sm:$0xff]  ;;  %v5635_v2 = vcombine.low %v821_v58, %v825_v60 }
 0x1a1   :  { %4074 = vmatpush1.bf16.msra.mxu1 %v5683_v3  ;;  %4034 = vmatprep.subr.bf16.mxu0 %v5676_v4  ;;  %v5763_v3 = vcombine.low %v949_v61, %v953_v62  ;;  %v5628_v4 = vcombine.high %v813_v0, %v817_v37  ;;  %v805_v9 = vld [vmem:[#allocation10 + $0x208] sm:$0xff] }
 0x1a2   :  { %4075 = vmatprep.subr.bf16.mxu1 %v5804_v5  ;;  %v5756_v5 = vcombine.high %v941_v63, %v945_v1  ;;  %v809_v12 = vld [vmem:[#allocation10 + $0x228] sm:$0xff] }
 0x1a3   :  { %v933_v13 = vld [vmem:[#allocation10 + $0x608] sm:$0xff] }
 0x1a4   :  { %4035 = vmatpush2.bf16.msra.mxu0 %v5675_v17  ;;  %v937_v14 = vld [vmem:[#allocation10 + $0x628] sm:$0xff]  ;;  %v5627_v17 = vcombine.low %v813_v0, %v817_v37 }
 0x1a5   :  { %4076 = vmatpush2.bf16.msra.mxu1 %v5803_v25  ;;  %4036 = vmatprep.subr.bf16.mxu0 %v5668_v26  ;;  %v5755_v25 = vcombine.low %v941_v63, %v945_v1  ;;  %v5620_v26 = vcombine.high %v805_v9, %v809_v12  ;;  %v1053_v29 = vld [vmem:[#allocation10 + $0x9c8] sm:$0xff] }
 0x1a6   :  { %4077 = vmatprep.subr.bf16.mxu1 %v5796_v27  ;;  %v5748_v27 = vcombine.high %v933_v13, %v937_v14  ;;  %v1057_v30 = vld [vmem:[#allocation10 + $0x9e8] sm:$0xff] }
 0x1a7   :  { %v1181_v31 = vld [vmem:[#allocation10 + $0xdc8] sm:$0xff]  ;;  %v5867_v43 = vcombine.low %v1053_v29, %v1057_v30 }
 0x1a8   :  { %4037 = vmatpush2.bf16.msra.mxu0 %v5667_v33  ;;  %v1185_v32 = vld [vmem:[#allocation10 + $0xde8] sm:$0xff]  ;;  %v5619_v33 = vcombine.low %v805_v9, %v809_v12 }
 0x1a9   :  { %4078 = vmatpush2.bf16.msra.mxu1 %v5795_v34  ;;  %4038 = vmatprep.subr.bf16.mxu0 %v5660_v36  ;;  %v5747_v34 = vcombine.low %v933_v13, %v937_v14  ;;  %v5868_v36 = vcombine.high %v1053_v29, %v1057_v30  ;;  %v1045_v39 = vld [vmem:[#allocation10 + $0x988] sm:$0xff] }
 0x1aa   :  { %4079 = vmatprep.subr.bf16.mxu1 %v5788_v38  ;;  %v5996_v38 = vcombine.high %v1181_v31, %v1185_v32  ;;  %v1049_v42 = vld [vmem:[#allocation10 + $0x9a8] sm:$0xff] }
 0x1ab   :  { %v1173_v45 = vld [vmem:[#allocation10 + $0xd88] sm:$0xff] }
 0x1ac   :  { %4039 = vmatpush2.bf16.msra.mxu0 %v5659_v28  ;;  %v1177_v28 = vld [vmem:[#allocation10 + $0xda8] sm:$0xff] }
 0x1ad   :  { %4080 = vmatpush2.bf16.msra.mxu1 %v5787_v46  ;;  %4040 = vmatprep.subr.bf16.mxu0 %v5652_v47  ;;  %v5995_v46 = vcombine.low %v1181_v31, %v1185_v32  ;;  %v5860_v47 = vcombine.high %v1045_v39, %v1049_v42  ;;  %v1041_v49 = vld [vmem:[#allocation10 + $0x968] sm:$0xff]  ;;  %v5988_v50 = vcombine.high %v1173_v45, %v1177_v28 }
 0x1ae   :  { %4081 = vmatprep.subr.bf16.mxu1 %v5780_v48  ;;  %v1037_v48 = vld [vmem:[#allocation10 + $0x948] sm:$0xff] }
 0x1af   :  { %v1165_v51 = vld [vmem:[#allocation10 + $0xd48] sm:$0xff] }
 0x1b0   :  { %4041 = vmatpush2.bf16.msra.mxu0 %v5651_v53  ;;  %v1169_v52 = vld [vmem:[#allocation10 + $0xd68] sm:$0xff]  ;;  %v5859_v53 = vcombine.low %v1045_v39, %v1049_v42 }
 0x1b1   :  { %4082 = vmatpush2.bf16.msra.mxu1 %v5779_v54  ;;  %4042 = vmatprep.subr.bf16.mxu0 %v5644_v55  ;;  %v5987_v54 = vcombine.low %v1173_v45, %v1177_v28  ;;  %v5852_v55 = vcombine.high %v1037_v48, %v1041_v49  ;;  %v1029_v58 = vld [vmem:[#allocation10 + $0x908] sm:$0xff] }
 0x1b2   :  { %4083 = vmatprep.subr.bf16.mxu1 %v5772_v57  ;;  %v5980_v57 = vcombine.high %v1165_v51, %v1169_v52  ;;  %v1033_v60 = vld [vmem:[#allocation10 + $0x928] sm:$0xff] }
 0x1b3   :  { %v1157_v61 = vld [vmem:[#allocation10 + $0xd08] sm:$0xff] }
 0x1b4   :  { %4043 = vmatpush2.bf16.msra.mxu0 %v5643_v6  ;;  %v1161_v62 = vld [vmem:[#allocation10 + $0xd28] sm:$0xff]  ;;  %v5851_v6 = vcombine.low %v1037_v48, %v1041_v49 }
 0x1b5   :  { %4084 = vmatpush2.bf16.msra.mxu1 %v5771_v11  ;;  %4044 = vmatprep.subr.bf16.mxu0 %v5636_v10  ;;  %v5979_v11 = vcombine.low %v1165_v51, %v1169_v52  ;;  %v5844_v10 = vcombine.high %v1029_v58, %v1033_v60  ;;  %v1021_v0 = vld [vmem:[#allocation10 + $0x8c8] sm:$0xff] }
 0x1b6   :  { %4085 = vmatprep.subr.bf16.mxu1 %v5764_v24  ;;  %v5972_v24 = vcombine.high %v1157_v61, %v1161_v62  ;;  %v1025_v37 = vld [vmem:[#allocation10 + $0x8e8] sm:$0xff] }
 0x1b7   :  { %v1149_v63 = vld [vmem:[#allocation10 + $0xcc8] sm:$0xff] }
 0x1b8   :  { %4045 = vmatpush2.bf16.msra.mxu0 %v5635_v2  ;;  %v1153_v1 = vld [vmem:[#allocation10 + $0xce8] sm:$0xff]  ;;  %v5843_v2 = vcombine.low %v1029_v58, %v1033_v60 }
 0x1b9   :  { %4086 = vmatpush2.bf16.msra.mxu1 %v5763_v3  ;;  %4046 = vmatprep.subr.bf16.mxu0 %v5628_v4  ;;  %v5971_v3 = vcombine.low %v1157_v61, %v1161_v62  ;;  %v5836_v4 = vcombine.high %v1021_v0, %v1025_v37  ;;  %v1013_v9 = vld [vmem:[#allocation10 + $0x888] sm:$0xff] }
 0x1ba   :  { %4087 = vmatprep.subr.bf16.mxu1 %v5756_v5  ;;  %v5964_v5 = vcombine.high %v1149_v63, %v1153_v1  ;;  %v1017_v12 = vld [vmem:[#allocation10 + $0x8a8] sm:$0xff] }
 0x1bb   :  { %v1141_v13 = vld [vmem:[#allocation10 + $0xc88] sm:$0xff] }
 0x1bc   :  { %4047 = vmatpush2.bf16.msra.mxu0 %v5627_v17  ;;  %v1145_v14 = vld [vmem:[#allocation10 + $0xca8] sm:$0xff]  ;;  %v5835_v17 = vcombine.low %v1021_v0, %v1025_v37 }
 0x1bd   :  { %4088 = vmatpush2.bf16.msra.mxu1 %v5755_v25  ;;  %4048 = vmatprep.subr.bf16.mxu0 %v5620_v26  ;;  %v5963_v25 = vcombine.low %v1149_v63, %v1153_v1  ;;  %v5828_v26 = vcombine.high %v1013_v9, %v1017_v12  ;;  %v1005_v29 = vld [vmem:[#allocation10 + $0x848] sm:$0xff] }
 0x1be   :  { %4089 = vmatprep.subr.bf16.mxu1 %v5748_v27  ;;  %v5956_v27 = vcombine.high %v1141_v13, %v1145_v14  ;;  %v1009_v30 = vld [vmem:[#allocation10 + $0x868] sm:$0xff] }
 0x1bf   :  { %v1133_v31 = vld [vmem:[#allocation10 + $0xc48] sm:$0xff]  ;;  %v5819_v28 = vcombine.low %v1005_v29, %v1009_v30 }
 0x1c0   :  { %4049 = vmatpush2.bf16.msra.mxu0 %v5619_v33  ;;  %v1137_v32 = vld [vmem:[#allocation10 + $0xc68] sm:$0xff]  ;;  %v5827_v33 = vcombine.low %v1013_v9, %v1017_v12 }
 0x1c1   :  { %4090 = vmatpush2.bf16.msra.mxu1 %v5747_v34  ;;  %4100 = vmatprep.subr.bf16.mxu0 %v5868_v36  ;;  %v5955_v34 = vcombine.low %v1141_v13, %v1145_v14  ;;  %v5820_v36 = vcombine.high %v1005_v29, %v1009_v30  ;;  %v997_v39 = vld [vmem:[#allocation10 + $0x808] sm:$0xff] }
 0x1c2   :  { %4141 = vmatprep.subr.bf16.mxu1 %v5996_v38  ;;  %v5948_v38 = vcombine.high %v1133_v31, %v1137_v32  ;;  %v1001_v42 = vld [vmem:[#allocation10 + $0x828] sm:$0xff] }
 0x1c3   :  { %4051 = vmatmul.mubr.bf16.vlgmr.msra.gmra.mxu0 %v6788_v40  ;;  %v1129_v45 = vld [vmem:[#allocation10 + $0xc28] sm:$0xff] }
 0x1c4   :  { %4092 = vmatmul.mubr.bf16.vlgmr.msra.gmra.mxu1 %v6793_v44  ;;  %4101 = vmatpush1.bf16.msra.mxu0 %v5867_v43  ;;  %v1125_v43 = vld [vmem:[#allocation10 + $0xc08] sm:$0xff] }
 0x1c5   :  { %4132 = vmatprep.mubr.bf16.mxu0 %v6832_v56  ;;  %4142 = vmatpush1.bf16.msra.mxu1 %v5995_v46  ;;  %v5947_v46 = vcombine.low %v1133_v31, %v1137_v32  ;;  %v5940_v48 = vcombine.high %v1125_v43, %v1129_v45  ;;  %v1117_v49 = vld [vmem:[#allocation10 + $0xbc8] sm:$0xff] }
 0x1c6   :  { %4173 = vmatprep.mubr.bf16.mxu1 %v6834_v59  ;;  %4102 = vmatprep.subr.bf16.mxu0 %v5860_v47  ;;  %v5812_v47 = vcombine.high %v997_v39, %v1001_v42  ;;  %v1245_v51 = vld [vmem:[#allocation10 + $0xfc8] sm:$0xff] }
 0x1c7   :  { %4143 = vmatprep.subr.bf16.mxu1 %v5988_v50  ;;  %v1121_v50 = vld [vmem:[#allocation10 + $0xbe8] sm:$0xff] }
 0x1c8   :  { %4103 = vmatpush1.bf16.msra.mxu0 %v5859_v53  ;;  %v1249_v52 = vld [vmem:[#allocation10 + $0xfe8] sm:$0xff]  ;;  %v5811_v53 = vcombine.low %v997_v39, %v1001_v42 }
 0x1c9   :  { %4144 = vmatpush1.bf16.msra.mxu1 %v5987_v54  ;;  %4104 = vmatprep.subr.bf16.mxu0 %v5852_v55  ;;  %v5939_v54 = vcombine.low %v1125_v43, %v1129_v45  ;;  %v5932_v55 = vcombine.high %v1117_v49, %v1121_v50  ;;  %v1109_v58 = vld [vmem:[#allocation10 + $0xb88] sm:$0xff] }
 0x1ca   :  { %4145 = vmatprep.subr.bf16.mxu1 %v5980_v57  ;;  %v6060_v57 = vcombine.high %v1245_v51, %v1249_v52  ;;  %v1113_v60 = vld [vmem:[#allocation10 + $0xba8] sm:$0xff] }
 0x1cb   :  { %v1237_v61 = vld [vmem:[#allocation10 + $0xf88] sm:$0xff] }
 0x1cc   :  { %4105 = vmatpush1.bf16.msra.mxu0 %v5851_v6  ;;  %v1241_v62 = vld [vmem:[#allocation10 + $0xfa8] sm:$0xff]  ;;  %v5931_v6 = vcombine.low %v1117_v49, %v1121_v50 }
 0x1cd   :  { %4146 = vmatpush1.bf16.msra.mxu1 %v5979_v11  ;;  %4106 = vmatprep.subr.bf16.mxu0 %v5844_v10  ;;  %v6059_v11 = vcombine.low %v1245_v51, %v1249_v52  ;;  %v5924_v10 = vcombine.high %v1109_v58, %v1113_v60  ;;  %v1101_v0 = vld [vmem:[#allocation10 + $0xb48] sm:$0xff] }
 0x1ce   :  { %4147 = vmatprep.subr.bf16.mxu1 %v5972_v24  ;;  %v6052_v24 = vcombine.high %v1237_v61, %v1241_v62  ;;  %v1105_v37 = vld [vmem:[#allocation10 + $0xb68] sm:$0xff] }
 0x1cf   :  { %v1229_v63 = vld [vmem:[#allocation10 + $0xf48] sm:$0xff] }
 0x1d0   :  { %4107 = vmatpush1.bf16.msra.mxu0 %v5843_v2  ;;  %v1233_v1 = vld [vmem:[#allocation10 + $0xf68] sm:$0xff]  ;;  %v5923_v2 = vcombine.low %v1109_v58, %v1113_v60 }
 0x1d1   :  { %4148 = vmatpush1.bf16.msra.mxu1 %v5971_v3  ;;  %4108 = vmatprep.subr.bf16.mxu0 %v5836_v4  ;;  %v6051_v3 = vcombine.low %v1237_v61, %v1241_v62  ;;  %v5916_v4 = vcombine.high %v1101_v0, %v1105_v37  ;;  %v1093_v9 = vld [vmem:[#allocation10 + $0xb08] sm:$0xff] }
 0x1d2   :  { %4149 = vmatprep.subr.bf16.mxu1 %v5964_v5  ;;  %v6044_v5 = vcombine.high %v1229_v63, %v1233_v1  ;;  %v1097_v12 = vld [vmem:[#allocation10 + $0xb28] sm:$0xff] }
 0x1d3   :  { %v1221_v13 = vld [vmem:[#allocation10 + $0xf08] sm:$0xff] }
 0x1d4   :  { %4109 = vmatpush1.bf16.msra.mxu0 %v5835_v17  ;;  %v1225_v14 = vld [vmem:[#allocation10 + $0xf28] sm:$0xff]  ;;  %v5915_v17 = vcombine.low %v1101_v0, %v1105_v37  ;;  %v798_v0 = vld [vmem:[#allocation10 + $0x1d0] sm:$0xff] }
 0x1d5   :  { %4150 = vmatpush1.bf16.msra.mxu1 %v5963_v25  ;;  %4110 = vmatprep.subr.bf16.mxu0 %v5828_v26  ;;  %v6043_v25 = vcombine.low %v1229_v63, %v1233_v1  ;;  %v5908_v26 = vcombine.high %v1093_v9, %v1097_v12  ;;  %v1085_v29 = vld [vmem:[#allocation10 + $0xac8] sm:$0xff]  ;;  %v802_v37 = vld [vmem:[#allocation10 + $0x1f0] sm:$0xff] }
 0x1d6   :  { %4151 = vmatprep.subr.bf16.mxu1 %v5956_v27  ;;  %v6036_v27 = vcombine.high %v1221_v13, %v1225_v14  ;;  %v1089_v30 = vld [vmem:[#allocation10 + $0xae8] sm:$0xff]  ;;  %v926_v63 = vld [vmem:[#allocation10 + $0x5d0] sm:$0xff] }
 0x1d7   :  { %v1213_v31 = vld [vmem:[#allocation10 + $0xec8] sm:$0xff]  ;;  %v930_v1 = vld [vmem:[#allocation10 + $0x5f0] sm:$0xff] }
 0x1d8   :  { %4111 = vmatpush1.bf16.msra.mxu0 %v5827_v33  ;;  %v1217_v32 = vld [vmem:[#allocation10 + $0xee8] sm:$0xff]  ;;  %v5907_v33 = vcombine.low %v1093_v9, %v1097_v12  ;;  %v5742_v9 = vcombine.high %v926_v63, %v930_v1  ;;  %v790_v12 = vld [vmem:[#allocation10 + $0x190] sm:$0xff] }
 0x1d9   :  { %4152 = vmatpush1.bf16.msra.mxu1 %v5955_v34  ;;  %4112 = vmatprep.subr.bf16.mxu0 %v5820_v36  ;;  %v6035_v34 = vcombine.low %v1221_v13, %v1225_v14  ;;  %v5900_v36 = vcombine.high %v1085_v29, %v1089_v30  ;;  %v1077_v39 = vld [vmem:[#allocation10 + $0xa88] sm:$0xff]  ;;  %v794_v13 = vld [vmem:[#allocation10 + $0x1b0] sm:$0xff]  ;;  %v5613_v14 = vcombine.low %v798_v0, %v802_v37 }
 0x1da   :  { %4153 = vmatprep.subr.bf16.mxu1 %v5948_v38  ;;  %v6028_v38 = vcombine.high %v1213_v31, %v1217_v32  ;;  %v1081_v42 = vld [vmem:[#allocation10 + $0xaa8] sm:$0xff] }
 0x1db   :  { %v1205_v43 = vld [vmem:[#allocation10 + $0xe88] sm:$0xff] }
 0x1dc   :  { %4113 = vmatpush1.bf16.msra.mxu0 %v5819_v28  ;;  %v1209_v45 = vld [vmem:[#allocation10 + $0xea8] sm:$0xff]  ;;  %v5899_v28 = vcombine.low %v1085_v29, %v1089_v30  ;;  %v5606_v30 = vcombine.high %v790_v12, %v794_v13 }
 0x1dd   :  { %4154 = vmatpush1.bf16.msra.mxu1 %v5947_v46  ;;  %4114 = vmatprep.subr.bf16.mxu0 %v5812_v47  ;;  %v6027_v46 = vcombine.low %v1213_v31, %v1217_v32  ;;  %v5892_v47 = vcombine.high %v1077_v39, %v1081_v42  ;;  %v1069_v49 = vld [vmem:[#allocation10 + $0xa48] sm:$0xff]  ;;  %v782_v31 = vld [vmem:[#allocation10 + $0x150] sm:$0xff] }
 0x1de   :  { %4155 = vmatprep.subr.bf16.mxu1 %v5940_v48  ;;  %v6020_v48 = vcombine.high %v1205_v43, %v1209_v45  ;;  %v1073_v50 = vld [vmem:[#allocation10 + $0xa68] sm:$0xff]  ;;  %v786_v32 = vld [vmem:[#allocation10 + $0x170] sm:$0xff] }
 0x1df   :  { %v1197_v51 = vld [vmem:[#allocation10 + $0xe48] sm:$0xff] }
 0x1e0   :  { %4115 = vmatpush1.bf16.msra.mxu0 %v5811_v53  ;;  %v1201_v52 = vld [vmem:[#allocation10 + $0xe68] sm:$0xff]  ;;  %v5891_v53 = vcombine.low %v1077_v39, %v1081_v42 }
 0x1e1   :  { %4156 = vmatpush1.bf16.msra.mxu1 %v5939_v54  ;;  %4116 = vmatprep.subr.bf16.mxu0 %v5932_v55  ;;  %v6019_v54 = vcombine.low %v1205_v43, %v1209_v45  ;;  %v5884_v55 = vcombine.high %v1069_v49, %v1073_v50  ;;  %v1061_v58 = vld [vmem:[#allocation10 + $0xa08] sm:$0xff]  ;;  %v5605_v43 = vcombine.low %v790_v12, %v794_v13  ;;  %v762_v12 = vld [vmem:[#allocation10 + $0xb0] sm:$0xff] }
 0x1e2   :  { %4157 = vmatprep.subr.bf16.mxu1 %v6060_v57  ;;  %v6012_v57 = vcombine.high %v1197_v51, %v1201_v52  ;;  %v1065_v60 = vld [vmem:[#allocation10 + $0xa28] sm:$0xff]  ;;  %v886_v13 = vld [vmem:[#allocation10 + $0x490] sm:$0xff] }
 0x1e3   :  { %v1189_v61 = vld [vmem:[#allocation10 + $0xe08] sm:$0xff] }
 0x1e4   :  { %4117 = vmatpush2.bf16.msra.mxu0 %v5931_v6  ;;  %v1193_v62 = vld [vmem:[#allocation10 + $0xe28] sm:$0xff]  ;;  %v5883_v6 = vcombine.low %v1069_v49, %v1073_v50 }
 0x1e5   :  { %4158 = vmatpush2.bf16.msra.mxu1 %v6059_v11  ;;  %4118 = vmatprep.subr.bf16.mxu0 %v5924_v10  ;;  %v6011_v11 = vcombine.low %v1197_v51, %v1201_v52  ;;  %v5876_v10 = vcombine.high %v1061_v58, %v1065_v60  ;;  %v774_v51 = vld [vmem:[#allocation10 + $0x110] sm:$0xff] }
 0x1e6   :  { %4159 = vmatprep.subr.bf16.mxu1 %v6052_v24  ;;  %v6004_v24 = vcombine.high %v1189_v61, %v1193_v62  ;;  %v778_v52 = vld [vmem:[#allocation10 + $0x130] sm:$0xff] }
 0x1e8   :  { %4119 = vmatpush2.bf16.msra.mxu0 %v5923_v2  ;;  %v5875_v2 = vcombine.low %v1061_v58, %v1065_v60  ;;  %v5597_v60 = vcombine.low %v782_v31, %v786_v32 }
 0x1e9   :  { %4160 = vmatpush2.bf16.msra.mxu1 %v6051_v3  ;;  %4120 = vmatprep.subr.bf16.mxu0 %v5916_v4  ;;  %v6003_v3 = vcombine.low %v1189_v61, %v1193_v62  ;;  %v5614_v4 = vcombine.high %v798_v0, %v802_v37  ;;  %v770_v0 = vld [vmem:[#allocation10 + $0xf0] sm:$0xff] }
 0x1ea   :  { %4161 = vmatprep.subr.bf16.mxu1 %v6044_v5  ;;  %v6856_v5 = vld [vmem:[#allocation11] sm:$0xff]  ;;  %v894_v37 = vld [vmem:[#allocation10 + $0x4d0] sm:$0xff] }
 0x1eb   :  { %v1261_v29 = vrot.slane %v6856_v5, %v6724_v15 }
 0x1ec   :  { %4121 = vmatpush2.bf16.msra.mxu0 %v5915_v17  ;;  %v1257_v17 = vrot.slane %v6856_v5, %v6726_v16 }
 0x1ed   :  { %4162 = vmatpush2.bf16.msra.mxu1 %v6043_v25  ;;  %4122 = vmatprep.subr.bf16.mxu0 %v5908_v26  ;;  %v918_v25 = vld [vmem:[#allocation10 + $0x590] sm:$0xff] }
 0x1ee   :  { %4163 = vmatprep.subr.bf16.mxu1 %v6036_v27  ;;  %v922_v26 = vld [vmem:[#allocation10 + $0x5b0] sm:$0xff]  ;;  %v5741_v27 = vcombine.low %v926_v63, %v930_v1  ;;  %v5589_v1 = vcombine.low %v774_v51, %v778_v52 }
 0x1ef   :  { %v898_v63 = vld [vmem:[#allocation10 + $0x4f0] sm:$0xff] }
 0x1f0   :  { %4123 = vmatpush2.bf16.msra.mxu0 %v5907_v33 }
 0x1f1   :  { %4164 = vmatpush2.bf16.msra.mxu1 %v6035_v34  ;;  %4124 = vmatprep.subr.bf16.mxu0 %v5900_v36  ;;  %v5734_v34 = vcombine.high %v918_v25, %v922_v26  ;;  %v910_v36 = vld [vmem:[#allocation10 + $0x550] sm:$0xff] }
 0x1f2   :  { %4165 = vmatprep.subr.bf16.mxu1 %v6028_v38  ;;  %v914_v38 = vld [vmem:[#allocation10 + $0x570] sm:$0xff] }
 0x1f3   :  { %v5726_v50 = vcombine.high %v910_v36, %v914_v38  ;;  %v5725_v62 = vcombine.low %v910_v36, %v914_v38 }
 0x1f4   :  { %4125 = vmatpush2.bf16.msra.mxu0 %v5899_v28  ;;  %v5733_v28 = vcombine.low %v918_v25, %v922_v26  ;;  %v5709_v25 = vcombine.low %v894_v37, %v898_v63 }
 0x1f5   :  { %4166 = vmatpush2.bf16.msra.mxu1 %v6027_v46  ;;  %4126 = vmatprep.subr.bf16.mxu0 %v5892_v47  ;;  %v5598_v46 = vcombine.high %v782_v31, %v786_v32  ;;  %v878_v31 = vld [vmem:[#allocation10 + $0x450] sm:$0xff] }
 0x1f6   :  { %4167 = vmatprep.subr.bf16.mxu1 %v6020_v48  ;;  %v882_v32 = vld [vmem:[#allocation10 + $0x470] sm:$0xff] }
 0x1f7   :  { %v5694_v38 = vcombine.high %v878_v31, %v882_v32 }
 0x1f8   :  { %4127 = vmatpush2.bf16.msra.mxu0 %v5891_v53 }
 0x1f9   :  { %4168 = vmatpush2.bf16.msra.mxu1 %v6019_v54  ;;  %4128 = vmatprep.subr.bf16.mxu0 %v5884_v55  ;;  %v902_v54 = vld [vmem:[#allocation10 + $0x510] sm:$0xff] }
 0x1fa   :  { %4169 = vmatprep.subr.bf16.mxu1 %v6012_v57  ;;  %v906_v55 = vld [vmem:[#allocation10 + $0x530] sm:$0xff] }
 0x1fc   :  { %4129 = vmatpush2.bf16.msra.mxu0 %v5883_v6  ;;  %v5590_v6 = vcombine.high %v774_v51, %v778_v52  ;;  %v866_v51 = vld [vmem:[#allocation10 + $0x3f0] sm:$0xff] }
 0x1fd   :  { %4170 = vmatpush2.bf16.msra.mxu1 %v6011_v11  ;;  %4130 = vmatprep.subr.bf16.mxu0 %v5876_v10  ;;  %v5718_v10 = vcombine.high %v902_v54, %v906_v55  ;;  %v990_v52 = vld [vmem:[#allocation10 + $0x7d0] sm:$0xff] }
 0x1fe   :  { %4171 = vmatprep.subr.bf16.mxu1 %v6004_v24  ;;  %v766_v24 = vld [vmem:[#allocation10 + $0xd0] sm:$0xff] }
 0x200   :  { %4131 = vmatpush2.bf16.msra.mxu0 %v5875_v2  ;;  %v5717_v2 = vcombine.low %v902_v54, %v906_v55 }
 0x201   :  { %4172 = vmatpush2.bf16.msra.mxu1 %v6003_v3  ;;  %4182 = vmatprep.subr.bf16.mxu0 %v5614_v4  ;;  %v5582_v3 = vcombine.high %v766_v24, %v770_v0  ;;  %v5710_v4 = vcombine.high %v894_v37, %v898_v63  ;;  %v846_v63 = vld [vmem:[#allocation10 + $0x350] sm:$0xff] }
 0x202   :  { %4223 = vmatprep.subr.bf16.mxu1 %v5742_v9  ;;  %v758_v9 = vld [vmem:[#allocation10 + $0x90] sm:$0xff] }
 0x203   :  { %4133 = vmatmul.mubr.bf16.vlgmr.msra.gmra.mxu0 %v6844_v7  ;;  %v3888_v33 = vpop.f32.mrf.mxu0  ;;  %v5574_v26 = vcombine.high %v758_v9, %v762_v12 }
 0x204   :  { %4174 = vmatmul.mubr.bf16.vlgmr.msra.gmra.mxu1 %v6846_v8  ;;  %v3889_v39 = vadd.f32 %v3888_v33, %v1257_v17  ;;  %v3929_v42 = vpop.f32.mrf.mxu1  ;;  %4183 = vmatpush1.bf16.msra.mxu0 %v5613_v14  ;;  %v890_v14 = vld [vmem:[#allocation10 + $0x4b0] sm:$0xff]  ;;  %v5581_v17 = vcombine.low %v766_v24, %v770_v0  ;;  %v5573_v33 = vcombine.low %v758_v9, %v762_v12 }
 0x205   :  { %4214 = vmatprep.mubr.bf16.mxu0 %v6784_v35  ;;  %4224 = vmatpush1.bf16.msra.mxu1 %v5741_v27  ;;  %v3890_v45 = vpop.f32.mrf.mxu0  ;;  %v5702_v27 = vcombine.high %v886_v13, %v890_v14 }
 0x206   :  { %v6865_v47 = vadd.f32 %v3929_v42, %v3889_v39  ;;  %4255 = vmatprep.mubr.bf16.mxu1 %v6790_v41  ;;  %v3891_v48 = vadd.f32 %v3890_v45, %v1261_v29  ;;  %v3931_v49 = vpop.f32.mrf.mxu1  ;;  %4184 = vmatprep.subr.bf16.mxu0 %v5606_v30  ;;  %v750_v29 = vld [vmem:[#allocation10 + $0x50] sm:$0xff] }
 0x207   :  { %4225 = vmatprep.subr.bf16.mxu1 %v5734_v34  ;;  %v3892_v53 = vpop.f32.mrf.mxu0  ;;  %v754_v30 = vld [vmem:[#allocation10 + $0x70] sm:$0xff]  ;;  %v5701_v34 = vcombine.low %v886_v13, %v890_v14 }
 0x208   :  { %v6868_v57 = vadd.f32 %v3931_v49, %v3891_v48  ;;  %v3933_v58 = vpop.f32.mrf.mxu1  ;;  %4185 = vmatpush1.bf16.msra.mxu0 %v5605_v43  ;;  %v5566_v36 = vcombine.high %v750_v29, %v754_v30  ;;  %v742_v39 = vld [vmem:[#allocation10 + $0x10] sm:$0xff] }
 0x209   :  { %4226 = vmatpush1.bf16.msra.mxu1 %v5733_v28  ;;  %v3893_v61 = vpop.f32.mrf.mxu0  ;;  %4186 = vmatprep.subr.bf16.mxu0 %v5598_v46  ;;  %v746_v42 = vld [vmem:[#allocation10 + $0x30] sm:$0xff]  ;;  %v5565_v28 = vcombine.low %v750_v29, %v754_v30  ;;  %v5693_v46 = vcombine.low %v878_v31, %v882_v32 }
 0x20a   :  { %v3934_v11 = vpop.f32.mrf.mxu1  ;;  %4227 = vmatprep.subr.bf16.mxu1 %v5726_v50  ;;  %v870_v43 = vld [vmem:[#allocation10 + $0x410] sm:$0xff]  ;;  %v5558_v48 = vcombine.high %v742_v39, %v746_v42  ;;  %v5557_v54 = vcombine.low %v742_v39, %v746_v42 }
 0x20b   :  { %v874_v45 = vld [vmem:[#allocation10 + $0x430] sm:$0xff] }
 0x20c   :  { %4187 = vmatpush1.bf16.msra.mxu0 %v5597_v60  ;;  %v5686_v49 = vcombine.high %v870_v43, %v874_v45  ;;  %v862_v50 = vld [vmem:[#allocation10 + $0x3d0] sm:$0xff]  ;;  %v5685_v55 = vcombine.low %v870_v43, %v874_v45 }
 0x20d   :  { %4228 = vmatpush1.bf16.msra.mxu1 %v5725_v62  ;;  %4188 = vmatprep.subr.bf16.mxu0 %v5590_v6  ;;  %v994_v53 = vld [vmem:[#allocation10 + $0x7f0] sm:$0xff]  ;;  %v5678_v58 = vcombine.high %v862_v50, %v866_v51 }
 0x20e   :  { %4229 = vmatprep.subr.bf16.mxu1 %v5718_v10  ;;  %v5806_v60 = vcombine.high %v990_v52, %v994_v53  ;;  %v854_v61 = vld [vmem:[#allocation10 + $0x390] sm:$0xff]  ;;  %v5677_v10 = vcombine.low %v862_v50, %v866_v51  ;;  %v5805_v24 = vcombine.low %v990_v52, %v994_v53 }
 0x20f   :  { %v858_v62 = vld [vmem:[#allocation10 + $0x3b0] sm:$0xff] }
 0x210   :  { %4189 = vmatpush1.bf16.msra.mxu0 %v5589_v1  ;;  %v982_v6 = vld [vmem:[#allocation10 + $0x790] sm:$0xff]  ;;  %v5670_v0 = vcombine.high %v854_v61, %v858_v62 }
 0x211   :  { %4230 = vmatpush1.bf16.msra.mxu1 %v5717_v2  ;;  %4190 = vmatprep.subr.bf16.mxu0 %v5582_v3  ;;  %v986_v11 = vld [vmem:[#allocation10 + $0x7b0] sm:$0xff] }
 0x212   :  { %4231 = vmatprep.subr.bf16.mxu1 %v5710_v4  ;;  %v5798_v37 = vcombine.high %v982_v6, %v986_v11  ;;  %v850_v1 = vld [vmem:[#allocation10 + $0x370] sm:$0xff]  ;;  %v5669_v4 = vcombine.low %v854_v61, %v858_v62  ;;  %v5797_v9 = vcombine.low %v982_v6, %v986_v11 }
 0x213   :  { %v974_v2 = vld [vmem:[#allocation10 + $0x750] sm:$0xff]  ;;  %v5662_v12 = vcombine.high %v846_v63, %v850_v1 }
 0x214   :  { %4191 = vmatpush1.bf16.msra.mxu0 %v5581_v17  ;;  %v978_v3 = vld [vmem:[#allocation10 + $0x770] sm:$0xff] }
 0x215   :  { %4232 = vmatpush1.bf16.msra.mxu1 %v5709_v25  ;;  %4192 = vmatprep.subr.bf16.mxu0 %v5574_v26  ;;  %v5790_v13 = vcombine.high %v974_v2, %v978_v3  ;;  %v838_v14 = vld [vmem:[#allocation10 + $0x310] sm:$0xff]  ;;  %v5789_v29 = vcombine.low %v974_v2, %v978_v3 }
 0x216   :  { %4233 = vmatprep.subr.bf16.mxu1 %v5702_v27  ;;  %v842_v17 = vld [vmem:[#allocation10 + $0x330] sm:$0xff]  ;;  %v5661_v27 = vcombine.low %v846_v63, %v850_v1 }
 0x217   :  { %v966_v25 = vld [vmem:[#allocation10 + $0x710] sm:$0xff]  ;;  %v5654_v30 = vcombine.high %v838_v14, %v842_v17 }
 0x218   :  { %4193 = vmatpush1.bf16.msra.mxu0 %v5573_v33  ;;  %v970_v26 = vld [vmem:[#allocation10 + $0x730] sm:$0xff] }
 0x219   :  { %4234 = vmatpush1.bf16.msra.mxu1 %v5701_v34  ;;  %4194 = vmatprep.subr.bf16.mxu0 %v5566_v36  ;;  %v5782_v31 = vcombine.high %v966_v25, %v970_v26  ;;  %v830_v32 = vld [vmem:[#allocation10 + $0x2d0] sm:$0xff]  ;;  %v5781_v39 = vcombine.low %v966_v25, %v970_v26 }
 0x21a   :  { %4235 = vmatprep.subr.bf16.mxu1 %v5694_v38  ;;  %v834_v33 = vld [vmem:[#allocation10 + $0x2f0] sm:$0xff]  ;;  %v5653_v38 = vcombine.low %v838_v14, %v842_v17 }
 0x21b   :  { %v958_v34 = vld [vmem:[#allocation10 + $0x6d0] sm:$0xff]  ;;  %v5646_v42 = vcombine.high %v830_v32, %v834_v33 }
 0x21c   :  { %4195 = vmatpush1.bf16.msra.mxu0 %v5565_v28  ;;  %v962_v36 = vld [vmem:[#allocation10 + $0x6f0] sm:$0xff] }
 0x21d   :  { %4236 = vmatpush1.bf16.msra.mxu1 %v5693_v46  ;;  %4196 = vmatprep.subr.bf16.mxu0 %v5558_v48  ;;  %v5774_v43 = vcombine.high %v958_v34, %v962_v36  ;;  %v822_v45 = vld [vmem:[#allocation10 + $0x290] sm:$0xff]  ;;  %v5773_v50 = vcombine.low %v958_v34, %v962_v36 }
 0x21e   :  { %4237 = vmatprep.subr.bf16.mxu1 %v5686_v49  ;;  %v826_v28 = vld [vmem:[#allocation10 + $0x2b0] sm:$0xff]  ;;  %v5645_v49 = vcombine.low %v830_v32, %v834_v33 }
 0x21f   :  { %v950_v46 = vld [vmem:[#allocation10 + $0x690] sm:$0xff]  ;;  %v5638_v51 = vcombine.high %v822_v45, %v826_v28 }
 0x220   :  { %4197 = vmatpush1.bf16.msra.mxu0 %v5557_v54  ;;  %v954_v48 = vld [vmem:[#allocation10 + $0x6b0] sm:$0xff] }
 0x221   :  { %4238 = vmatpush1.bf16.msra.mxu1 %v5685_v55  ;;  %4198 = vmatprep.subr.bf16.mxu0 %v5678_v58  ;;  %v5766_v52 = vcombine.high %v950_v46, %v954_v48  ;;  %v814_v53 = vld [vmem:[#allocation10 + $0x250] sm:$0xff]  ;;  %v5765_v61 = vcombine.low %v950_v46, %v954_v48 }
 0x222   :  { %4239 = vmatprep.subr.bf16.mxu1 %v5806_v60  ;;  %v818_v54 = vld [vmem:[#allocation10 + $0x270] sm:$0xff]  ;;  %v5637_v60 = vcombine.low %v822_v45, %v826_v28 }
 0x223   :  { %v942_v55 = vld [vmem:[#allocation10 + $0x650] sm:$0xff]  ;;  %v5630_v62 = vcombine.high %v814_v53, %v818_v54 }
 0x224   :  { %4199 = vmatpush2.bf16.msra.mxu0 %v5677_v10  ;;  %v946_v58 = vld [vmem:[#allocation10 + $0x670] sm:$0xff] }
 0x225   :  { %4240 = vmatpush2.bf16.msra.mxu1 %v5805_v24  ;;  %4200 = vmatprep.subr.bf16.mxu0 %v5670_v0  ;;  %v5758_v6 = vcombine.high %v942_v55, %v946_v58  ;;  %v806_v11 = vld [vmem:[#allocation10 + $0x210] sm:$0xff]  ;;  %v5757_v63 = vcombine.low %v942_v55, %v946_v58 }
 0x226   :  { %4241 = vmatprep.subr.bf16.mxu1 %v5798_v37  ;;  %v810_v10 = vld [vmem:[#allocation10 + $0x230] sm:$0xff]  ;;  %v5629_v37 = vcombine.low %v814_v53, %v818_v54 }
 0x227   :  { %v934_v24 = vld [vmem:[#allocation10 + $0x610] sm:$0xff]  ;;  %v5622_v1 = vcombine.high %v806_v11, %v810_v10 }
 0x228   :  { %4201 = vmatpush2.bf16.msra.mxu0 %v5669_v4  ;;  %v938_v0 = vld [vmem:[#allocation10 + $0x630] sm:$0xff] }
 0x229   :  { %4242 = vmatpush2.bf16.msra.mxu1 %v5797_v9  ;;  %4202 = vmatprep.subr.bf16.mxu0 %v5662_v12  ;;  %v5750_v2 = vcombine.high %v934_v24, %v938_v0  ;;  %v1054_v3 = vld [vmem:[#allocation10 + $0x9d0] sm:$0xff]  ;;  %v5749_v14 = vcombine.low %v934_v24, %v938_v0 }
 0x22a   :  { %4243 = vmatprep.subr.bf16.mxu1 %v5790_v13  ;;  %v1058_v4 = vld [vmem:[#allocation10 + $0x9f0] sm:$0xff]  ;;  %v5621_v13 = vcombine.low %v806_v11, %v810_v10 }
 0x22b   :  { %v1182_v9 = vld [vmem:[#allocation10 + $0xdd0] sm:$0xff]  ;;  %v5870_v17 = vcombine.high %v1054_v3, %v1058_v4 }
 0x22c   :  { %4203 = vmatpush2.bf16.msra.mxu0 %v5661_v27  ;;  %v1186_v12 = vld [vmem:[#allocation10 + $0xdf0] sm:$0xff] }
 0x22d   :  { %4244 = vmatpush2.bf16.msra.mxu1 %v5789_v29  ;;  %4204 = vmatprep.subr.bf16.mxu0 %v5654_v30  ;;  %v5998_v25 = vcombine.high %v1182_v9, %v1186_v12  ;;  %v1046_v26 = vld [vmem:[#allocation10 + $0x990] sm:$0xff]  ;;  %v5869_v29 = vcombine.low %v1054_v3, %v1058_v4  ;;  %v5997_v32 = vcombine.low %v1182_v9, %v1186_v12 }
 0x22e   :  { %4245 = vmatprep.subr.bf16.mxu1 %v5782_v31  ;;  %v1050_v27 = vld [vmem:[#allocation10 + $0x9b0] sm:$0xff] }
 0x22f   :  { %v1174_v30 = vld [vmem:[#allocation10 + $0xd90] sm:$0xff]  ;;  %v5862_v33 = vcombine.high %v1046_v26, %v1050_v27  ;;  %v5861_v46 = vcombine.low %v1046_v26, %v1050_v27 }
 0x230   :  { %4205 = vmatpush2.bf16.msra.mxu0 %v5653_v38  ;;  %v1178_v31 = vld [vmem:[#allocation10 + $0xdb0] sm:$0xff] }
 0x231   :  { %4246 = vmatpush2.bf16.msra.mxu1 %v5781_v39  ;;  %4206 = vmatprep.subr.bf16.mxu0 %v5646_v42  ;;  %v1038_v34 = vld [vmem:[#allocation10 + $0x950] sm:$0xff]  ;;  %v5990_v39 = vcombine.high %v1174_v30, %v1178_v31 }
 0x232   :  { %4247 = vmatprep.subr.bf16.mxu1 %v5774_v43  ;;  %v1042_v36 = vld [vmem:[#allocation10 + $0x970] sm:$0xff] }
 0x233   :  { %v1166_v42 = vld [vmem:[#allocation10 + $0xd50] sm:$0xff]  ;;  %v5853_v11 = vcombine.low %v1038_v34, %v1042_v36 }
 0x234   :  { %4207 = vmatpush2.bf16.msra.mxu0 %v5645_v49  ;;  %v1170_v43 = vld [vmem:[#allocation10 + $0xd70] sm:$0xff]  ;;  %v5989_v49 = vcombine.low %v1174_v30, %v1178_v31 }
 0x235   :  { %4248 = vmatpush2.bf16.msra.mxu1 %v5773_v50  ;;  %4208 = vmatprep.subr.bf16.mxu0 %v5638_v51  ;;  %v5854_v50 = vcombine.high %v1038_v34, %v1042_v36  ;;  %v1030_v54 = vld [vmem:[#allocation10 + $0x910] sm:$0xff]  ;;  %v5981_v24 = vcombine.low %v1166_v42, %v1170_v43 }
 0x236   :  { %4249 = vmatprep.subr.bf16.mxu1 %v5766_v52  ;;  %v1034_v55 = vld [vmem:[#allocation10 + $0x930] sm:$0xff] }
 0x237   :  { %v5846_v0 = vcombine.high %v1030_v54, %v1034_v55  ;;  %v1154_v3 = vld [vmem:[#allocation10 + $0xcf0] sm:$0xff]  ;;  %v5845_v4 = vcombine.low %v1030_v54, %v1034_v55 }
 0x238   :  { %4209 = vmatpush2.bf16.msra.mxu0 %v5637_v60  ;;  %v1158_v60 = vld [vmem:[#allocation10 + $0xd10] sm:$0xff] }
 0x239   :  { %4250 = vmatpush2.bf16.msra.mxu1 %v5765_v61  ;;  %4210 = vmatprep.subr.bf16.mxu0 %v5630_v62  ;;  %v1162_v61 = vld [vmem:[#allocation10 + $0xd30] sm:$0xff] }
 0x23a   :  { %4251 = vmatprep.subr.bf16.mxu1 %v5758_v6  ;;  %v5973_v9 = vcombine.low %v1158_v60, %v1162_v61  ;;  %v1146_v26 = vld [vmem:[#allocation10 + $0xcb0] sm:$0xff] }
 0x23b   :  { %v1134_v34 = vld [vmem:[#allocation10 + $0xc50] sm:$0xff] }
 0x23c   :  { %4211 = vmatpush2.bf16.msra.mxu0 %v5629_v37  ;;  %v5974_v37 = vcombine.high %v1158_v60, %v1162_v61  ;;  %v1138_v36 = vld [vmem:[#allocation10 + $0xc70] sm:$0xff] }
 0x23d   :  { %4252 = vmatpush2.bf16.msra.mxu1 %v5757_v63  ;;  %4212 = vmatprep.subr.bf16.mxu0 %v5622_v1  ;;  %v1022_v63 = vld [vmem:[#allocation10 + $0x8d0] sm:$0xff] }
 0x23e   :  { %4253 = vmatprep.subr.bf16.mxu1 %v5750_v2  ;;  %v1026_v1 = vld [vmem:[#allocation10 + $0x8f0] sm:$0xff] }
 0x23f   :  { %v1150_v2 = vld [vmem:[#allocation10 + $0xcd0] sm:$0xff]  ;;  %v5838_v12 = vcombine.high %v1022_v63, %v1026_v1  ;;  %v5837_v27 = vcombine.low %v1022_v63, %v1026_v1 }
 0x240   :  { %4213 = vmatpush2.bf16.msra.mxu0 %v5621_v13  ;;  %v5966_v13 = vcombine.high %v1150_v2, %v1154_v3  ;;  %v1122_v54 = vld [vmem:[#allocation10 + $0xbf0] sm:$0xff] }
 0x241   :  { %4254 = vmatpush2.bf16.msra.mxu1 %v5749_v14  ;;  %4264 = vmatprep.subr.bf16.mxu0 %v5870_v17  ;;  %v1014_v14 = vld [vmem:[#allocation10 + $0x890] sm:$0xff] }
 0x242   :  { %4305 = vmatprep.subr.bf16.mxu1 %v5998_v25  ;;  %v1018_v17 = vld [vmem:[#allocation10 + $0x8b0] sm:$0xff] }
 0x243   :  { %v3970_v38 = vpop.f32.mrf.mxu0  ;;  %4215 = vmatmul.mubr.bf16.vlgmr.msra.gmra.mxu0 %v6788_v40  ;;  %v1142_v25 = vld [vmem:[#allocation10 + $0xc90] sm:$0xff]  ;;  %v5830_v30 = vcombine.high %v1014_v14, %v1018_v17 }
 0x244   :  { %v3971_v45 = vadd.f32 %v3970_v38, %v6865_v47  ;;  %v4011_v28 = vpop.f32.mrf.mxu1  ;;  %4256 = vmatmul.mubr.bf16.vlgmr.msra.gmra.mxu1 %v6793_v44  ;;  %4265 = vmatpush1.bf16.msra.mxu0 %v5869_v29  ;;  %v5982_v47 = vcombine.high %v1166_v42, %v1170_v43  ;;  %v5965_v29 = vcombine.low %v1150_v2, %v1154_v3  ;;  %v1246_v55 = vld [vmem:[#allocation10 + $0xfd0] sm:$0xff] }
 0x245   :  { %4296 = vmatprep.mubr.bf16.mxu0 %v6832_v56  ;;  %4306 = vmatpush1.bf16.msra.mxu1 %v5997_v32  ;;  %v3972_v48 = vpop.f32.mrf.mxu0  ;;  %v5958_v31 = vcombine.high %v1142_v25, %v1146_v26  ;;  %v1006_v32 = vld [vmem:[#allocation10 + $0x850] sm:$0xff]  ;;  %v5829_v38 = vcombine.low %v1014_v14, %v1018_v17  ;;  %v5950_v43 = vcombine.high %v1134_v34, %v1138_v36 }
 0x246   :  { %v6874_v51 = vadd.f32 %v4011_v28, %v3971_v45  ;;  %4337 = vmatprep.mubr.bf16.mxu1 %v6834_v59  ;;  %v3973_v52 = vadd.f32 %v3972_v48, %v6868_v57  ;;  %v4013_v53 = vpop.f32.mrf.mxu1  ;;  %4266 = vmatprep.subr.bf16.mxu0 %v5862_v33  ;;  %v1010_v33 = vld [vmem:[#allocation10 + $0x870] sm:$0xff] }
 0x247   :  { %v3974_v58 = vpop.f32.mrf.mxu0  ;;  %4307 = vmatprep.subr.bf16.mxu1 %v5990_v39  ;;  %v5957_v39 = vcombine.low %v1142_v25, %v1146_v26  ;;  %v5822_v42 = vcombine.high %v1006_v32, %v1010_v33  ;;  %v998_v45 = vld [vmem:[#allocation10 + $0x810] sm:$0xff] }
 0x248   :  { %v6878_v62 = vadd.f32 %v4013_v53, %v3973_v52  ;;  %v4015_v6 = vpop.f32.mrf.mxu1  ;;  %4267 = vmatpush1.bf16.msra.mxu0 %v5861_v46  ;;  %v1002_v28 = vld [vmem:[#allocation10 + $0x830] sm:$0xff]  ;;  %vm4510_vm13 = vcmp.ge.f32.partialorder %v6874_v51, 0.0 }
 0x249   :  { %4308 = vmatpush1.bf16.msra.mxu1 %v5989_v49  ;;  %v3975_v10 = vpop.f32.mrf.mxu0  ;;  %4268 = vmatprep.subr.bf16.mxu0 %v5854_v50  ;;  %v1126_v46 = vld [vmem:[#allocation10 + $0xc10] sm:$0xff]  ;;  %v5821_v49 = vcombine.low %v1006_v32, %v1010_v33  ;;  %v5949_v50 = vcombine.low %v1134_v34, %v1138_v36  ;;  %v5814_v52 = vcombine.high %v998_v45, %v1002_v28 }
 0x24a   :  { %v4016_v57 = vpop.f32.mrf.mxu1  ;;  %4309 = vmatprep.subr.bf16.mxu1 %v5982_v47  ;;  %v1130_v48 = vld [vmem:[#allocation10 + $0xc30] sm:$0xff]  ;;  %v5813_v60 = vcombine.low %v998_v45, %v1002_v28  ;;  %vm4511_vm11 = vcmp.ge.f32.partialorder %v6878_v62, 0.0 }
 0x24b   :  { %v5942_v53 = vcombine.high %v1126_v46, %v1130_v48  ;;  %v1118_v47 = vld [vmem:[#allocation10 + $0xbd0] sm:$0xff]  ;;  %v5941_v61 = vcombine.low %v1126_v46, %v1130_v48 }
 0x24c   :  { %4269 = vmatpush1.bf16.msra.mxu0 %v5853_v11  ;;  %v1250_v58 = vld [vmem:[#allocation10 + $0xff0] sm:$0xff]  ;;  %v5934_v6 = vcombine.high %v1118_v47, %v1122_v54 }
 0x24d   :  { %4310 = vmatpush1.bf16.msra.mxu1 %v5981_v24  ;;  %4270 = vmatprep.subr.bf16.mxu0 %v5846_v0  ;;  %v6062_v11 = vcombine.high %v1246_v55, %v1250_v58  ;;  %v1110_v10 = vld [vmem:[#allocation10 + $0xb90] sm:$0xff]  ;;  %v6061_v63 = vcombine.low %v1246_v55, %v1250_v58 }
 0x24e   :  { %4311 = vmatprep.subr.bf16.mxu1 %v5974_v37  ;;  %v1114_v24 = vld [vmem:[#allocation10 + $0xbb0] sm:$0xff]  ;;  %v5933_v37 = vcombine.low %v1118_v47, %v1122_v54 }
 0x24f   :  { %v1238_v0 = vld [vmem:[#allocation10 + $0xf90] sm:$0xff]  ;;  %v5926_v1 = vcombine.high %v1110_v10, %v1114_v24 }
 0x250   :  { %4271 = vmatpush1.bf16.msra.mxu0 %v5845_v4  ;;  %v1242_v57 = vld [vmem:[#allocation10 + $0xfb0] sm:$0xff] }
 0x251   :  { %4312 = vmatpush1.bf16.msra.mxu1 %v5973_v9  ;;  %4272 = vmatprep.subr.bf16.mxu0 %v5838_v12  ;;  %v6054_v2 = vcombine.high %v1238_v0, %v1242_v57  ;;  %v1102_v3 = vld [vmem:[#allocation10 + $0xb50] sm:$0xff]  ;;  %v6053_v14 = vcombine.low %v1238_v0, %v1242_v57 }
 0x252   :  { %4313 = vmatprep.subr.bf16.mxu1 %v5966_v13  ;;  %v1106_v4 = vld [vmem:[#allocation10 + $0xb70] sm:$0xff]  ;;  %v5925_v13 = vcombine.low %v1110_v10, %v1114_v24 }
 0x253   :  { %v1230_v9 = vld [vmem:[#allocation10 + $0xf50] sm:$0xff]  ;;  %v5918_v17 = vcombine.high %v1102_v3, %v1106_v4 }
 0x254   :  { %4273 = vmatpush1.bf16.msra.mxu0 %v5837_v27  ;;  %v1234_v12 = vld [vmem:[#allocation10 + $0xf70] sm:$0xff] }
 0x255   :  { %4314 = vmatpush1.bf16.msra.mxu1 %v5965_v29  ;;  %4274 = vmatprep.subr.bf16.mxu0 %v5830_v30  ;;  %v6046_v25 = vcombine.high %v1230_v9, %v1234_v12  ;;  %v1094_v26 = vld [vmem:[#allocation10 + $0xb10] sm:$0xff]  ;;  %v6045_v32 = vcombine.low %v1230_v9, %v1234_v12  ;;  %v799_v12 = vld [vmem:[#allocation10 + $0x1d8] sm:$0xff] }
 0x256   :  { %4315 = vmatprep.subr.bf16.mxu1 %v5958_v31  ;;  %v1098_v27 = vld [vmem:[#allocation10 + $0xb30] sm:$0xff]  ;;  %v5917_v31 = vcombine.low %v1102_v3, %v1106_v4 }
 0x257   :  { %v1222_v29 = vld [vmem:[#allocation10 + $0xf10] sm:$0xff]  ;;  %v5910_v33 = vcombine.high %v1094_v26, %v1098_v27 }
 0x258   :  { %4275 = vmatpush1.bf16.msra.mxu0 %v5829_v38  ;;  %v1226_v30 = vld [vmem:[#allocation10 + $0xf30] sm:$0xff] }
 0x259   :  { %4316 = vmatpush1.bf16.msra.mxu1 %v5957_v39  ;;  %4276 = vmatprep.subr.bf16.mxu0 %v5822_v42  ;;  %v6038_v34 = vcombine.high %v1222_v29, %v1226_v30  ;;  %v1086_v36 = vld [vmem:[#allocation10 + $0xad0] sm:$0xff]  ;;  %v6037_v45 = vcombine.low %v1222_v29, %v1226_v30  ;;  %v791_v30 = vld [vmem:[#allocation10 + $0x198] sm:$0xff] }
 0x25a   :  { %4317 = vmatprep.subr.bf16.mxu1 %v5950_v43  ;;  %v1090_v38 = vld [vmem:[#allocation10 + $0xaf0] sm:$0xff]  ;;  %v5909_v43 = vcombine.low %v1094_v26, %v1098_v27 }
 0x25b   :  { %v1214_v39 = vld [vmem:[#allocation10 + $0xed0] sm:$0xff]  ;;  %v5902_v28 = vcombine.high %v1086_v36, %v1090_v38 }
 0x25c   :  { %4277 = vmatpush1.bf16.msra.mxu0 %v5821_v49  ;;  %v1218_v42 = vld [vmem:[#allocation10 + $0xef0] sm:$0xff] }
 0x25d   :  { %4318 = vmatpush1.bf16.msra.mxu1 %v5949_v50  ;;  %4278 = vmatprep.subr.bf16.mxu0 %v5814_v52  ;;  %v6030_v46 = vcombine.high %v1214_v39, %v1218_v42  ;;  %v1078_v48 = vld [vmem:[#allocation10 + $0xa90] sm:$0xff]  ;;  %v6029_v47 = vcombine.low %v1214_v39, %v1218_v42  ;;  %v1269_v39 = vrot.slane %v6856_v5, %v6734_v21 }
 0x25e   :  { %4319 = vmatprep.subr.bf16.mxu1 %v5942_v53  ;;  %v1082_v49 = vld [vmem:[#allocation10 + $0xab0] sm:$0xff]  ;;  %v5901_v53 = vcombine.low %v1086_v36, %v1090_v38  ;;  %v923_v36 = vld [vmem:[#allocation10 + $0x5b8] sm:$0xff] }
 0x25f   :  { %v1206_v50 = vld [vmem:[#allocation10 + $0xe90] sm:$0xff]  ;;  %v5894_v54 = vcombine.high %v1078_v48, %v1082_v49 }
 0x260   :  { %4279 = vmatpush1.bf16.msra.mxu0 %v5813_v60  ;;  %v1210_v52 = vld [vmem:[#allocation10 + $0xeb0] sm:$0xff] }
 0x261   :  { %4320 = vmatpush1.bf16.msra.mxu1 %v5941_v61  ;;  %4280 = vmatprep.subr.bf16.mxu0 %v5934_v6  ;;  %v6022_v55 = vcombine.high %v1206_v50, %v1210_v52  ;;  %v1070_v58 = vld [vmem:[#allocation10 + $0xa50] sm:$0xff]  ;;  %v6021_v10 = vcombine.low %v1206_v50, %v1210_v52 }
 0x262   :  { %4321 = vmatprep.subr.bf16.mxu1 %v6062_v11  ;;  %v1074_v60 = vld [vmem:[#allocation10 + $0xa70] sm:$0xff]  ;;  %v5893_v11 = vcombine.low %v1078_v48, %v1082_v49  ;;  %v911_v48 = vld [vmem:[#allocation10 + $0x558] sm:$0xff] }
 0x263   :  { %v1198_v61 = vld [vmem:[#allocation10 + $0xe50] sm:$0xff]  ;;  %v5886_v24 = vcombine.high %v1070_v58, %v1074_v60  ;;  %v915_v49 = vld [vmem:[#allocation10 + $0x578] sm:$0xff] }
 0x264   :  { %4281 = vmatpush2.bf16.msra.mxu0 %v5933_v37  ;;  %v1202_v6 = vld [vmem:[#allocation10 + $0xe70] sm:$0xff] }
 0x265   :  { %4322 = vmatpush2.bf16.msra.mxu1 %v6061_v63  ;;  %4282 = vmatprep.subr.bf16.mxu0 %v5926_v1  ;;  %v6014_v0 = vcombine.high %v1198_v61, %v1202_v6  ;;  %v1062_v57 = vld [vmem:[#allocation10 + $0xa10] sm:$0xff]  ;;  %v6013_v3 = vcombine.low %v1198_v61, %v1202_v6  ;;  %v779_v61 = vld [vmem:[#allocation10 + $0x138] sm:$0xff] }
 0x266   :  { %4323 = vmatprep.subr.bf16.mxu1 %v6054_v2  ;;  %v1066_v37 = vld [vmem:[#allocation10 + $0xa30] sm:$0xff]  ;;  %v5885_v2 = vcombine.low %v1070_v58, %v1074_v60  ;;  %v5728_v58 = vcombine.high %v911_v48, %v915_v49  ;;  %v775_v60 = vld [vmem:[#allocation10 + $0x118] sm:$0xff] }
 0x267   :  { %v1190_v63 = vld [vmem:[#allocation10 + $0xe10] sm:$0xff]  ;;  %v5878_v4 = vcombine.high %v1062_v57, %v1066_v37 }
 0x268   :  { %4283 = vmatpush2.bf16.msra.mxu0 %v5925_v13  ;;  %v1194_v1 = vld [vmem:[#allocation10 + $0xe30] sm:$0xff]  ;;  %v803_v13 = vld [vmem:[#allocation10 + $0x1f8] sm:$0xff] }
 0x269   :  { %4324 = vmatpush2.bf16.msra.mxu1 %v6053_v14  ;;  %4284 = vmatprep.subr.bf16.mxu0 %v5918_v17  ;;  %v6006_v9 = vcombine.high %v1190_v63, %v1194_v1  ;;  %v927_v14 = vld [vmem:[#allocation10 + $0x5d8] sm:$0xff]  ;;  %v6005_v26 = vcombine.low %v1190_v63, %v1194_v1  ;;  %v5616_v27 = vcombine.high %v799_v12, %v803_v13 }
 0x26a   :  { %4325 = vmatprep.subr.bf16.mxu1 %v6046_v25  ;;  %v931_v17 = vld [vmem:[#allocation10 + $0x5f8] sm:$0xff]  ;;  %v5877_v25 = vcombine.low %v1062_v57, %v1066_v37  ;;  %v5727_v37 = vcombine.low %v911_v48, %v915_v49 }
 0x26b   :  { %v5744_v29 = vcombine.high %v927_v14, %v931_v17  ;;  %v5743_v38 = vcombine.low %v927_v14, %v931_v17  ;;  %v747_v48 = vld [vmem:[#allocation10 + $0x38] sm:$0xff] }
 0x26c   :  { %4285 = vmatpush2.bf16.msra.mxu0 %v5917_v31  ;;  %v795_v31 = vld [vmem:[#allocation10 + $0x1b8] sm:$0xff] }
 0x26d   :  { %4326 = vmatpush2.bf16.msra.mxu1 %v6045_v32  ;;  %4286 = vmatprep.subr.bf16.mxu0 %v5910_v33  ;;  %v1265_v32 = vrot.slane %v6856_v5, %v6732_v20  ;;  %v5615_v33 = vcombine.low %v799_v12, %v803_v13  ;;  %v5608_v42 = vcombine.high %v791_v30, %v795_v31  ;;  %v871_v49 = vld [vmem:[#allocation10 + $0x418] sm:$0xff] }
 0x26e   :  { %4327 = vmatprep.subr.bf16.mxu1 %v6038_v34  ;;  %v919_v34 = vld [vmem:[#allocation10 + $0x598] sm:$0xff]  ;;  %v5607_v52 = vcombine.low %v791_v30, %v795_v31  ;;  %v5591_v12 = vcombine.low %v775_v60, %v779_v61 }
 0x26f   :  { %v5735_v21 = vcombine.low %v919_v34, %v923_v36 }
 0x270   :  { %4287 = vmatpush2.bf16.msra.mxu0 %v5909_v43  ;;  %v783_v43 = vld [vmem:[#allocation10 + $0x158] sm:$0xff] }
 0x271   :  { %4328 = vmatpush2.bf16.msra.mxu1 %v6037_v45  ;;  %4288 = vmatprep.subr.bf16.mxu0 %v5902_v28  ;;  %v787_v45 = vld [vmem:[#allocation10 + $0x178] sm:$0xff] }
 0x272   :  { %4329 = vmatprep.subr.bf16.mxu1 %v6030_v46  ;;  %v5736_v46 = vcombine.high %v919_v34, %v923_v36  ;;  %v5600_v5 = vcombine.high %v783_v43, %v787_v45  ;;  %v751_v34 = vld [vmem:[#allocation10 + $0x58] sm:$0xff] }
 0x273   :  { %v755_v36 = vld [vmem:[#allocation10 + $0x78] sm:$0xff] }
 0x274   :  { %4289 = vmatpush2.bf16.msra.mxu0 %v5901_v53 }
 0x275   :  { %4330 = vmatpush2.bf16.msra.mxu1 %v6029_v47  ;;  %4290 = vmatprep.subr.bf16.mxu0 %v5894_v54 }
 0x276   :  { %4331 = vmatprep.subr.bf16.mxu1 %v6022_v55 }
 0x278   :  { %4291 = vmatpush2.bf16.msra.mxu0 %v5893_v11  ;;  %v903_v11 = vld [vmem:[#allocation10 + $0x518] sm:$0xff] }
 0x279   :  { %4332 = vmatpush2.bf16.msra.mxu1 %v6021_v10  ;;  %4292 = vmatprep.subr.bf16.mxu0 %v5886_v24  ;;  %v907_v10 = vld [vmem:[#allocation10 + $0x538] sm:$0xff] }
 0x27a   :  { %4333 = vmatprep.subr.bf16.mxu1 %v6014_v0  ;;  %v5599_v0 = vcombine.low %v783_v43, %v787_v45  ;;  %v5720_v1 = vcombine.high %v903_v11, %v907_v10  ;;  %v5719_v13 = vcombine.low %v903_v11, %v907_v10  ;;  %v5568_v45 = vcombine.high %v751_v34, %v755_v36  ;;  %v855_v10 = vld [vmem:[#allocation10 + $0x398] sm:$0xff] }
 0x27c   :  { %4293 = vmatpush2.bf16.msra.mxu0 %v5885_v2  ;;  %v767_v2 = vld [vmem:[#allocation10 + $0xd8] sm:$0xff] }
 0x27d   :  { %4334 = vmatpush2.bf16.msra.mxu1 %v6013_v3  ;;  %4294 = vmatprep.subr.bf16.mxu0 %v5878_v4  ;;  %v771_v3 = vld [vmem:[#allocation10 + $0xf8] sm:$0xff] }
 0x27e   :  { %4335 = vmatprep.subr.bf16.mxu1 %v6006_v9  ;;  %v895_v4 = vld [vmem:[#allocation10 + $0x4d8] sm:$0xff]  ;;  %v5584_v14 = vcombine.high %v767_v2, %v771_v3  ;;  %v5583_v30 = vcombine.low %v767_v2, %v771_v3 }
 0x27f   :  { %v899_v9 = vld [vmem:[#allocation10 + $0x4f8] sm:$0xff] }
 0x280   :  { %4295 = vmatpush2.bf16.msra.mxu0 %v5877_v25  ;;  %v5712_v17 = vcombine.high %v895_v4, %v899_v9  ;;  %v759_v25 = vld [vmem:[#allocation10 + $0x98] sm:$0xff]  ;;  %v5711_v31 = vcombine.low %v895_v4, %v899_v9 }
 0x281   :  { %4336 = vmatpush2.bf16.msra.mxu1 %v6005_v26  ;;  %4346 = vmatprep.subr.bf16.mxu0 %v5616_v27  ;;  %v763_v26 = vld [vmem:[#allocation10 + $0xb8] sm:$0xff] }
 0x282   :  { %4387 = vmatprep.subr.bf16.mxu1 %v5744_v29  ;;  %v887_v27 = vld [vmem:[#allocation10 + $0x498] sm:$0xff] }
 0x283   :  { %v4052_v28 = vpop.f32.mrf.mxu0  ;;  %4297 = vmatmul.mubr.bf16.vlgmr.msra.gmra.mxu0 %v6844_v7  ;;  %v891_v29 = vld [vmem:[#allocation10 + $0x4b8] sm:$0xff] }
 0x284   :  { %v4053_v20 = vadd.f32 %v4052_v28, %v1265_v32  ;;  %v4093_v50 = vpop.f32.mrf.mxu1  ;;  %4338 = vmatmul.mubr.bf16.vlgmr.msra.gmra.mxu1 %v6846_v8  ;;  %4347 = vmatpush1.bf16.msra.mxu0 %v5615_v33  ;;  %v5576_v32 = vcombine.high %v759_v25, %v763_v26  ;;  %v5704_v33 = vcombine.high %v887_v27, %v891_v29  ;;  %v847_v2 = vld [vmem:[#allocation10 + $0x358] sm:$0xff] }
 0x285   :  { %4378 = vmatprep.mubr.bf16.mxu0 %v6784_v35  ;;  %4388 = vmatpush1.bf16.msra.mxu1 %v5743_v38  ;;  %v4054_v53 = vpop.f32.mrf.mxu0  ;;  %v879_v38 = vld [vmem:[#allocation10 + $0x458] sm:$0xff]  ;;  %v5703_v43 = vcombine.low %v887_v27, %v891_v29 }
 0x286   :  { %v6887_v47 = vadd.f32 %v4093_v50, %v4053_v20  ;;  %4419 = vmatprep.mubr.bf16.mxu1 %v6790_v41  ;;  %v4055_v54 = vadd.f32 %v4054_v53, %v1269_v39  ;;  %v4095_v55 = vpop.f32.mrf.mxu1  ;;  %4348 = vmatprep.subr.bf16.mxu0 %v5608_v42  ;;  %v5592_v41 = vcombine.high %v775_v60, %v779_v61  ;;  %v883_v39 = vld [vmem:[#allocation10 + $0x478] sm:$0xff] }
 0x287   :  { %v4056_v6 = vpop.f32.mrf.mxu0  ;;  %4389 = vmatprep.subr.bf16.mxu1 %v5736_v46  ;;  %v5575_v42 = vcombine.low %v759_v25, %v763_v26  ;;  %v5696_v28 = vcombine.high %v879_v38, %v883_v39  ;;  %v743_v46 = vld [vmem:[#allocation10 + $0x18] sm:$0xff]  ;;  %v5567_v50 = vcombine.low %v751_v34, %v755_v36 }
 0x288   :  { %v6890_v24 = vadd.f32 %v4095_v55, %v4055_v54  ;;  %v4097_v35 = vpop.f32.mrf.mxu1  ;;  %4349 = vmatpush1.bf16.msra.mxu0 %v5607_v52  ;;  %v875_v20 = vld [vmem:[#allocation10 + $0x438] sm:$0xff]  ;;  %v5695_v52 = vcombine.low %v879_v38, %v883_v39  ;;  %v5560_v53 = vcombine.high %v743_v46, %v747_v48  ;;  %v5559_v60 = vcombine.low %v743_v46, %v747_v48 }
 0x289   :  { %4390 = vmatpush1.bf16.msra.mxu1 %v5735_v21  ;;  %v4057_v57 = vpop.f32.mrf.mxu0  ;;  %4350 = vmatprep.subr.bf16.mxu0 %v5600_v5  ;;  %v5688_v21 = vcombine.high %v871_v49, %v875_v20  ;;  %v863_v5 = vld [vmem:[#allocation10 + $0x3d8] sm:$0xff]  ;;  %v5687_v61 = vcombine.low %v871_v49, %v875_v20 }
 0x28a   :  { %v4098_v63 = vpop.f32.mrf.mxu1  ;;  %4391 = vmatprep.subr.bf16.mxu1 %v5728_v58  ;;  %v867_v54 = vld [vmem:[#allocation10 + $0x3f8] sm:$0xff] }
 0x28b   :  { %v991_v55 = vld [vmem:[#allocation10 + $0x7d8] sm:$0xff]  ;;  %v5680_v6 = vcombine.high %v863_v5, %v867_v54 }
 0x28c   :  { %4351 = vmatpush1.bf16.msra.mxu0 %v5599_v0  ;;  %v995_v58 = vld [vmem:[#allocation10 + $0x7f8] sm:$0xff] }
 0x28d   :  { %4392 = vmatpush1.bf16.msra.mxu1 %v5727_v37  ;;  %4352 = vmatprep.subr.bf16.mxu0 %v5592_v41  ;;  %v5808_v11 = vcombine.high %v991_v55, %v995_v58  ;;  %v859_v35 = vld [vmem:[#allocation10 + $0x3b8] sm:$0xff]  ;;  %v5679_v37 = vcombine.low %v863_v5, %v867_v54  ;;  %v5807_v41 = vcombine.low %v991_v55, %v995_v58 }
 0x28e   :  { %4393 = vmatprep.subr.bf16.mxu1 %v5720_v1  ;;  %v983_v0 = vld [vmem:[#allocation10 + $0x798] sm:$0xff]  ;;  %v5672_v63 = vcombine.high %v855_v10, %v859_v35 }
 0x28f   :  { %v987_v57 = vld [vmem:[#allocation10 + $0x7b8] sm:$0xff] }
 0x290   :  { %4353 = vmatpush1.bf16.msra.mxu0 %v5591_v12  ;;  %v5800_v1 = vcombine.high %v983_v0, %v987_v57  ;;  %v851_v3 = vld [vmem:[#allocation10 + $0x378] sm:$0xff]  ;;  %v5671_v12 = vcombine.low %v855_v10, %v859_v35 }
 0x291   :  { %4394 = vmatpush1.bf16.msra.mxu1 %v5719_v13  ;;  %4354 = vmatprep.subr.bf16.mxu0 %v5584_v14  ;;  %v975_v4 = vld [vmem:[#allocation10 + $0x758] sm:$0xff]  ;;  %v5799_v13 = vcombine.low %v983_v0, %v987_v57  ;;  %v5664_v14 = vcombine.high %v847_v2, %v851_v3 }
 0x292   :  { %4395 = vmatprep.subr.bf16.mxu1 %v5712_v17  ;;  %v979_v9 = vld [vmem:[#allocation10 + $0x778] sm:$0xff] }
 0x293   :  { %v5792_v17 = vcombine.high %v975_v4, %v979_v9  ;;  %v839_v25 = vld [vmem:[#allocation10 + $0x318] sm:$0xff] }
 0x294   :  { %4355 = vmatpush1.bf16.msra.mxu0 %v5583_v30  ;;  %v843_v26 = vld [vmem:[#allocation10 + $0x338] sm:$0xff]  ;;  %v5663_v30 = vcombine.low %v847_v2, %v851_v3 }
 0x295   :  { %4396 = vmatpush1.bf16.msra.mxu1 %v5711_v31  ;;  %4356 = vmatprep.subr.bf16.mxu0 %v5576_v32  ;;  %v967_v27 = vld [vmem:[#allocation10 + $0x718] sm:$0xff]  ;;  %v5791_v31 = vcombine.low %v975_v4, %v979_v9  ;;  %v5656_v32 = vcombine.high %v839_v25, %v843_v26 }
 0x296   :  { %4397 = vmatprep.subr.bf16.mxu1 %v5704_v33  ;;  %v971_v29 = vld [vmem:[#allocation10 + $0x738] sm:$0xff] }
 0x297   :  { %v5784_v33 = vcombine.high %v967_v27, %v971_v29  ;;  %v831_v34 = vld [vmem:[#allocation10 + $0x2d8] sm:$0xff] }
 0x298   :  { %4357 = vmatpush1.bf16.msra.mxu0 %v5575_v42  ;;  %v835_v36 = vld [vmem:[#allocation10 + $0x2f8] sm:$0xff]  ;;  %v5655_v42 = vcombine.low %v839_v25, %v843_v26 }
 0x299   :  { %4398 = vmatpush1.bf16.msra.mxu1 %v5703_v43  ;;  %4358 = vmatprep.subr.bf16.mxu0 %v5568_v45  ;;  %v959_v38 = vld [vmem:[#allocation10 + $0x6d8] sm:$0xff]  ;;  %v5783_v43 = vcombine.low %v967_v27, %v971_v29  ;;  %v5648_v45 = vcombine.high %v831_v34, %v835_v36 }
 0x29a   :  { %4399 = vmatprep.subr.bf16.mxu1 %v5696_v28  ;;  %v963_v39 = vld [vmem:[#allocation10 + $0x6f8] sm:$0xff] }
 0x29b   :  { %v5776_v28 = vcombine.high %v959_v38, %v963_v39  ;;  %v823_v46 = vld [vmem:[#allocation10 + $0x298] sm:$0xff] }
 0x29c   :  { %4359 = vmatpush1.bf16.msra.mxu0 %v5567_v50  ;;  %v827_v48 = vld [vmem:[#allocation10 + $0x2b8] sm:$0xff]  ;;  %v5647_v50 = vcombine.low %v831_v34, %v835_v36 }
 0x29d   :  { %4400 = vmatpush1.bf16.msra.mxu1 %v5695_v52  ;;  %4360 = vmatprep.subr.bf16.mxu0 %v5560_v53  ;;  %v951_v49 = vld [vmem:[#allocation10 + $0x698] sm:$0xff]  ;;  %v5775_v52 = vcombine.low %v959_v38, %v963_v39  ;;  %v5640_v53 = vcombine.high %v823_v46, %v827_v48 }
 0x29e   :  { %4401 = vmatprep.subr.bf16.mxu1 %v5688_v21  ;;  %v955_v20 = vld [vmem:[#allocation10 + $0x6b8] sm:$0xff] }
 0x29f   :  { %v5768_v21 = vcombine.high %v951_v49, %v955_v20  ;;  %v815_v5 = vld [vmem:[#allocation10 + $0x258] sm:$0xff] }
 0x2a0   :  { %4361 = vmatpush1.bf16.msra.mxu0 %v5559_v60  ;;  %v819_v54 = vld [vmem:[#allocation10 + $0x278] sm:$0xff]  ;;  %v5639_v60 = vcombine.low %v823_v46, %v827_v48 }
 0x2a1   :  { %4402 = vmatpush1.bf16.msra.mxu1 %v5687_v61  ;;  %4362 = vmatprep.subr.bf16.mxu0 %v5680_v6  ;;  %v943_v55 = vld [vmem:[#allocation10 + $0x658] sm:$0xff]  ;;  %v5767_v61 = vcombine.low %v951_v49, %v955_v20  ;;  %v5632_v6 = vcombine.high %v815_v5, %v819_v54 }
 0x2a2   :  { %4403 = vmatprep.subr.bf16.mxu1 %v5808_v11  ;;  %v947_v58 = vld [vmem:[#allocation10 + $0x678] sm:$0xff] }
 0x2a3   :  { %v5760_v11 = vcombine.high %v943_v55, %v947_v58  ;;  %v807_v10 = vld [vmem:[#allocation10 + $0x218] sm:$0xff] }
 0x2a4   :  { %4363 = vmatpush2.bf16.msra.mxu0 %v5679_v37  ;;  %v811_v35 = vld [vmem:[#allocation10 + $0x238] sm:$0xff]  ;;  %v5631_v37 = vcombine.low %v815_v5, %v819_v54 }
 0x2a5   :  { %4404 = vmatpush2.bf16.msra.mxu1 %v5807_v41  ;;  %4364 = vmatprep.subr.bf16.mxu0 %v5672_v63  ;;  %v935_v0 = vld [vmem:[#allocation10 + $0x618] sm:$0xff]  ;;  %v5759_v41 = vcombine.low %v943_v55, %v947_v58  ;;  %v5624_v63 = vcombine.high %v807_v10, %v811_v35 }
 0x2a6   :  { %4405 = vmatprep.subr.bf16.mxu1 %v5800_v1  ;;  %v939_v57 = vld [vmem:[#allocation10 + $0x638] sm:$0xff] }
 0x2a7   :  { %v5752_v1 = vcombine.high %v935_v0, %v939_v57  ;;  %v1055_v2 = vld [vmem:[#allocation10 + $0x9d8] sm:$0xff] }
 0x2a8   :  { %4365 = vmatpush2.bf16.msra.mxu0 %v5671_v12  ;;  %v1059_v3 = vld [vmem:[#allocation10 + $0x9f8] sm:$0xff]  ;;  %v5623_v12 = vcombine.low %v807_v10, %v811_v35 }
 0x2a9   :  { %4406 = vmatpush2.bf16.msra.mxu1 %v5799_v13  ;;  %4366 = vmatprep.subr.bf16.mxu0 %v5664_v14  ;;  %v1183_v4 = vld [vmem:[#allocation10 + $0xdd8] sm:$0xff]  ;;  %v5751_v13 = vcombine.low %v935_v0, %v939_v57  ;;  %v5872_v14 = vcombine.high %v1055_v2, %v1059_v3  ;;  %v5871_v27 = vcombine.low %v1055_v2, %v1059_v3 }
 0x2aa   :  { %4407 = vmatprep.subr.bf16.mxu1 %v5792_v17  ;;  %v1187_v9 = vld [vmem:[#allocation10 + $0xdf8] sm:$0xff] }
 0x2ab   :  { %v6000_v17 = vcombine.high %v1183_v4, %v1187_v9  ;;  %v1047_v25 = vld [vmem:[#allocation10 + $0x998] sm:$0xff] }
 0x2ac   :  { %4367 = vmatpush2.bf16.msra.mxu0 %v5663_v30  ;;  %v1051_v26 = vld [vmem:[#allocation10 + $0x9b8] sm:$0xff] }
 0x2ad   :  { %4408 = vmatpush2.bf16.msra.mxu1 %v5791_v31  ;;  %4368 = vmatprep.subr.bf16.mxu0 %v5656_v32  ;;  %v1175_v29 = vld [vmem:[#allocation10 + $0xd98] sm:$0xff]  ;;  %v5999_v31 = vcombine.low %v1183_v4, %v1187_v9  ;;  %v5864_v32 = vcombine.high %v1047_v25, %v1051_v26 }
 0x2ae   :  { %4409 = vmatprep.subr.bf16.mxu1 %v5784_v33  ;;  %v1179_v30 = vld [vmem:[#allocation10 + $0xdb8] sm:$0xff] }
 0x2af   :  { %v1039_v33 = vld [vmem:[#allocation10 + $0x958] sm:$0xff]  ;;  %v5992_v38 = vcombine.high %v1175_v29, %v1179_v30  ;;  %v5991_v48 = vcombine.low %v1175_v29, %v1179_v30 }
 0x2b0   :  { %4369 = vmatpush2.bf16.msra.mxu0 %v5655_v42  ;;  %v1043_v34 = vld [vmem:[#allocation10 + $0x978] sm:$0xff] }
 0x2b1   :  { %4410 = vmatpush2.bf16.msra.mxu1 %v5783_v43  ;;  %4370 = vmatprep.subr.bf16.mxu0 %v5648_v45  ;;  %v1167_v39 = vld [vmem:[#allocation10 + $0xd58] sm:$0xff]  ;;  %v5856_v49 = vcombine.high %v1039_v33, %v1043_v34  ;;  %v5855_v5 = vcombine.low %v1039_v33, %v1043_v34 }
 0x2b2   :  { %4411 = vmatprep.subr.bf16.mxu1 %v5776_v28  ;;  %v1171_v42 = vld [vmem:[#allocation10 + $0xd78] sm:$0xff]  ;;  %v5863_v28 = vcombine.low %v1047_v25, %v1051_v26 }
 0x2b3   :  { %v5983_v55 = vcombine.low %v1167_v39, %v1171_v42  ;;  %v1155_v10 = vld [vmem:[#allocation10 + $0xcf8] sm:$0xff] }
 0x2b4   :  { %4371 = vmatpush2.bf16.msra.mxu0 %v5647_v50  ;;  %v1031_v50 = vld [vmem:[#allocation10 + $0x918] sm:$0xff] }
 0x2b5   :  { %4412 = vmatpush2.bf16.msra.mxu1 %v5775_v52  ;;  %4372 = vmatprep.subr.bf16.mxu0 %v5640_v53  ;;  %v1035_v52 = vld [vmem:[#allocation10 + $0x938] sm:$0xff] }
 0x2b6   :  { %4413 = vmatprep.subr.bf16.mxu1 %v5768_v21  ;;  %v1159_v53 = vld [vmem:[#allocation10 + $0xd18] sm:$0xff]  ;;  %v5848_v58 = vcombine.high %v1031_v50, %v1035_v52  ;;  %v5847_v35 = vcombine.low %v1031_v50, %v1035_v52 }
 0x2b7   :  { %v1163_v21 = vld [vmem:[#allocation10 + $0xd38] sm:$0xff] }
 0x2b8   :  { %4373 = vmatpush2.bf16.msra.mxu0 %v5639_v60  ;;  %v5975_v0 = vcombine.low %v1159_v53, %v1163_v21  ;;  %v1147_v2 = vld [vmem:[#allocation10 + $0xcb8] sm:$0xff] }
 0x2b9   :  { %4414 = vmatpush2.bf16.msra.mxu1 %v5767_v61  ;;  %4374 = vmatprep.subr.bf16.mxu0 %v5632_v6  ;;  %v1023_v61 = vld [vmem:[#allocation10 + $0x8d8] sm:$0xff] }
 0x2ba   :  { %4415 = vmatprep.subr.bf16.mxu1 %v5760_v11  ;;  %v1027_v6 = vld [vmem:[#allocation10 + $0x8f8] sm:$0xff] }
 0x2bb   :  { %v1151_v11 = vld [vmem:[#allocation10 + $0xcd8] sm:$0xff]  ;;  %v5840_v57 = vcombine.high %v1023_v61, %v1027_v6  ;;  %v5839_v3 = vcombine.low %v1023_v61, %v1027_v6 }
 0x2bc   :  { %4375 = vmatpush2.bf16.msra.mxu0 %v5631_v37  ;;  %v5968_v37 = vcombine.high %v1151_v11, %v1155_v10  ;;  %v5967_v4 = vcombine.low %v1151_v11, %v1155_v10  ;;  %v1139_v25 = vld [vmem:[#allocation10 + $0xc78] sm:$0xff] }
 0x2bd   :  { %4416 = vmatpush2.bf16.msra.mxu1 %v5759_v41  ;;  %4376 = vmatprep.subr.bf16.mxu0 %v5624_v63  ;;  %v1015_v41 = vld [vmem:[#allocation10 + $0x898] sm:$0xff] }
 0x2be   :  { %4417 = vmatprep.subr.bf16.mxu1 %v5752_v1  ;;  %v1019_v63 = vld [vmem:[#allocation10 + $0x8b8] sm:$0xff] }
 0x2bf   :  { %v1143_v1 = vld [vmem:[#allocation10 + $0xc98] sm:$0xff]  ;;  %v5832_v9 = vcombine.high %v1015_v41, %v1019_v63  ;;  %v5831_v26 = vcombine.low %v1015_v41, %v1019_v63 }
 0x2c0   :  { %4377 = vmatpush2.bf16.msra.mxu0 %v5623_v12  ;;  %v5960_v12 = vcombine.high %v1143_v1, %v1147_v2  ;;  %v1127_v33 = vld [vmem:[#allocation10 + $0xc18] sm:$0xff] }
 0x2c1   :  { %4418 = vmatpush2.bf16.msra.mxu1 %v5751_v13  ;;  %4428 = vmatprep.subr.bf16.mxu0 %v5872_v14  ;;  %v1007_v13 = vld [vmem:[#allocation10 + $0x858] sm:$0xff] }
 0x2c2   :  { %4469 = vmatprep.subr.bf16.mxu1 %v6000_v17  ;;  %v1011_v14 = vld [vmem:[#allocation10 + $0x878] sm:$0xff] }
 0x2c3   :  { %v4134_v36 = vpop.f32.mrf.mxu0  ;;  %4379 = vmatmul.mubr.bf16.vlgmr.msra.gmra.mxu0 %v6788_v40  ;;  %v1135_v17 = vld [vmem:[#allocation10 + $0xc58] sm:$0xff]  ;;  %v5824_v29 = vcombine.high %v1007_v13, %v1011_v14 }
 0x2c4   :  { %v4135_v43 = vadd.f32 %v4134_v36, %v6887_v47  ;;  %v4175_v45 = vpop.f32.mrf.mxu1  ;;  %4420 = vmatmul.mubr.bf16.vlgmr.msra.gmra.mxu1 %v6793_v44  ;;  %4429 = vmatpush1.bf16.msra.mxu0 %v5871_v27  ;;  %v5984_v47 = vcombine.high %v1167_v39, %v1171_v42  ;;  %v5959_v27 = vcombine.low %v1143_v1, %v1147_v2  ;;  %v1131_v34 = vld [vmem:[#allocation10 + $0xc38] sm:$0xff] }
 0x2c5   :  { %4460 = vmatprep.mubr.bf16.mxu0 %v6832_v56  ;;  %4470 = vmatpush1.bf16.msra.mxu1 %v5999_v31  ;;  %v6896_v46 = vpop.f32.mrf.mxu0  ;;  %v5952_v30 = vcombine.high %v1135_v17, %v1139_v25  ;;  %v999_v31 = vld [vmem:[#allocation10 + $0x818] sm:$0xff]  ;;  %v5823_v36 = vcombine.low %v1007_v13, %v1011_v14  ;;  %v5944_v42 = vcombine.high %v1127_v33, %v1131_v34 }
 0x2c6   :  { %v6898_v20 = vadd.f32 %v4175_v45, %v4135_v43  ;;  %4501 = vmatprep.mubr.bf16.mxu1 %v6834_v59  ;;  %v6901_v40 = vpop.f32.mrf.mxu1  ;;  %4430 = vmatprep.subr.bf16.mxu0 %v5864_v32  ;;  %v5976_v59 = vcombine.high %v1159_v53, %v1163_v21  ;;  %v1003_v32 = vld [vmem:[#allocation10 + $0x838] sm:$0xff] }
 0x2c7   :  { %v4138_v44 = vpop.f32.mrf.mxu0  ;;  %4471 = vmatprep.subr.bf16.mxu1 %v5992_v38  ;;  %v5951_v38 = vcombine.low %v1135_v17, %v1139_v25  ;;  %v5816_v39 = vcombine.high %v999_v31, %v1003_v32  ;;  %v1119_v43 = vld [vmem:[#allocation10 + $0xbd8] sm:$0xff] }
 0x2c8   :  { %v4179_v56 = vpop.f32.mrf.mxu1  ;;  %4431 = vmatpush1.bf16.msra.mxu0 %v5863_v28  ;;  %v1123_v45 = vld [vmem:[#allocation10 + $0xbf8] sm:$0xff]  ;;  %vm4512_vm14 = vcmp.ge.f32.partialorder %v6898_v20, 0.0 }
 0x2c9   :  { %4472 = vmatpush1.bf16.msra.mxu1 %v5991_v48  ;;  %v4139_v54 = vpop.f32.mrf.mxu0  ;;  %4432 = vmatprep.subr.bf16.mxu0 %v5856_v49  ;;  %v1247_v28 = vld [vmem:[#allocation10 + $0xfd8] sm:$0xff]  ;;  %v5815_v49 = vcombine.low %v999_v31, %v1003_v32  ;;  %v5936_v50 = vcombine.high %v1119_v43, %v1123_v45 }
 0x2ca   :  { %v4180_v60 = vpop.f32.mrf.mxu1  ;;  %4473 = vmatprep.subr.bf16.mxu1 %v5984_v47  ;;  %v1251_v48 = vld [vmem:[#allocation10 + $0xff8] sm:$0xff]  ;;  %v5943_v47 = vcombine.low %v1127_v33, %v1131_v34 }
 0x2cb   :  { %v6064_v52 = vcombine.high %v1247_v28, %v1251_v48  ;;  %v1111_v44 = vld [vmem:[#allocation10 + $0xb98] sm:$0xff]  ;;  %v6063_v54 = vcombine.low %v1247_v28, %v1251_v48  ;;  %v4137_v48 = vadd.f32 %v6896_v46, %v6890_v24  ;;  %v4519_v46 = vmul.f32 0.02, %v6878_v62 }
 0x2cc   :  { %4433 = vmatpush1.bf16.msra.mxu0 %v5855_v5  ;;  %v1115_v53 = vld [vmem:[#allocation10 + $0xbb8] sm:$0xff]  ;;  %v5935_v5 = vcombine.low %v1119_v43, %v1123_v45 }
 0x2cd   :  { %4474 = vmatpush1.bf16.msra.mxu1 %v5983_v55  ;;  %4434 = vmatprep.subr.bf16.mxu0 %v5848_v58  ;;  %v1239_v21 = vld [vmem:[#allocation10 + $0xf98] sm:$0xff]  ;;  %v5928_v55 = vcombine.high %v1111_v44, %v1115_v53  ;;  %v5927_v11 = vcombine.low %v1111_v44, %v1115_v53 }
 0x2ce   :  { %4475 = vmatprep.subr.bf16.mxu1 %v5976_v59  ;;  %v1243_v56 = vld [vmem:[#allocation10 + $0xfb8] sm:$0xff] }
 0x2cf   :  { %v6056_v58 = vcombine.high %v1239_v21, %v1243_v56  ;;  %v1103_v60 = vld [vmem:[#allocation10 + $0xb58] sm:$0xff]  ;;  %v6055_v10 = vcombine.low %v1239_v21, %v1243_v56 }
 0x2d0   :  { %4435 = vmatpush1.bf16.msra.mxu0 %v5847_v35  ;;  %v1107_v59 = vld [vmem:[#allocation10 + $0xb78] sm:$0xff] }
 0x2d1   :  { %4476 = vmatpush1.bf16.msra.mxu1 %v5975_v0  ;;  %4436 = vmatprep.subr.bf16.mxu0 %v5840_v57  ;;  %v1231_v61 = vld [vmem:[#allocation10 + $0xf58] sm:$0xff]  ;;  %v5920_v35 = vcombine.high %v1103_v60, %v1107_v59  ;;  %v5919_v1 = vcombine.low %v1103_v60, %v1107_v59 }
 0x2d2   :  { %4477 = vmatprep.subr.bf16.mxu1 %v5968_v37  ;;  %v1235_v6 = vld [vmem:[#allocation10 + $0xf78] sm:$0xff] }
 0x2d3   :  { %v6048_v0 = vcombine.high %v1231_v61, %v1235_v6  ;;  %v1095_v57 = vld [vmem:[#allocation10 + $0xb18] sm:$0xff]  ;;  %v6047_v2 = vcombine.low %v1231_v61, %v1235_v6  ;;  %v6908_v6 = vld [vmem:[#allocation11] sm:$0xff] }
 0x2d4   :  { %4437 = vmatpush1.bf16.msra.mxu0 %v5839_v3  ;;  %v1099_v37 = vld [vmem:[#allocation10 + $0xb38] sm:$0xff] }
 0x2d5   :  { %4478 = vmatpush1.bf16.msra.mxu1 %v5967_v4  ;;  %4438 = vmatprep.subr.bf16.mxu0 %v5832_v9  ;;  %v1223_v41 = vld [vmem:[#allocation10 + $0xf18] sm:$0xff]  ;;  %v5912_v3 = vcombine.high %v1095_v57, %v1099_v37  ;;  %v5911_v17 = vcombine.low %v1095_v57, %v1099_v37  ;;  %v6216_v37 = vld [vmem:[#allocation13 + $0x64] ss:$8 sps:$4 sm:$0xff]  }
 0x2d6   :  { %4479 = vmatprep.subr.bf16.mxu1 %v5960_v12  ;;  %v1227_v63 = vld [vmem:[#allocation10 + $0xf38] sm:$0xff] }
 0x2d7   :  { %v6040_v4 = vcombine.high %v1223_v41, %v1227_v63  ;;  %v1087_v9 = vld [vmem:[#allocation10 + $0xad8] sm:$0xff]  ;;  %v6039_v25 = vcombine.low %v1223_v41, %v1227_v63 }
 0x2d8   :  { %4439 = vmatpush1.bf16.msra.mxu0 %v5831_v26  ;;  %v1091_v12 = vld [vmem:[#allocation10 + $0xaf8] sm:$0xff] }
 0x2d9   :  { %4480 = vmatpush1.bf16.msra.mxu1 %v5959_v27  ;;  %4440 = vmatprep.subr.bf16.mxu0 %v5824_v29  ;;  %v1215_v13 = vld [vmem:[#allocation10 + $0xed8] sm:$0xff]  ;;  %v5904_v26 = vcombine.high %v1087_v9, %v1091_v12  ;;  %v5903_v33 = vcombine.low %v1087_v9, %v1091_v12  ;;  %v6217_v9 = vld [vmem:[#allocation13 + $0x160] ss:$8 sps:$4 sm:$0xff]  }
 0x2da   :  { %4481 = vmatprep.subr.bf16.mxu1 %v5952_v30  ;;  %v1219_v14 = vld [vmem:[#allocation10 + $0xef8] sm:$0xff] }
 0x2db   :  { %v6032_v27 = vcombine.high %v1215_v13, %v1219_v14  ;;  %v1079_v29 = vld [vmem:[#allocation10 + $0xa98] sm:$0xff]  ;;  %v6031_v34 = vcombine.low %v1215_v13, %v1219_v14 }
 0x2dc   :  { %4441 = vmatpush1.bf16.msra.mxu0 %v5823_v36  ;;  %v1083_v30 = vld [vmem:[#allocation10 + $0xab8] sm:$0xff] }
 0x2dd   :  { %4482 = vmatpush1.bf16.msra.mxu1 %v5951_v38  ;;  %4442 = vmatprep.subr.bf16.mxu0 %v5816_v39  ;;  %v1207_v31 = vld [vmem:[#allocation10 + $0xe98] sm:$0xff]  ;;  %v5896_v36 = vcombine.high %v1079_v29, %v1083_v30  ;;  %v5895_v28 = vcombine.low %v1079_v29, %v1083_v30  ;;  %v6228_v29 = vld [vmem:[#allocation13 + $0x44] ss:$8 sps:$4 sm:$0xff]  }
 0x2de   :  { %4483 = vmatprep.subr.bf16.mxu1 %v5944_v42  ;;  %v1211_v32 = vld [vmem:[#allocation10 + $0xeb8] sm:$0xff] }
 0x2df   :  { %v6024_v38 = vcombine.high %v1207_v31, %v1211_v32  ;;  %v1071_v39 = vld [vmem:[#allocation10 + $0xa58] sm:$0xff] }
 0x2e0   :  { %4443 = vmatpush1.bf16.msra.mxu0 %v5815_v49  ;;  %v1075_v42 = vld [vmem:[#allocation10 + $0xa78] sm:$0xff]  ;;  %v6023_v49 = vcombine.low %v1207_v31, %v1211_v32  ;;  %v6231_v31 = vld [vmem:[#allocation13 + $0x144] ss:$8 sps:$4 sm:$0xff]   ;;  %v6226_v32 = vld [vmem:[#allocation13 + $0x40] ss:$8 sps:$4 sm:$0xff]  }
 0x2e1   :  { %4484 = vmatpush1.bf16.msra.mxu1 %v5943_v47  ;;  %4444 = vmatprep.subr.bf16.mxu0 %v5936_v50  ;;  %v1199_v43 = vld [vmem:[#allocation10 + $0xe58] sm:$0xff]  ;;  %v5888_v47 = vcombine.high %v1071_v39, %v1075_v42  ;;  %v5887_v56 = vcombine.low %v1071_v39, %v1075_v42  ;;  %v6240_v42 = vld [vmem:[#allocation13 + $0x24] ss:$8 sps:$4 sm:$0xff]  }
 0x2e2   :  { %4485 = vmatprep.subr.bf16.mxu1 %v6064_v52  ;;  %v1203_v45 = vld [vmem:[#allocation10 + $0xe78] sm:$0xff] }
 0x2e3   :  { %v6016_v50 = vcombine.high %v1199_v43, %v1203_v45  ;;  %v1063_v52 = vld [vmem:[#allocation10 + $0xa18] sm:$0xff] }
 0x2e4   :  { %4445 = vmatpush2.bf16.msra.mxu0 %v5935_v5  ;;  %v1067_v44 = vld [vmem:[#allocation10 + $0xa38] sm:$0xff]  ;;  %v4178_v5 = vadd.f32 %v6901_v40, %v4137_v48 }
 0x2e5   :  { %4486 = vmatpush2.bf16.msra.mxu1 %v6063_v54  ;;  %4446 = vmatprep.subr.bf16.mxu0 %v5928_v55  ;;  %v1191_v53 = vld [vmem:[#allocation10 + $0xe18] sm:$0xff]  ;;  %v6015_v54 = vcombine.low %v1199_v43, %v1203_v45  ;;  %v5880_v55 = vcombine.high %v1063_v52, %v1067_v44  ;;  %v6243_v43 = vld [vmem:[#allocation13 + $0x124] ss:$8 sps:$4 sm:$0xff]   ;;  %v6238_v45 = vld [vmem:[#allocation13 + $0x20] ss:$8 sps:$4 sm:$0xff]  }
 0x2e6   :  { %4487 = vmatprep.subr.bf16.mxu1 %v6056_v58  ;;  %v1195_v21 = vld [vmem:[#allocation10 + $0xe38] sm:$0xff]  ;;  %v5879_v58 = vcombine.low %v1063_v52, %v1067_v44  ;;  %v4521_v60 = vmul.f32 0.02, %v4178_v5  ;;  %vm4513_vm12 = vcmp.ge.f32.partialorder %v4178_v5, 0.0  ;;  %v6252_v52 = vld [vmem:[#allocation13 + $0x4] ss:$8 sps:$4 sm:$0xff]  }
 0x2e7   :  { %v6008_v24 = vcombine.high %v1191_v53, %v1195_v21  ;;  %v6007_v59 = vcombine.low %v1191_v53, %v1195_v21  ;;  %v6210_v61 = vld [vmem:[#allocation13 + $0x74] ss:$8 sps:$4 sm:$0xff]   ;;  %v6235_v39 = vld [vmem:[#allocation13 + $0x130] ss:$8 sps:$4 sm:$0xff]   ;;  %v6255_v44 = vld [vmem:[#allocation13 + $0x104] ss:$8 sps:$4 sm:$0xff]  }
 0x2e8   :  { %4447 = vmatpush2.bf16.msra.mxu0 %v5927_v11  ;;  %v6213_v40 = vld [vmem:[#allocation13 + $0x174] ss:$8 sps:$4 sm:$0xff]   ;;  %v1273_v11 = vrot.slane %v6908_v6, %v6730_v19  ;;  %v4529_v57 = vsel %vm4513_vm12, %v4178_v5, %v4521_v60  ;;  %v6250_v53 = vld [vmem:[#allocation13] ss:$8 sps:$4 sm:$0xff]  }
 0x2e9   :  { %4488 = vmatpush2.bf16.msra.mxu1 %v6055_v10  ;;  %4448 = vmatprep.subr.bf16.mxu0 %v5920_v35  ;;  %v6208_v10 = vld [vmem:[#allocation13 + $0x70] ss:$8 sps:$4 sm:$0xff]   ;;  %v4527_v35 = vsel %vm4511_vm11, %v6878_v62, %v4519_v46  ;;  %v4537_v19 = vpack.c.bf16 %v4529_v57, %v4529_v57  ;;  %v6222_v12 = vld [vmem:[#allocation13 + $0x54] ss:$8 sps:$4 sm:$0xff]   ;;  %v6253_v21 = vld [vmem:[#allocation13 + $0x100] ss:$8 sps:$4 sm:$0xff]  }
 0x2ea   :  { %4489 = vmatprep.subr.bf16.mxu1 %v6048_v0  ;;  %v6211_v0 = vld [vmem:[#allocation13 + $0x170] ss:$8 sps:$4 sm:$0xff]   ;;  %v4535_v63 = vpack.c.bf16 %v4527_v35, %v4527_v35  ;;  %v6246_v48 = vld [vmem:[#allocation13 + $0x14] ss:$8 sps:$4 sm:$0xff]   ;;  %v6267_v46 = vld [vmem:[#allocation13 + $0x1e4] ss:$8 sps:$4 sm:$0xff]  }
 0x2eb   :  { %v6261_v5 = vld [vmem:[#allocation13 + $0x1f4] ss:$8 sps:$4 sm:$0xff]   ;;  %v6265_v60 = vld [vmem:[#allocation13 + $0x1e0] ss:$8 sps:$4 sm:$0xff]   ;;  %v6279_v35 = vld [vmem:[#allocation13 + $0x1c4] ss:$8 sps:$4 sm:$0xff]  }
 0x2ec   :  { %4449 = vmatpush2.bf16.msra.mxu0 %v5919_v1  ;;  %v6219_v1 = vld [vmem:[#allocation13 + $0x164] ss:$8 sps:$4 sm:$0xff]   ;;  %v6277_v57 = vld [vmem:[#allocation13 + $0x1c0] ss:$8 sps:$4 sm:$0xff]  }
 0x2ed   :  { %4490 = vmatpush2.bf16.msra.mxu1 %v6047_v2  ;;  %4450 = vmatprep.subr.bf16.mxu0 %v5912_v3 }
 0x2ee   :  { %4491 = vmatprep.subr.bf16.mxu1 %v6040_v4  ;;  %v6214_v4 = vld [vmem:[#allocation13 + $0x60] ss:$8 sps:$4 sm:$0xff]  }
 0x2f0   :  { %4451 = vmatpush2.bf16.msra.mxu0 %v5911_v17 }
 0x2f1   :  { %4492 = vmatpush2.bf16.msra.mxu1 %v6039_v25  ;;  %4452 = vmatprep.subr.bf16.mxu0 %v5904_v26 }
 0x2f2   :  { %4493 = vmatprep.subr.bf16.mxu1 %v6032_v27  ;;  %v6223_v27 = vld [vmem:[#allocation13 + $0x150] ss:$8 sps:$4 sm:$0xff]  }
 0x2f4   :  { %4453 = vmatpush2.bf16.msra.mxu0 %v5903_v33  ;;  %v6229_v33 = vld [vmem:[#allocation13 + $0x140] ss:$8 sps:$4 sm:$0xff]  }
 0x2f5   :  { %4494 = vmatpush2.bf16.msra.mxu1 %v6031_v34  ;;  %4454 = vmatprep.subr.bf16.mxu0 %v5896_v36  ;;  %v6234_v34 = vld [vmem:[#allocation13 + $0x34] ss:$8 sps:$4 sm:$0xff]  }
 0x2f6   :  { %4495 = vmatprep.subr.bf16.mxu1 %v6024_v38  ;;  %v6237_v36 = vld [vmem:[#allocation13 + $0x134] ss:$8 sps:$4 sm:$0xff]   ;;  %v6232_v38 = vld [vmem:[#allocation13 + $0x30] ss:$8 sps:$4 sm:$0xff]  }
 0x2f8   :  { %4455 = vmatpush2.bf16.msra.mxu0 %v5895_v28  ;;  %v6241_v28 = vld [vmem:[#allocation13 + $0x120] ss:$8 sps:$4 sm:$0xff]  }
 0x2f9   :  { %4496 = vmatpush2.bf16.msra.mxu1 %v6023_v49  ;;  %4456 = vmatprep.subr.bf16.mxu0 %v5888_v47  ;;  %v6249_v49 = vld [vmem:[#allocation13 + $0x114] ss:$8 sps:$4 sm:$0xff]   ;;  %v6244_v47 = vld [vmem:[#allocation13 + $0x10] ss:$8 sps:$4 sm:$0xff]  }
 0x2fa   :  { %4497 = vmatprep.subr.bf16.mxu1 %v6016_v50  ;;  %v6247_v50 = vld [vmem:[#allocation13 + $0x110] ss:$8 sps:$4 sm:$0xff]  }
 0x2fc   :  { %4457 = vmatpush2.bf16.msra.mxu0 %v5887_v56  ;;  %v6258_v56 = vld [vmem:[#allocation13 + $0xf4] ss:$8 sps:$4 sm:$0xff]  }
 0x2fd   :  { %4498 = vmatpush2.bf16.msra.mxu1 %v6015_v54  ;;  %4458 = vmatprep.subr.bf16.mxu0 %v5880_v55  ;;  %v6256_v54 = vld [vmem:[#allocation13 + $0xf0] ss:$8 sps:$4 sm:$0xff]  }
 0x2fe   :  { %4499 = vmatprep.subr.bf16.mxu1 %v6008_v24  ;;  %v6259_v55 = vld [vmem:[#allocation13 + $0x1f0] ss:$8 sps:$4 sm:$0xff]   ;;  %v6264_v24 = vld [vmem:[#allocation13 + $0xe4] ss:$8 sps:$4 sm:$0xff]  }
 0x300   :  { %4459 = vmatpush2.bf16.msra.mxu0 %v5879_v58  ;;  %v6262_v58 = vld [vmem:[#allocation13 + $0xe0] ss:$8 sps:$4 sm:$0xff]  }
 0x301   :  { %4500 = vmatpush2.bf16.msra.mxu1 %v6007_v59  ;;  %5322 = vmatprep.subr.bf16.mxu0 %v6210_v61  ;;  %v6270_v59 = vld [vmem:[#allocation13 + $0xd4] ss:$8 sps:$4 sm:$0xff]  }
 0x302   :  { %5363 = vmatprep.subr.bf16.mxu1 %v6213_v40  ;;  %v6273_v61 = vld [vmem:[#allocation13 + $0x1d4] ss:$8 sps:$4 sm:$0xff]   ;;  %v6268_v40 = vld [vmem:[#allocation13 + $0xd0] ss:$8 sps:$4 sm:$0xff]  }
 0x303   :  { %v4216_v41 = vpop.f32.mrf.mxu0  ;;  %4461 = vmatmul.mubr.bf16.vlgmr.msra.gmra.mxu0 %v6844_v7  ;;  %v6225_v7 = vld [vmem:[#allocation13 + $0x154] ss:$8 sps:$4 sm:$0xff]  }
 0x304   :  { %v4217_v2 = vadd.f32 %v4216_v41, %v1273_v11  ;;  %v4257_v3 = vpop.f32.mrf.mxu1  ;;  %4502 = vmatmul.mubr.bf16.vlgmr.msra.gmra.mxu1 %v6846_v8  ;;  %5323 = vmatpush1.bf16.msra.mxu0 %v6208_v10  ;;  %v6220_v8 = vld [vmem:[#allocation13 + $0x50] ss:$8 sps:$4 sm:$0xff]   ;;  %v6276_v10 = vld [vmem:[#allocation13 + $0xc4] ss:$8 sps:$4 sm:$0xff]   ;;  %v6285_v41 = vld [vmem:[#allocation13 + $0x1b4] ss:$8 sps:$4 sm:$0xff]  }
 0x305   :  { %5354 = vmatprep.mubr.bf16.mxu0 %v4535_v63  ;;  %5364 = vmatpush1.bf16.msra.mxu1 %v6211_v0  ;;  %v6915_v62 = vpop.f32.mrf.mxu0  ;;  %v6271_v11 = vld [vmem:[#allocation13 + $0x1d0] ss:$8 sps:$4 sm:$0xff]   ;;  %v6274_v0 = vld [vmem:[#allocation13 + $0xc0] ss:$8 sps:$4 sm:$0xff]  }
 0x306   :  { %v6917_v13 = vadd.f32 %v4257_v3, %v4217_v2  ;;  %5395 = vmatprep.mubr.bf16.mxu1 %v4537_v19  ;;  %v6919_v14 = vpop.f32.mrf.mxu1  ;;  %5324 = vmatprep.subr.bf16.mxu0 %v6216_v37  ;;  %v6282_v37 = vld [vmem:[#allocation13 + $0xb4] ss:$8 sps:$4 sm:$0xff]   ;;  %v6280_v63 = vld [vmem:[#allocation13 + $0xb0] ss:$8 sps:$4 sm:$0xff]   ;;  %v6288_v2 = vld [vmem:[#allocation13 + $0xa4] ss:$8 sps:$4 sm:$0xff]  }
 0x307   :  { %v4220_v17 = vpop.f32.mrf.mxu0  ;;  %5365 = vmatprep.subr.bf16.mxu1 %v6219_v1  ;;  %v6283_v1 = vld [vmem:[#allocation13 + $0x1b0] ss:$8 sps:$4 sm:$0xff]   ;;  %v6291_v3 = vld [vmem:[#allocation13 + $0x1a4] ss:$8 sps:$4 sm:$0xff]   ;;  %v6286_v19 = vld [vmem:[#allocation13 + $0xa0] ss:$8 sps:$4 sm:$0xff]  }
 0x308   :  { %v4261_v25 = vpop.f32.mrf.mxu1  ;;  %5325 = vmatpush1.bf16.msra.mxu0 %v6214_v4  ;;  %v6289_v4 = vld [vmem:[#allocation13 + $0x1a0] ss:$8 sps:$4 sm:$0xff]   ;;  %v6295_v17 = vld [vmem:[#allocation13 + $0x190] ss:$8 sps:$4 sm:$0xff]  }
 0x309   :  { %5366 = vmatpush1.bf16.msra.mxu1 %v6217_v9  ;;  %v4221_v26 = vpop.f32.mrf.mxu0  ;;  %5326 = vmatprep.subr.bf16.mxu0 %v6222_v12  ;;  %v6294_v9 = vld [vmem:[#allocation13 + $0x94] ss:$8 sps:$4 sm:$0xff]   ;;  %v6300_v25 = vld [vmem:[#allocation13 + $0x84] ss:$8 sps:$4 sm:$0xff]  }
 0x30a   :  { %v4262_v30 = vpop.f32.mrf.mxu1  ;;  %5367 = vmatprep.subr.bf16.mxu1 %v6225_v7  ;;  %v6297_v12 = vld [vmem:[#allocation13 + $0x194] ss:$8 sps:$4 sm:$0xff]   ;;  %v6292_v7 = vld [vmem:[#allocation13 + $0x90] ss:$8 sps:$4 sm:$0xff]   ;;  %v6303_v26 = vld [vmem:[#allocation13 + $0x184] ss:$8 sps:$4 sm:$0xff]  }
 0x30b   :  { %v6298_v30 = vld [vmem:[#allocation13 + $0x80] ss:$8 sps:$4 sm:$0xff]  }
 0x30c   :  { %5327 = vmatpush1.bf16.msra.mxu0 %v6220_v8  ;;  %v4518_v8 = vmul.f32 0.02, %v6874_v51 }
 0x30d   :  { %5368 = vmatpush1.bf16.msra.mxu1 %v6223_v27  ;;  %5328 = vmatprep.subr.bf16.mxu0 %v6228_v29  ;;  %v4520_v27 = vmul.f32 0.02, %v6898_v20  ;;  %v1277_v29 = vrot.slane %v6908_v6, %v6728_v18  ;;  %v6309_v18 = vld [vmem:[#allocation13 + $0x264] ss:$8 sps:$4 sm:$0xff]  }
 0x30e   :  { %5369 = vmatprep.subr.bf16.mxu1 %v6231_v31  ;;  %v6301_v31 = vld [vmem:[#allocation13 + $0x180] ss:$8 sps:$4 sm:$0xff]  }
 0x310   :  { %5329 = vmatpush1.bf16.msra.mxu0 %v6226_v32  ;;  %v6306_v32 = vld [vmem:[#allocation13 + $0x274] ss:$8 sps:$4 sm:$0xff]  }
 0x311   :  { %5370 = vmatpush1.bf16.msra.mxu1 %v6229_v33  ;;  %5330 = vmatprep.subr.bf16.mxu0 %v6234_v34  ;;  %v4526_v33 = vsel %vm4510_vm13, %v6874_v51, %v4518_v8  ;;  %v6354_v34 = vld [vmem:[#allocation13 + $0x374] ss:$8 sps:$4 sm:$0xff]  }
 0x312   :  { %5371 = vmatprep.subr.bf16.mxu1 %v6237_v36  ;;  %v4528_v36 = vsel %vm4512_vm14, %v6898_v20, %v4520_v27  ;;  %v6307_v20 = vld [vmem:[#allocation13 + $0x260] ss:$8 sps:$4 sm:$0xff]   ;;  %v6378_v8 = vld [vmem:[#allocation13 + $0x3f4] ss:$8 sps:$4 sm:$0xff]   ;;  %v6333_v27 = vld [vmem:[#allocation13 + $0x2e4] ss:$8 sps:$4 sm:$0xff]  }
 0x314   :  { %5331 = vmatpush1.bf16.msra.mxu0 %v6232_v38  ;;  %v4219_v38 = vadd.f32 %v6915_v62, %v1277_v29  ;;  %v6376_v29 = vld [vmem:[#allocation13 + $0x3f0] ss:$8 sps:$4 sm:$0xff]  }
 0x315   :  { %5372 = vmatpush1.bf16.msra.mxu1 %v6235_v39  ;;  %5332 = vmatprep.subr.bf16.mxu0 %v6240_v42  ;;  %v6304_v39 = vld [vmem:[#allocation13 + $0x270] ss:$8 sps:$4 sm:$0xff]   ;;  %v4534_v42 = vpack.c.bf16 %v4526_v33, %v4526_v33  ;;  %v6379_v33 = vld [vmem:[#allocation13 + $0x3e0] ss:$8 sps:$4 sm:$0xff]  }
 0x316   :  { %5373 = vmatprep.subr.bf16.mxu1 %v6243_v43  ;;  %v6352_v43 = vld [vmem:[#allocation13 + $0x370] ss:$8 sps:$4 sm:$0xff]   ;;  %v4260_v51 = vadd.f32 %v6919_v14, %v4219_v38  ;;  %v6339_v38 = vld [vmem:[#allocation13 + $0x2c4] ss:$8 sps:$4 sm:$0xff]  }
 0x318   :  { %5333 = vmatpush1.bf16.msra.mxu0 %v6238_v45  ;;  %v4536_v45 = vpack.c.bf16 %v4528_v36, %v4528_v36  ;;  %v6334_v36 = vld [vmem:[#allocation13 + $0x2d0] ss:$8 sps:$4 sm:$0xff]  }
 0x319   :  { %5374 = vmatpush1.bf16.msra.mxu1 %v6241_v28  ;;  %5334 = vmatprep.subr.bf16.mxu0 %v6246_v48  ;;  %v6357_v28 = vld [vmem:[#allocation13 + $0x364] ss:$8 sps:$4 sm:$0xff]  }
 0x31a   :  { %5375 = vmatprep.subr.bf16.mxu1 %v6249_v49 }
 0x31c   :  { %5335 = vmatpush1.bf16.msra.mxu0 %v6244_v47  ;;  %v6312_v47 = vld [vmem:[#allocation13 + $0x254] ss:$8 sps:$4 sm:$0xff]  }
 0x31d   :  { %5376 = vmatpush1.bf16.msra.mxu1 %v6247_v50  ;;  %5336 = vmatprep.subr.bf16.mxu0 %v6252_v52  ;;  %v6355_v50 = vld [vmem:[#allocation13 + $0x360] ss:$8 sps:$4 sm:$0xff]  }
 0x31e   :  { %5377 = vmatprep.subr.bf16.mxu1 %v6255_v44 }
 0x320   :  { %5337 = vmatpush1.bf16.msra.mxu0 %v6250_v53  ;;  %v6360_v53 = vld [vmem:[#allocation13 + $0x354] ss:$8 sps:$4 sm:$0xff]  }
 0x321   :  { %5378 = vmatpush1.bf16.msra.mxu1 %v6253_v21  ;;  %5338 = vmatprep.subr.bf16.mxu0 %v6258_v56 }
 0x322   :  { %5379 = vmatprep.subr.bf16.mxu1 %v6261_v5 }
 0x324   :  { %5339 = vmatpush2.bf16.msra.mxu0 %v6256_v54  ;;  %v6310_v54 = vld [vmem:[#allocation13 + $0x250] ss:$8 sps:$4 sm:$0xff]  }
 0x325   :  { %5380 = vmatpush2.bf16.msra.mxu1 %v6259_v55  ;;  %5340 = vmatprep.subr.bf16.mxu0 %v6264_v24  ;;  %v6315_v55 = vld [vmem:[#allocation13 + $0x244] ss:$8 sps:$4 sm:$0xff]   ;;  %v6358_v24 = vld [vmem:[#allocation13 + $0x350] ss:$8 sps:$4 sm:$0xff]  }
 0x326   :  { %5381 = vmatprep.subr.bf16.mxu1 %v6267_v46 }
 0x328   :  { %5341 = vmatpush2.bf16.msra.mxu0 %v6262_v58 }
 0x329   :  { %5382 = vmatpush2.bf16.msra.mxu1 %v6265_v60  ;;  %5342 = vmatprep.subr.bf16.mxu0 %v6270_v59  ;;  %v6363_v60 = vld [vmem:[#allocation13 + $0x344] ss:$8 sps:$4 sm:$0xff]   ;;  %v6313_v59 = vld [vmem:[#allocation13 + $0x240] ss:$8 sps:$4 sm:$0xff]  }
 0x32a   :  { %5383 = vmatprep.subr.bf16.mxu1 %v6273_v61 }
 0x32c   :  { %5343 = vmatpush2.bf16.msra.mxu0 %v6268_v40 }
 0x32d   :  { %5384 = vmatpush2.bf16.msra.mxu1 %v6271_v11  ;;  %5344 = vmatprep.subr.bf16.mxu0 %v6276_v10  ;;  %v6318_v11 = vld [vmem:[#allocation13 + $0x234] ss:$8 sps:$4 sm:$0xff]   ;;  %v6361_v10 = vld [vmem:[#allocation13 + $0x340] ss:$8 sps:$4 sm:$0xff]  }
 0x32e   :  { %5385 = vmatprep.subr.bf16.mxu1 %v6279_v35  ;;  %v6366_v35 = vld [vmem:[#allocation13 + $0x334] ss:$8 sps:$4 sm:$0xff]  }
 0x330   :  { %5345 = vmatpush2.bf16.msra.mxu0 %v6274_v0  ;;  %v6316_v0 = vld [vmem:[#allocation13 + $0x230] ss:$8 sps:$4 sm:$0xff]  }
 0x331   :  { %5386 = vmatpush2.bf16.msra.mxu1 %v6277_v57  ;;  %5346 = vmatprep.subr.bf16.mxu0 %v6282_v37  ;;  %v6321_v57 = vld [vmem:[#allocation13 + $0x224] ss:$8 sps:$4 sm:$0xff]   ;;  %v6364_v37 = vld [vmem:[#allocation13 + $0x330] ss:$8 sps:$4 sm:$0xff]  }
 0x332   :  { %5387 = vmatprep.subr.bf16.mxu1 %v6285_v41  ;;  %v6369_v41 = vld [vmem:[#allocation13 + $0x324] ss:$8 sps:$4 sm:$0xff]  }
 0x334   :  { %5347 = vmatpush2.bf16.msra.mxu0 %v6280_v63  ;;  %v6319_v63 = vld [vmem:[#allocation13 + $0x220] ss:$8 sps:$4 sm:$0xff]  }
 0x335   :  { %5388 = vmatpush2.bf16.msra.mxu1 %v6283_v1  ;;  %5348 = vmatprep.subr.bf16.mxu0 %v6288_v2  ;;  %v6324_v1 = vld [vmem:[#allocation13 + $0x214] ss:$8 sps:$4 sm:$0xff]   ;;  %v6367_v2 = vld [vmem:[#allocation13 + $0x320] ss:$8 sps:$4 sm:$0xff]  }
 0x336   :  { %5389 = vmatprep.subr.bf16.mxu1 %v6291_v3  ;;  %v6372_v3 = vld [vmem:[#allocation13 + $0x314] ss:$8 sps:$4 sm:$0xff]  }
 0x338   :  { %5349 = vmatpush2.bf16.msra.mxu0 %v6286_v19  ;;  %v6322_v19 = vld [vmem:[#allocation13 + $0x210] ss:$8 sps:$4 sm:$0xff]  }
 0x339   :  { %5390 = vmatpush2.bf16.msra.mxu1 %v6289_v4  ;;  %5350 = vmatprep.subr.bf16.mxu0 %v6294_v9  ;;  %v6327_v4 = vld [vmem:[#allocation13 + $0x204] ss:$8 sps:$4 sm:$0xff]   ;;  %v6370_v9 = vld [vmem:[#allocation13 + $0x310] ss:$8 sps:$4 sm:$0xff]  }
 0x33a   :  { %5391 = vmatprep.subr.bf16.mxu1 %v6297_v12  ;;  %v6375_v12 = vld [vmem:[#allocation13 + $0x304] ss:$8 sps:$4 sm:$0xff]  }
 0x33c   :  { %5351 = vmatpush2.bf16.msra.mxu0 %v6292_v7  ;;  %v6325_v7 = vld [vmem:[#allocation13 + $0x200] ss:$8 sps:$4 sm:$0xff]  }
 0x33d   :  { %5392 = vmatpush2.bf16.msra.mxu1 %v6295_v17  ;;  %5352 = vmatprep.subr.bf16.mxu0 %v6300_v25  ;;  %v6330_v17 = vld [vmem:[#allocation13 + $0x2f4] ss:$8 sps:$4 sm:$0xff]   ;;  %v6373_v25 = vld [vmem:[#allocation13 + $0x300] ss:$8 sps:$4 sm:$0xff]  }
 0x33e   :  { %5393 = vmatprep.subr.bf16.mxu1 %v6303_v26  ;;  %v6328_v26 = vld [vmem:[#allocation13 + $0x2f0] ss:$8 sps:$4 sm:$0xff]  }
 0x340   :  { %5353 = vmatpush2.bf16.msra.mxu0 %v6298_v30  ;;  %v6381_v30 = vld [vmem:[#allocation13 + $0x3e4] ss:$8 sps:$4 sm:$0xff]  }
 0x341   :  { %5394 = vmatpush2.bf16.msra.mxu1 %v6301_v31  ;;  %5404 = vmatprep.subr.bf16.mxu0 %v6306_v32  ;;  %v6331_v31 = vld [vmem:[#allocation13 + $0x2e0] ss:$8 sps:$4 sm:$0xff]   ;;  %v6336_v32 = vld [vmem:[#allocation13 + $0x2d4] ss:$8 sps:$4 sm:$0xff]  }
 0x342   :  { %5445 = vmatprep.subr.bf16.mxu1 %v6354_v34  ;;  %v6384_v34 = vld [vmem:[#allocation13 + $0x3d4] ss:$8 sps:$4 sm:$0xff]  }
 0x343   :  { %v6930_v48 = vpop.f32.mrf.mxu0  ;;  %5355 = vmatmul.mubr.bf16.vlgmr.msra.gmra.mxu0 %v4534_v42  ;;  %v6387_v42 = vld [vmem:[#allocation13 + $0x3c4] ss:$8 sps:$4 sm:$0xff]  }
 0x344   :  { %v6933_v49 = vpop.f32.mrf.mxu1  ;;  %5396 = vmatmul.mubr.bf16.vlgmr.msra.gmra.mxu1 %v4536_v45  ;;  %5405 = vmatpush1.bf16.msra.mxu0 %v6304_v39  ;;  %v6382_v39 = vld [vmem:[#allocation13 + $0x3d0] ss:$8 sps:$4 sm:$0xff]   ;;  %v6385_v45 = vld [vmem:[#allocation13 + $0x3c0] ss:$8 sps:$4 sm:$0xff]  }
 0x345   :  { %v4300_v62 = vpop.f32.mrf.mxu0  ;;  %5406 = vmatprep.subr.bf16.mxu0 %v6309_v18  ;;  %5446 = vmatpush1.bf16.msra.mxu1 %v6352_v43  ;;  %v6337_v18 = vld [vmem:[#allocation13 + $0x2c0] ss:$8 sps:$4 sm:$0xff]   ;;  %v6342_v43 = vld [vmem:[#allocation13 + $0x2b4] ss:$8 sps:$4 sm:$0xff]  }
 0x346   :  { %v4301_v52 = vadd.f32 %v4300_v62, %v4260_v51  ;;  %v4341_v44 = vpop.f32.mrf.mxu1  ;;  %5447 = vmatprep.subr.bf16.mxu1 %v6357_v28  ;;  %v6390_v28 = vld [vmem:[#allocation13 + $0x3b4] ss:$8 sps:$4 sm:$0xff]   ;;  %v6340_v51 = vld [vmem:[#allocation13 + $0x2b0] ss:$8 sps:$4 sm:$0xff]  }
 0x347   :  { %v4302_v21 = vpop.f32.mrf.mxu0  ;;  %v6388_v62 = vld [vmem:[#allocation13 + $0x3b0] ss:$8 sps:$4 sm:$0xff]  }
 0x348   :  { %v4342_v56 = vadd.f32 %v4341_v44, %v4301_v52  ;;  %v4343_v5 = vpop.f32.mrf.mxu1  ;;  %5407 = vmatpush1.bf16.msra.mxu0 %v6307_v20  ;;  %v6345_v20 = vld [vmem:[#allocation13 + $0x2a4] ss:$8 sps:$4 sm:$0xff]   ;;  %v6343_v52 = vld [vmem:[#allocation13 + $0x2a0] ss:$8 sps:$4 sm:$0xff]   ;;  %v6348_v44 = vld [vmem:[#allocation13 + $0x294] ss:$8 sps:$4 sm:$0xff]  }
 0x349   :  { %v4303_v14 = vpop.f32.mrf.mxu0  ;;  %5408 = vmatprep.subr.bf16.mxu0 %v6312_v47  ;;  %5448 = vmatpush1.bf16.msra.mxu1 %v6355_v50  ;;  %v4299_v47 = vadd.f32 %v6930_v48, %v6917_v13  ;;  %v6393_v50 = vld [vmem:[#allocation13 + $0x3a4] ss:$8 sps:$4 sm:$0xff]   ;;  %v6346_v5 = vld [vmem:[#allocation13 + $0x290] ss:$8 sps:$4 sm:$0xff]   ;;  %v6349_v48 = vld [vmem:[#allocation13 + $0x280] ss:$8 sps:$4 sm:$0xff]  }
 0x34a   :  { %vm4515_vm15 = vcmp.ge.f32.partialorder %v4342_v56, 0.0  ;;  %v4523_v46 = vmul.f32 0.02, %v4342_v56  ;;  %v4344_v58 = vpop.f32.mrf.mxu1  ;;  %5449 = vmatprep.subr.bf16.mxu1 %v6360_v53  ;;  %v6391_v53 = vld [vmem:[#allocation13 + $0x3a0] ss:$8 sps:$4 sm:$0xff]  }
 0x34b   :  { %v4340_v21 = vadd.f32 %v6933_v49, %v4299_v47  ;;  %v6394_v14 = vld [vmem:[#allocation13 + $0x390] ss:$8 sps:$4 sm:$0xff]   ;;  %v6399_v13 = vld [vmem:[#allocation13 + $0x384] ss:$8 sps:$4 sm:$0xff]  }
 0x34c   :  { %5409 = vmatpush1.bf16.msra.mxu0 %v6310_v54  ;;  %v4531_v61 = vsel %vm4515_vm15, %v4342_v56, %v4523_v46  ;;  %v6396_v56 = vld [vmem:[#allocation13 + $0x394] ss:$8 sps:$4 sm:$0xff]   ;;  %v6351_v54 = vld [vmem:[#allocation13 + $0x284] ss:$8 sps:$4 sm:$0xff]  }
 0x34d   :  { %5410 = vmatprep.subr.bf16.mxu0 %v6315_v55  ;;  %v4539_v40 = vpack.c.bf16 %v4531_v61, %v4531_v61  ;;  %5450 = vmatpush1.bf16.msra.mxu1 %v6358_v24  ;;  %v4522_v55 = vmul.f32 0.02, %v4340_v21  ;;  %vm4514_vm0 = vcmp.ge.f32.partialorder %v4340_v21, 0.0  ;;  %v6397_v24 = vld [vmem:[#allocation13 + $0x380] ss:$8 sps:$4 sm:$0xff]  }
 0x34e   :  { %5451 = vmatprep.subr.bf16.mxu1 %v6363_v60 }
 0x34f   :  { %5436 = vmatprep.mubr.bf16.mxu0 %v4539_v40  ;;  %v4530_v46 = vsel %vm4514_vm0, %v4340_v21, %v4522_v55 }
 0x350   :  { %5411 = vmatpush1.bf16.msra.mxu0 %v6313_v59  ;;  %v4538_v49 = vpack.c.bf16 %v4530_v46, %v4530_v46 }
 0x351   :  { %5412 = vmatprep.subr.bf16.mxu0 %v6318_v11  ;;  %5452 = vmatpush1.bf16.msra.mxu1 %v6361_v10 }
 0x352   :  { %5453 = vmatprep.subr.bf16.mxu1 %v6366_v35 }
 0x354   :  { %5413 = vmatpush1.bf16.msra.mxu0 %v6316_v0  ;;  %v1281_v0 = vrot.slane %v6908_v6, %v6738_v23 }
 0x355   :  { %5414 = vmatprep.subr.bf16.mxu0 %v6321_v57  ;;  %5454 = vmatpush1.bf16.msra.mxu1 %v6364_v37  ;;  %v1285_v57 = vrot.slane %v6908_v6, %v6736_v22 }
 0x356   :  { %5455 = vmatprep.subr.bf16.mxu1 %v6369_v41 }
 0x358   :  { %5415 = vmatpush1.bf16.msra.mxu0 %v6319_v63 }
 0x359   :  { %5416 = vmatprep.subr.bf16.mxu0 %v6324_v1  ;;  %5456 = vmatpush1.bf16.msra.mxu1 %v6367_v2 }
 0x35a   :  { %5457 = vmatprep.subr.bf16.mxu1 %v6372_v3 }
 0x35c   :  { %5417 = vmatpush1.bf16.msra.mxu0 %v6322_v19 }
 0x35d   :  { %5418 = vmatprep.subr.bf16.mxu0 %v6327_v4  ;;  %5458 = vmatpush1.bf16.msra.mxu1 %v6370_v9 }
 0x35e   :  { %5459 = vmatprep.subr.bf16.mxu1 %v6375_v12 }
 0x360   :  { %5419 = vmatpush1.bf16.msra.mxu0 %v6325_v7 }
 0x361   :  { %5420 = vmatprep.subr.bf16.mxu0 %v6330_v17  ;;  %5460 = vmatpush1.bf16.msra.mxu1 %v6373_v25 }
 0x362   :  { %5461 = vmatprep.subr.bf16.mxu1 %v6378_v8 }
 0x364   :  { %5421 = vmatpush2.bf16.msra.mxu0 %v6328_v26 }
 0x365   :  { %5422 = vmatprep.subr.bf16.mxu0 %v6333_v27  ;;  %5462 = vmatpush2.bf16.msra.mxu1 %v6376_v29 }
 0x366   :  { %5463 = vmatprep.subr.bf16.mxu1 %v6381_v30 }
 0x368   :  { %5423 = vmatpush2.bf16.msra.mxu0 %v6331_v31 }
 0x369   :  { %5424 = vmatprep.subr.bf16.mxu0 %v6336_v32  ;;  %5464 = vmatpush2.bf16.msra.mxu1 %v6379_v33  ;;  %v4670_v32 = vld [vmem:[#allocation14] sm:$0x3] }
 0x36a   :  { %5465 = vmatprep.subr.bf16.mxu1 %v6384_v34  ;;  %v4675_v33 = vrot.slane %v4670_v32, %v6726_v16  ;;  %v4679_v34 = vrot.slane %v4670_v32, %v6724_v15 }
 0x36c   :  { %5425 = vmatpush2.bf16.msra.mxu0 %v6334_v36 }
 0x36d   :  { %5426 = vmatprep.subr.bf16.mxu0 %v6339_v38  ;;  %5466 = vmatpush2.bf16.msra.mxu1 %v6382_v39 }
 0x36e   :  { %5467 = vmatprep.subr.bf16.mxu1 %v6387_v42 }
 0x370   :  { %5427 = vmatpush2.bf16.msra.mxu0 %v6337_v18 }
 0x371   :  { %5428 = vmatprep.subr.bf16.mxu0 %v6342_v43  ;;  %5468 = vmatpush2.bf16.msra.mxu1 %v6385_v45 }
 0x372   :  { %5469 = vmatprep.subr.bf16.mxu1 %v6390_v28 }
 0x374   :  { %5429 = vmatpush2.bf16.msra.mxu0 %v6340_v51 }
 0x375   :  { %5430 = vmatprep.subr.bf16.mxu0 %v6345_v20  ;;  %5470 = vmatpush2.bf16.msra.mxu1 %v6388_v62 }
 0x376   :  { %5471 = vmatprep.subr.bf16.mxu1 %v6393_v50 }
 0x378   :  { %5431 = vmatpush2.bf16.msra.mxu0 %v6343_v52 }
 0x379   :  { %5432 = vmatprep.subr.bf16.mxu0 %v6348_v44  ;;  %5472 = vmatpush2.bf16.msra.mxu1 %v6391_v53 }
 0x37a   :  { %5473 = vmatprep.subr.bf16.mxu1 %v6396_v56 }
 0x37c   :  { %5433 = vmatpush2.bf16.msra.mxu0 %v6346_v5 }
 0x37d   :  { %5434 = vmatprep.subr.bf16.mxu0 %v6351_v54  ;;  %5474 = vmatpush2.bf16.msra.mxu1 %v6394_v14 }
 0x37e   :  { %5475 = vmatprep.subr.bf16.mxu1 %v6399_v13 }
 0x380   :  { %5435 = vmatpush2.bf16.msra.mxu0 %v6349_v48 }
 0x381   :  { %5476 = vmatpush2.bf16.msra.mxu1 %v6397_v24 }
 0x383   :  { %v4380_v58 = vpop.f32.mrf.mxu0  ;;  %5437 = vmatmul.mubr.bf16.vlgmr.msra.gmra.mxu0 %v4538_v49 }
 0x384   :  { %v4421_v60 = vpop.f32.mrf.mxu1  ;;  %v4381_v37 = vadd.f32 %v4380_v58, %v1281_v0 }
 0x385   :  { %v4382_v59 = vpop.f32.mrf.mxu0 }
 0x386   :  { %v4423_v61 = vpop.f32.mrf.mxu1  ;;  %v4383_v41 = vadd.f32 %v4382_v59, %v1285_v57  ;;  %v4422_v63 = vadd.f32 %v4421_v60, %v4381_v37 }
 0x387   :  { %v4384_v40 = vpop.f32.mrf.mxu0 }
 0x388   :  { %v4425_v11 = vpop.f32.mrf.mxu1  ;;  %v4424_v2 = vadd.f32 %v4423_v61, %v4383_v41 }
 0x389   :  { %v4385_v10 = vpop.f32.mrf.mxu0 }
 0x38a   :  { %v4426_v35 = vpop.f32.mrf.mxu1 }
 0x3c3   :  { %v4462_v1 = vpop.f32.mrf.mxu0 }
 0x3c4   :  { %v4463_v3 = vadd.f32 %v4462_v1, %v4422_v63  ;;  %v4503_v19 = vpop.f32.mrf.mxu1 }
 0x3c5   :  { %v4464_v4 = vpop.f32.mrf.mxu0 }
 0x3c6   :  { %v4504_v9 = vadd.f32 %v4503_v19, %v4463_v3  ;;  %v4465_v12 = vadd.f32 %v4464_v4, %v4424_v2  ;;  %v4505_v7 = vpop.f32.mrf.mxu1 }
 0x3c7   :  { %v4466_v17 = vpop.f32.mrf.mxu0 }
 0x3c8   :  { %vm4516_vm1 = vcmp.ge.f32.partialorder %v4504_v9, 0.0  ;;  %v4524_v25 = vmul.f32 0.02, %v4504_v9  ;;  %v4506_v8 = vadd.f32 %v4505_v7, %v4465_v12  ;;  %v4507_v26 = vpop.f32.mrf.mxu1 }
 0x3c9   :  { %v4467_v23 = vpop.f32.mrf.mxu0 }
 0x3ca   :  { %vm4517_vm2 = vcmp.ge.f32.partialorder %v4506_v8, 0.0  ;;  %v4525_v27 = vmul.f32 0.02, %v4506_v8  ;;  %v4508_v22 = vpop.f32.mrf.mxu1  ;;  %v4532_v6 = vsel %vm4516_vm1, %v4504_v9, %v4524_v25 }
 0x3cb   :  { %v4540_v31 = vpack.c.bf16 %v4532_v6, %v4532_v6 }
 0x3cc   :  { %v4533_v29 = vsel %vm4517_vm2, %v4506_v8, %v4525_v27 }
 0x3cd   :  { %v4541_v30 = vpack.c.bf16 %v4533_v29, %v4533_v29 }
 0x3cf   :  { %5477 = vmatprep.mubr.bf16.mxu1 %v4541_v30 }
 0x3d0   :  { %5478 = vmatmul.mubr.bf16.vlgmr.msra.gmra.mxu1 %v4540_v31 }
 0x403   :  { %v5356_v36 = vpop.f32.mrf.mxu0 }
 0x404   :  { %v5357_v38 = vadd.f32 %v5356_v36, %v4675_v33  ;;  %v5397_v39 = vpop.f32.mrf.mxu1 }
 0x405   :  { %v5358_v42 = vpop.f32.mrf.mxu0 }
 0x406   :  { %v5398_v18 = vadd.f32 %v5397_v39, %v5357_v38  ;;  %v5359_v43 = vadd.f32 %v5358_v42, %v4679_v34  ;;  %v5399_v45 = vpop.f32.mrf.mxu1 }
 0x407   :  { %v5360_v28 = vpop.f32.mrf.mxu0 }
 0x408   :  { %v5400_v51 = vadd.f32 %v5399_v45, %v5359_v43  ;;  %v5401_v20 = vpop.f32.mrf.mxu1 }
 0x409   :  { %v5361_v62 = vpop.f32.mrf.mxu0 }
 0x40a   :  { %v5402_v47 = vpop.f32.mrf.mxu1 }
 0x443   :  { %v5438_v50 = vpop.f32.mrf.mxu0 }
 0x444   :  { %v5439_v52 = vadd.f32 %v5438_v50, %v5398_v18 }
 0x445   :  { %v5440_v44 = vpop.f32.mrf.mxu0 }
 0x446   :  { %v5441_v53 = vadd.f32 %v5440_v44, %v5400_v51 }
 0x447   :  { %v5442_v21 = vpop.f32.mrf.mxu0 }
 0x449   :  { %v5443_v16 = vpop.f32.mrf.mxu0 }
 0x490   :  { %v5479_v56 = vpop.f32.mrf.mxu1 }
 0x491   :  { %v5480_v15 = vadd.f32 %v5479_v56, %v5439_v52 }
 0x492   :  { %v5481_v5 = vpop.f32.mrf.mxu1 }
 0x493   :  { %v5486_v54 = vmax.f32 %v5480_v15, 0.0  ;;  %v5482_v14 = vadd.f32 %v5481_v5, %v5441_v53 }
 0x494   :  { %v5483_v55 = vpop.f32.mrf.mxu1 }
 0x495   :  { %v5487_v13 = vmax.f32 %v5482_v14, 0.0  ;;  %v5488_v24 = vmul.f32 %v5486_v54, %v5486_v54 }
 0x496   :  { %v5484_v48 = vpop.f32.mrf.mxu1 }
 0x497   :  { %v5489_v46 = vmul.f32 %v5487_v13, %v5487_v13 }
 0x499   :  { %v5490_v49 = vadd.f32 %v5489_v46, %v5488_v24 }
 0x49b   :  { %5491 = vadd.xlane.f32.xlu0 %v5490_v49 }
 0x524   :  { %v5492_v58 = vpop.xlane.xlu0 %5491 }
 0x525   :  { %6400 = vrsqrt.f32 %v5492_v58 }
 0x532   :  { %v6401_v60 = vpop.eup %6400 }
 0x533   :  { %v5494_v59 = vmul.f32 %v6401_v60, %v5486_v54  ;;  %v5495_v61 = vmul.f32 %v6401_v60, %v5487_v13 }
 0x535   :  { %5496 = vst [vmem:[#allocation16] sm:$0xff] %v5494_v59  ;;  %5497 = vst [vmem:[#allocation16 + $0x8] sm:$0xff] %v5495_v61 }
 0x536   :  { %6574 = shalt.err (!%p6571_p2)
}
 0x537   :  { %5507 = dma.vmem_to_hbm [thread:$0]  %s5505_s13, 256, %s6956_s9, [#allocation4]  }
 0x538   :  { %6593 = dma.done.wait [#allocation4], 256  }
 0x539   :  { %6594 = vsyncadd [#allocation4], 4294967040 }
 0x53a   :  { %5511 = vsyncpa [#allocation3], 1 }
 0x53b   :  { %5512 = vsyncpa [#allocation6], 1 }
 0x53c   :  { %5513 = vsyncpa [#allocation9], 1 }
 0x53d   :  { %5514 = vsyncpa [#allocation12], 1 }
 0x53e   :  { %5515 = vsyncpa [#allocation15], 1 }
 0x53f   :  { %5516 = vsyncpa [#allocation4], 1 }

</bundles_post_ra>
